<compile_context>
chip_gen: v5e
topology: v5e:2x2
jax: 0.10.0
libtpu: 0.0.40
codegen_flags: <defaults>
</compile_context>

<pallas_src>
import functools

import jax
import jax.numpy as jnp
from jax.experimental import pallas as pl
from jax.experimental.pallas import tpu as pltpu

EPS = 1e-5


def _fused_kernel(x_ref, w_ref, gb_ref, o_ref, *, inv_r):
    # x_ref:  (Cin, R)   f32   R = N*H*W  (transposed-for-free in the wrapper)
    # w_ref:  (Cb, Cin)  bf16  (block of output channels)
    # gb_ref: (Cb, 2)    f32   column 0 = gamma, column 1 = beta
    # o_ref:  (Cb, R)    f32
    x = jnp.maximum(x_ref[...], 0.0)                       # ReLU (VPU)
    x = x.astype(w_ref.dtype)                              # bf16 for single-pass MXU
    # 1x1 conv == channel matmul, transposed orientation: (Cb,Cin)@(Cin,R) -> (Cb,R), f32 acc.
    y = jnp.dot(w_ref[...], x, preferred_element_type=jnp.float32)

    # Two-pass batch statistics per output channel (reduce along lane axis R) — robust vs
    # one-pass E[y^2]-mean^2 cancellation, and effectively free (y is VMEM-resident, XLU slack).
    mean = jnp.sum(y, axis=-1, keepdims=True) * jnp.float32(inv_r)       # (Cb, 1)
    c = y - mean
    var = jnp.sum(c * c, axis=-1, keepdims=True) * jnp.float32(inv_r)    # (Cb, 1)
    inv = jax.lax.rsqrt(var + jnp.float32(EPS))                          # EUP

    gamma = gb_ref[:, 0:1]                                               # (Cb, 1)
    beta = gb_ref[:, 1:2]                                                # (Cb, 1)
    o_ref[...] = c * (inv * gamma) + beta


def _num_cout_blocks(cout):
    """2-way Cout split only on v7x (2 TensorCores/chip); single block on v5e/v6e."""
    try:
        kind = jax.devices()[0].device_kind.lower()
    except Exception:  # pragma: no cover - be conservative if detection fails
        return 1
    if ("v7" in kind or "7x" in kind) and cout % 2 == 0 and (cout // 2) % 8 == 0:
        return 2
    return 1


def fused_relu_conv1x1_bn(x_nchw, conv_w, gamma, beta, *, weight_dtype=jnp.bfloat16):
    """x_nchw: (N, Cin, H, W); conv_w: (Cout, Cin, 1, 1); gamma/beta: (Cout,)"""
    N, Cin, H, W = x_nchw.shape
    Cout = conv_w.shape[0]
    R = N * H * W

    # Layout plumbing with zero HBM-to-HBM transposes for the module's N=1 case.
    if N == 1:
        x2d = x_nchw.reshape(Cin, R).astype(jnp.float32)                 # pure reshape (view)
    else:
        # General-N fallback (requires a transpose; the spec shape has N=1).
        x2d = jnp.transpose(x_nchw, (1, 0, 2, 3)).reshape(Cin, R).astype(jnp.float32)

    # bf16 weight: halves the largest DMA. (In a real pipeline the weight would already live
    # in bf16; here the cast is a tiny one-off wrapper op.)
    w2d = conv_w.reshape(Cout, Cin).astype(weight_dtype)
    # Pack gamma/beta into a single lane-cheap (Cout, 2) array instead of two (Cout, 1) inputs.
    gb = jnp.stack([gamma.astype(jnp.float32), beta.astype(jnp.float32)], axis=-1)

    ncb = _num_cout_blocks(Cout)
    Cb = Cout // ncb

    cost = pl.CostEstimate(
        flops=2 * R * Cin * Cout,
        transcendentals=Cout,
        bytes_accessed=(4 * R * Cin
                        + jnp.dtype(weight_dtype).itemsize * Cin * Cout
                        + 4 * Cout * R
                        + 4 * 2 * Cout),
    )

    # Single block per Cout-shard: the whole problem (~1 MB) fits VMEM comfortably on all chips,
    # so no K-grid / pipelining is needed at this size.
    # TODO(synk): for large R (real batch sizes) switch to a row-tiled grid (R last, "arbitrary",
    # lane-multiple-of-128 tiles) with (Cout,1) sum/sumsq VMEM accumulators, sized against v7x's
    # 32 MiB scoped-VMEM default.
    out2d = pl.pallas_call(
        functools.partial(_fused_kernel, inv_r=1.0 / R),
        out_shape=jax.ShapeDtypeStruct((Cout, R), jnp.float32),
        grid=(ncb,),
        in_specs=[
            pl.BlockSpec((Cin, R), lambda i: (0, 0)),
            pl.BlockSpec((Cb, Cin), lambda i: (i, 0)),
            pl.BlockSpec((Cb, 2), lambda i: (i, 0)),
        ],
        out_specs=pl.BlockSpec((Cb, R), lambda i: (i, 0)),
        compiler_params=pltpu.CompilerParams(dimension_semantics=("parallel",)),
        cost_estimate=cost,
    )(x2d, w2d, gb)

    if N == 1:
        return out2d.reshape(1, Cout, H, W)                              # pure reshape (view)
    return jnp.transpose(out2d.reshape(Cout, N, H, W), (1, 0, 2, 3))


def _reference(x_nchw, conv_w, gamma, beta):
    N, Cin, H, W = x_nchw.shape
    Cout = conv_w.shape[0]
    x = jnp.maximum(x_nchw, 0.0)
    x2d = jnp.transpose(x, (0, 2, 3, 1)).reshape(-1, Cin)
    y2d = x2d @ jnp.transpose(conv_w.reshape(Cout, Cin), (1, 0))
    y = jnp.transpose(y2d.reshape(N, H, W, Cout), (0, 3, 1, 2))
    mean = jnp.mean(y, axis=(0, 2, 3), keepdims=True)
    var = jnp.mean((y - mean) ** 2, axis=(0, 2, 3), keepdims=True)
    return (y - mean) / jnp.sqrt(var + EPS) * gamma.reshape(1, -1, 1, 1) + beta.reshape(1, -1, 1, 1)


if __name__ == "__main__":
    key = jax.random.PRNGKey(0)
    k_x, k_w = jax.random.split(key)

    # Shapes match the PyTorch module: x406 = (1, 1104, 7, 7), Conv2d(1104 -> 192, 1x1)
    N, Cin, H, W, Cout = 1, 1104, 7, 7, 192

    x = jax.random.normal(k_x, (N, Cin, H, W), dtype=jnp.float32)
    conv_w = jax.random.normal(k_w, (Cout, Cin, 1, 1), dtype=jnp.float32) * 0.02
    gamma = jnp.ones((Cout,), dtype=jnp.float32)   # BatchNorm default affine init
    beta = jnp.zeros((Cout,), dtype=jnp.float32)

    out = fused_relu_conv1x1_bn(x, conv_w, gamma, beta)
    out = jax.block_until_ready(out)

    ref = jax.block_until_ready(_reference(x, conv_w, gamma, beta))
    assert out.shape == (N, Cout, H, W)
    # Tolerance deliberately relaxed: kernel uses bf16 conv inputs (f32 accumulation) vs the
    # f32 reference; observed error is ~1e-3, well inside 5e-2, while real bugs would be O(1).
    assert jnp.allclose(out, ref, atol=5e-2, rtol=5e-2)

    print("KERNEL_OK")
</pallas_src>

<mosaic_0001>
module attributes {stable_mosaic.version = 11 : i64} {
  func.func @_fused_kernel(%arg0: i32, %arg1: memref<1104x49xf32, #tpu.memory_space<vmem>>, %arg2: memref<192x1104xbf16, #tpu.memory_space<vmem>>, %arg3: memref<192x2xf32, #tpu.memory_space<vmem>>, %arg4: memref<192x49xf32, #tpu.memory_space<vmem>>) attributes {dimension_semantics = [#tpu.dimension_semantics<parallel>], iteration_bounds = array<i64: 1>, scalar_prefetch = 0 : i64, scratch_operands = 0 : i64, tpu.core_type = #tpu.core_type<tc>, window_params = [{pipeline_mode = #tpu.pipeline_mode<synchronous>, transform_indices = @transform_0, window_bounds = array<i64: 1104, 49>}, {transform_indices = @transform_1, window_bounds = array<i64: 192, 1104>}, {transform_indices = @transform_2, window_bounds = array<i64: 192, 2>}, {transform_indices = @transform_3, window_bounds = array<i64: 192, 49>}]} {
    %c0 = arith.constant 0 : index
    %c0_0 = arith.constant 0 : index
    %0 = vector.load %arg1[%c0, %c0_0] : memref<1104x49xf32, #tpu.memory_space<vmem>>, vector<1104x49xf32>
    %cst = arith.constant 0.000000e+00 : f32
    %1 = vector.broadcast %cst : f32 to vector<1104x49xf32>
    %2 = arith.maximumf %0, %1 : vector<1104x49xf32>
    %3 = arith.truncf %2 : vector<1104x49xf32> to vector<1104x49xbf16>
    %c0_1 = arith.constant 0 : index
    %c0_2 = arith.constant 0 : index
    %4 = vector.load %arg2[%c0_1, %c0_2] : memref<192x1104xbf16, #tpu.memory_space<vmem>>, vector<192x1104xbf16>
    %cst_3 = arith.constant dense<0.000000e+00> : vector<192x49xf32>
    %5 = tpu.matmul %4, %3, %cst_3 {dimension_numbers = #tpu.dot_dimension_numbers<[1], [0], [0], [1], [0, 0, 1, 1], [], []>} : vector<192x1104xbf16>, vector<1104x49xbf16>, vector<192x49xf32> -> vector<192x49xf32>
    %cst_4 = arith.constant dense<0.000000e+00> : vector<192xf32>
    %6 = vector.multi_reduction <add>, %5, %cst_4 [1] : vector<192x49xf32> to vector<192xf32>
    %7 = vector.shape_cast %6 : vector<192xf32> to vector<192x1xf32>
    %cst_5 = arith.constant 0.0204081628 : f32
    %8 = vector.broadcast %cst_5 : f32 to vector<192x1xf32>
    %9 = arith.mulf %7, %8 : vector<192x1xf32>
    %10 = vector.broadcast %9 : vector<192x1xf32> to vector<192x49xf32>
    %11 = arith.subf %5, %10 : vector<192x49xf32>
    %12 = arith.mulf %11, %11 : vector<192x49xf32>
    %cst_6 = arith.constant dense<0.000000e+00> : vector<192xf32>
    %13 = vector.multi_reduction <add>, %12, %cst_6 [1] : vector<192x49xf32> to vector<192xf32>
    %14 = vector.shape_cast %13 : vector<192xf32> to vector<192x1xf32>
    %cst_7 = arith.constant 0.0204081628 : f32
    %15 = vector.broadcast %cst_7 : f32 to vector<192x1xf32>
    %16 = arith.mulf %14, %15 : vector<192x1xf32>
    %cst_8 = arith.constant 9.99999974E-6 : f32
    %17 = vector.broadcast %cst_8 : f32 to vector<192x1xf32>
    %18 = arith.addf %16, %17 : vector<192x1xf32>
    %19 = math.rsqrt %18 : vector<192x1xf32>
    %c0_9 = arith.constant 0 : index
    %c0_10 = arith.constant 0 : index
    %20 = vector.load %arg3[%c0_9, %c0_10] : memref<192x2xf32, #tpu.memory_space<vmem>>, vector<192x1xf32>
    %c0_11 = arith.constant 0 : index
    %c1 = arith.constant 1 : index
    %21 = vector.load %arg3[%c0_11, %c1] : memref<192x2xf32, #tpu.memory_space<vmem>>, vector<192x1xf32>
    %22 = arith.mulf %19, %20 : vector<192x1xf32>
    %23 = vector.broadcast %22 : vector<192x1xf32> to vector<192x49xf32>
    %24 = arith.mulf %11, %23 : vector<192x49xf32>
    %25 = vector.broadcast %21 : vector<192x1xf32> to vector<192x49xf32>
    %26 = arith.addf %24, %25 : vector<192x49xf32>
    %c0_12 = arith.constant 0 : index
    %c0_13 = arith.constant 0 : index
    %27 = vector.load %arg4[%c0_12, %c0_13] : memref<192x49xf32, #tpu.memory_space<vmem>>, vector<192x49xf32>
    tpu.vector_store %arg4[%c0_12, %c0_13], %26 {strides = array<i32>} : memref<192x49xf32, #tpu.memory_space<vmem>>, vector<192x49xf32>,
    return
  }
  func.func @transform_0(%arg0: i32) -> (i32, i32) {
    %c0_i32 = arith.constant 0 : i32
    %c0_i32_0 = arith.constant 0 : i32
    %c0_i32_1 = arith.constant 0 : i32
    return %c0_i32, %c0_i32_0 : i32, i32
  }
  func.func @transform_1(%arg0: i32) -> (i32, i32) {
    %c0_i32 = arith.constant 0 : i32
    %c0_i32_0 = arith.constant 0 : i32
    return %arg0, %c0_i32 : i32, i32
  }
  func.func @transform_2(%arg0: i32) -> (i32, i32) {
    %c0_i32 = arith.constant 0 : i32
    %c0_i32_0 = arith.constant 0 : i32
    return %arg0, %c0_i32 : i32, i32
  }
  func.func @transform_3(%arg0: i32) -> (i32, i32) {
    %c0_i32 = arith.constant 0 : i32
    %c0_i32_0 = arith.constant 0 : i32
    return %arg0, %c0_i32 : i32, i32
  }
}

</mosaic_0001>

<bundles_post_ra>
// kernel: tpu_custom_call.1
= control target key start
LH: loop header
LB: loop body
LE: loop exit
PB: predicated region body
PF: predicated region fallthrough
CT: control target
= control target key end

     0   :  { %vm1020_vm0 = vcmask 654336   ;;  %vm1678_vm1 = vcmask 400384   ;;  %s5167_s0 = inlined_call_operand.vmem [shape: f32[1104,49], index: 0, kind: input, shape index: {}]   ;;  %s5168_s1 = inlined_call_operand.vmem [shape: bf16[192,1104], index: 1, kind: input, shape index: {}]   ;;  %s5169_s2 = inlined_call_operand.vmem [shape: f32[192,2], index: 2, kind: input, shape index: {}]   ;;  %s5170_s3 = inlined_call_operand.vmem [shape: f32[192,49], index: 3, kind: output, shape index: {}]  }
   0x1   :  { %v29_v0 = vld [vmem:[%s5167_s0 + $0x70] sm:$0xff]  ;;  %v30_v1 = vld [vmem:[%s5167_s0 + $0x78] sm:$0xff]  ;;  %v27_v2 = vld [vmem:[%s5167_s0 + $0x60] sm:$0xff] }
   0x2   :  { %v167_v3 = vmax.f32 %v29_v0, 0.0  ;;  %v168_v4 = vmax.f32 %v30_v1, 0.0  ;;  %v28_v5 = vld [vmem:[%s5167_s0 + $0x68] sm:$0xff]  ;;  %v165_v6 = vmax.f32 %v27_v2, 0.0  ;;  %v25_v8 = vld [vmem:[%s5167_s0 + $0x50] sm:$0xff]  ;;  %v26_v9 = vld [vmem:[%s5167_s0 + $0x58] sm:$0xff] }
   0x3   :  { %v166_v7 = vmax.f32 %v28_v5, 0.0  ;;  %v163_v12 = vmax.f32 %v25_v8, 0.0  ;;  %v164_v13 = vmax.f32 %v26_v9, 0.0  ;;  %v23_v14 = vld [vmem:[%s5167_s0 + $0x40] sm:$0xff]  ;;  %v24_v15 = vld [vmem:[%s5167_s0 + $0x48] sm:$0xff]  ;;  %v21_v19 = vld [vmem:[%s5167_s0 + $0x30] sm:$0xff] }
   0x4   :  { %v298_v10 = vpack.c.bf16 %v168_v4, %v167_v3  ;;  %v161_v17 = vmax.f32 %v23_v14, 0.0  ;;  %v162_v18 = vmax.f32 %v24_v15, 0.0  ;;  %v22_v20 = vld [vmem:[%s5167_s0 + $0x38] sm:$0xff]  ;;  %v159_v22 = vmax.f32 %v21_v19, 0.0  ;;  %v19_v24 = vld [vmem:[%s5167_s0 + $0x20] sm:$0xff]  ;;  %v20_v25 = vld [vmem:[%s5167_s0 + $0x28] sm:$0xff] }
   0x5   :  { %v297_v11 = vpack.c.bf16 %v166_v7, %v165_v6  ;;  %v296_v16 = vpack.c.bf16 %v164_v13, %v163_v12  ;;  %v160_v23 = vmax.f32 %v22_v20, 0.0  ;;  %v157_v27 = vmax.f32 %v19_v24, 0.0  ;;  %v17_v29 = vld [vmem:[%s5167_s0 + $0x10] sm:$0xff]  ;;  %v18_v30 = vld [vmem:[%s5167_s0 + $0x18] sm:$0xff]  ;;  %v15_v34 = vld [vmem:[%s5167_s0] sm:$0xff] }
   0x6   :  { %3099 = vmatpush.bf16.msra.mxu1 %v298_v10  ;;  %3100 = vmatpush.bf16.msra.mxu2 %v298_v10  ;;  %v295_v21 = vpack.c.bf16 %v162_v18, %v161_v17  ;;  %v158_v28 = vmax.f32 %v20_v25, 0.0  ;;  %v155_v32 = vmax.f32 %v17_v29, 0.0  ;;  %v156_v33 = vmax.f32 %v18_v30, 0.0  ;;  %v16_v35 = vld [vmem:[%s5167_s0 + $0x8] sm:$0xff]  ;;  %v61_v36 = vld [vmem:[%s5167_s0 + $0x170] sm:$0xff]  ;;  %v62_v39 = vld [vmem:[%s5167_s0 + $0x178] sm:$0xff] }
   0x7   :  { %3101 = vmatpush.bf16.msra.mxu3 %v298_v10  ;;  %1057 = vmatpush.bf16.msra.mxu0 %v298_v10  ;;  %v294_v26 = vpack.c.bf16 %v160_v23, %v159_v22  ;;  %v153_v37 = vmax.f32 %v15_v34, 0.0  ;;  %v154_v38 = vmax.f32 %v16_v35, 0.0  ;;  %v77_v40 = vld [vmem:[%s5167_s0 + $0x1f0] sm:$0xff]  ;;  %v78_v41 = vld [vmem:[%s5167_s0 + $0x1f8] sm:$0xff]  ;;  %v59_v47 = vld [vmem:[%s5167_s0 + $0x160] sm:$0xff]  ;;  %v199_v52 = vmax.f32 %v61_v36, 0.0 }
   0x8   :  { %v293_v31 = vpack.c.bf16 %v158_v28, %v157_v27  ;;  %v292_v42 = vpack.c.bf16 %v156_v33, %v155_v32  ;;  %v3288_v43 = vld [vmem:[%s5168_s1 + $0xd8] sm:$0xf]  ;;  %v3293_v44 = vld [vmem:[%s5168_s1 + $0xf8] sm:$0xf0]  ;;  %v45_v45 = vld [vmem:[%s5167_s0 + $0xf0] sm:$0xff]  ;;  %v200_v53 = vmax.f32 %v62_v39, 0.0 }
   0x9   :  { %v46_v46 = vld [vmem:[%s5167_s0 + $0xf8] sm:$0xff]  ;;  %v60_v48 = vld [vmem:[%s5167_s0 + $0x168] sm:$0xff]  ;;  %v3310_v49 = vld [vmem:[%s5168_s1 + $0x1b0] sm:$0xf]  ;;  %v215_v54 = vmax.f32 %v77_v40, 0.0  ;;  %v216_v55 = vmax.f32 %v78_v41, 0.0  ;;  %v291_v58 = vpack.c.bf16 %v154_v38, %v153_v37  ;;  %v2658_v4 = vor.u32 %v3293_v44, %v3288_v43 }
   0xa   :  { %3102 = vmatpush.bf16.msra.mxu1 %v297_v11  ;;  %3103 = vmatpush.bf16.msra.mxu2 %v297_v11  ;;  %v3315_v50 = vld [vmem:[%s5168_s1 + $0x1d0] sm:$0xf0]  ;;  %v3320_v51 = vld [vmem:[%s5168_s1 + $0x288] sm:$0xf]  ;;  %v94_v57 = vld [vmem:[%s5167_s0 + $0x278] sm:$0xff]  ;;  %v183_v62 = vmax.f32 %v45_v45, 0.0  ;;  %v314_v9 = vpack.c.bf16 %v200_v53, %v199_v52 }
   0xb   :  { %3104 = vmatpush.bf16.msra.mxu3 %v297_v11  ;;  %1058 = vmatpush.bf16.msra.mxu0 %v297_v11  ;;  %v93_v56 = vld [vmem:[%s5167_s0 + $0x270] sm:$0xff]  ;;  %v3076_v59 = vld [vmem:[%s5168_s1 + $0x2a8] sm:$0xf0]  ;;  %v75_v60 = vld [vmem:[%s5167_s0 + $0x1e0] sm:$0xff]  ;;  %v184_v63 = vmax.f32 %v46_v46, 0.0  ;;  %v197_v0 = vmax.f32 %v59_v47, 0.0  ;;  %v322_v10 = vpack.c.bf16 %v216_v55, %v215_v54 }
   0xc   :  { %v76_v61 = vld [vmem:[%s5167_s0 + $0x1e8] sm:$0xff]  ;;  %v198_v1 = vmax.f32 %v60_v48, 0.0  ;;  %v43_v2 = vld [vmem:[%s5167_s0 + $0xe0] sm:$0xff]  ;;  %v231_v7 = vmax.f32 %v93_v56, 0.0  ;;  %v232_v8 = vmax.f32 %v94_v57, 0.0  ;;  %v213_v11 = vmax.f32 %v75_v60, 0.0 }
   0xd   :  { %v44_v3 = vld [vmem:[%s5167_s0 + $0xe8] sm:$0xff]  ;;  %v2549_v5 = vld [vmem:[%s5168_s1] sm:$0xf]  ;;  %v2995_v6 = vld [vmem:[%s5168_s1 + $0x20] sm:$0xf0]  ;;  %v214_v12 = vmax.f32 %v76_v61, 0.0  ;;  %v2874_v17 = vor.u32 %v3076_v59, %v3320_v51  ;;  %v306_v24 = vpack.c.bf16 %v184_v63, %v183_v62 }
   0xe   :  { %3105 = vmatpush.bf16.msra.mxu1 %v296_v16  ;;  %3106 = vmatpush.bf16.msra.mxu2 %v296_v16  ;;  %v57_v13 = vld [vmem:[%s5167_s0 + $0x150] sm:$0xff]  ;;  %v91_v14 = vld [vmem:[%s5167_s0 + $0x260] sm:$0xff]  ;;  %v92_v15 = vld [vmem:[%s5167_s0 + $0x268] sm:$0xff]  ;;  %v181_v18 = vmax.f32 %v43_v2, 0.0  ;;  %v182_v19 = vmax.f32 %v44_v3, 0.0  ;;  %v2550_v23 = vor.u32 %v2995_v6, %v2549_v5  ;;  %v313_v25 = vpack.c.bf16 %v198_v1, %v197_v0 }
   0xf   :  { %3107 = vmatpush.bf16.msra.mxu3 %v296_v16  ;;  %1059 = vmatpush.bf16.msra.mxu0 %v296_v16  ;;  %v2766_v16 = vor.u32 %v3315_v50, %v3310_v49  ;;  %v58_v20 = vld [vmem:[%s5167_s0 + $0x158] sm:$0xff]  ;;  %v330_v28 = vpack.c.bf16 %v232_v8, %v231_v7  ;;  %v195_v29 = vmax.f32 %v57_v13, 0.0  ;;  %v229_v30 = vmax.f32 %v91_v14, 0.0  ;;  %v55_v32 = vld [vmem:[%s5167_s0 + $0x140] sm:$0xff]  ;;  %v56_v33 = vld [vmem:[%s5167_s0 + $0x148] sm:$0xff] }
  0x10   :  { %v74_v22 = vld [vmem:[%s5167_s0 + $0x1d8] sm:$0xff]  ;;  %v71_v34 = vld [vmem:[%s5167_s0 + $0x1c0] sm:$0xff]  ;;  %v321_v35 = vpack.c.bf16 %v214_v12, %v213_v11  ;;  %v196_v36 = vmax.f32 %v58_v20, 0.0  ;;  %v72_v39 = vld [vmem:[%s5167_s0 + $0x1c8] sm:$0xff]  ;;  %v193_v45 = vmax.f32 %v55_v32, 0.0  ;;  %v194_v46 = vmax.f32 %v56_v33, 0.0 }
  0x11   :  { %v42_v27 = vld [vmem:[%s5167_s0 + $0xd8] sm:$0xff]  ;;  %v212_v38 = vmax.f32 %v74_v22, 0.0  ;;  %v89_v40 = vld [vmem:[%s5167_s0 + $0x250] sm:$0xff]  ;;  %v209_v47 = vmax.f32 %v71_v34, 0.0  ;;  %v210_v49 = vmax.f32 %v72_v39, 0.0  ;;  %v39_v50 = vld [vmem:[%s5167_s0 + $0xc0] sm:$0xff] }
  0x12   :  { %3108 = vmatpush.bf16.msra.mxu1 %v295_v21  ;;  %3109 = vmatpush.bf16.msra.mxu2 %v295_v21  ;;  %v90_v41 = vld [vmem:[%s5167_s0 + $0x258] sm:$0xff]  ;;  %v180_v44 = vmax.f32 %v42_v27, 0.0  ;;  %v40_v51 = vld [vmem:[%s5167_s0 + $0xc8] sm:$0xff]  ;;  %v227_v52 = vmax.f32 %v89_v40, 0.0  ;;  %v312_v54 = vpack.c.bf16 %v196_v36, %v195_v29  ;;  %v53_v56 = vld [vmem:[%s5167_s0 + $0x130] sm:$0xff]  ;;  %v311_v63 = vpack.c.bf16 %v194_v46, %v193_v45 }
  0x13   :  { %3110 = vmatpush.bf16.msra.mxu3 %v295_v21  ;;  %1060 = vmatpush.bf16.msra.mxu0 %v295_v21  ;;  %v73_v21 = vld [vmem:[%s5167_s0 + $0x1d0] sm:$0xff]  ;;  %v228_v53 = vmax.f32 %v90_v41, 0.0  ;;  %v87_v57 = vld [vmem:[%s5167_s0 + $0x240] sm:$0xff]  ;;  %v54_v59 = vld [vmem:[%s5167_s0 + $0x138] sm:$0xff]  ;;  %v177_v0 = vmax.f32 %v39_v50, 0.0  ;;  %v178_v1 = vmax.f32 %v40_v51, 0.0  ;;  %v319_v3 = vpack.c.bf16 %v210_v49, %v209_v47 }
  0x14   :  { %v211_v37 = vmax.f32 %v73_v21, 0.0  ;;  %v69_v60 = vld [vmem:[%s5167_s0 + $0x1b0] sm:$0xff]  ;;  %v70_v61 = vld [vmem:[%s5167_s0 + $0x1b8] sm:$0xff]  ;;  %v225_v6 = vmax.f32 %v87_v57, 0.0  ;;  %v51_v8 = vld [vmem:[%s5167_s0 + $0x120] sm:$0xff] }
  0x15   :  { %v37_v2 = vld [vmem:[%s5167_s0 + $0xb0] sm:$0xff]  ;;  %v38_v5 = vld [vmem:[%s5167_s0 + $0xb8] sm:$0xff]  ;;  %v3440_v11 = vld [vmem:[%s5168_s1 + $0x140] sm:$0xf0] }
  0x16   :  { %3111 = vmatpush.bf16.msra.mxu1 %v294_v26  ;;  %3112 = vmatpush.bf16.msra.mxu2 %v294_v26  ;;  %v320_v55 = vpack.c.bf16 %v212_v38, %v211_v37  ;;  %v3445_v12 = vld [vmem:[%s5168_s1 + $0x1f8] sm:$0xf]  ;;  %v3450_v13 = vld [vmem:[%s5168_s1 + $0x218] sm:$0xf0]  ;;  %v3455_v14 = vld [vmem:[%s5168_s1 + $0x2d0] sm:$0xf] }
  0x17   :  { %3113 = vmatpush.bf16.msra.mxu3 %v294_v26  ;;  %1061 = vmatpush.bf16.msra.mxu0 %v294_v26  ;;  %v41_v26 = vld [vmem:[%s5167_s0 + $0xd0] sm:$0xff]  ;;  %v86_v21 = vld [vmem:[%s5167_s0 + $0x238] sm:$0xff]  ;;  %v2585_v22 = vld [vmem:[%s5168_s1 + $0x48] sm:$0xf]  ;;  %v176_v27 = vmax.f32 %v38_v5, 0.0 }
  0x18   :  { %v179_v43 = vmax.f32 %v41_v26, 0.0  ;;  %v85_v20 = vld [vmem:[%s5167_s0 + $0x230] sm:$0xff]  ;;  %v175_v26 = vmax.f32 %v37_v2, 0.0  ;;  %v35_v32 = vld [vmem:[%s5167_s0 + $0xa0] sm:$0xff]  ;;  %v36_v33 = vld [vmem:[%s5167_s0 + $0xa8] sm:$0xff] }
  0x19   :  { %v223_v34 = vmax.f32 %v85_v20, 0.0  ;;  %v49_v40 = vld [vmem:[%s5167_s0 + $0x110] sm:$0xff]  ;;  %v83_v41 = vld [vmem:[%s5167_s0 + $0x220] sm:$0xff]  ;;  %v50_v47 = vld [vmem:[%s5167_s0 + $0x118] sm:$0xff] }
  0x1a   :  { %3114 = vmatpush.bf16.msra.mxu1 %v293_v31  ;;  %3115 = vmatpush.bf16.msra.mxu2 %v293_v31  ;;  %v304_v62 = vpack.c.bf16 %v180_v44, %v179_v43  ;;  %v2802_v44 = vor.u32 %v3450_v13, %v3445_v12  ;;  %v66_v49 = vld [vmem:[%s5167_s0 + $0x198] sm:$0xff]  ;;  %v302_v50 = vpack.c.bf16 %v176_v27, %v175_v26  ;;  %v64_v5 = vld [vmem:[%s5167_s0 + $0x188] sm:$0xff]  ;;  %v125_v12 = vld [vmem:[%s5167_s0 + $0x370] sm:$0xff] }
  0x1b   :  { %3116 = vmatpush.bf16.msra.mxu3 %v293_v31  ;;  %1062 = vmatpush.bf16.msra.mxu0 %v293_v31  ;;  %v230_v31 = vmax.f32 %v92_v15, 0.0  ;;  %v3460_v15 = vld [vmem:[%s5168_s1 + $0x2f0] sm:$0xf0]  ;;  %v126_v13 = vld [vmem:[%s5167_s0 + $0x378] sm:$0xff]  ;;  %v32_v20 = vld [vmem:[%s5167_s0 + $0x88] sm:$0xff]  ;;  %v263_v26 = vmax.f32 %v125_v12, 0.0 }
  0x1c   :  { %v2910_v45 = vor.u32 %v3460_v15, %v3455_v14  ;;  %v141_v14 = vld [vmem:[%s5167_s0 + $0x3f0] sm:$0xff] }
  0x1d   :  { %v329_v48 = vpack.c.bf16 %v230_v31, %v229_v30  ;;  %v303_v30 = vpack.c.bf16 %v178_v1, %v177_v0  ;;  %v188_v1 = vmax.f32 %v50_v47, 0.0  ;;  %v109_v27 = vld [vmem:[%s5167_s0 + $0x2f0] sm:$0xff]  ;;  %v3040_v47 = vld [vmem:[%s5168_s1 + $0x188] sm:$0xf0] }
  0x1e   :  { %3117 = vmatpush.bf16.msra.mxu1 %v292_v42  ;;  %3118 = vmatpush.bf16.msra.mxu2 %v292_v42 }
  0x1f   :  { %3119 = vmatpush.bf16.msra.mxu3 %v292_v42  ;;  %1063 = vmatpush.bf16.msra.mxu0 %v292_v42  ;;  %v305_v42 = vpack.c.bf16 %v182_v19, %v181_v18  ;;  %v207_v18 = vmax.f32 %v69_v60, 0.0  ;;  %v208_v19 = vmax.f32 %v70_v61, 0.0  ;;  %v48_v61 = vld [vmem:[%s5167_s0 + $0x108] sm:$0xff] }
  0x21   :  { %v318_v37 = vpack.c.bf16 %v208_v19, %v207_v18  ;;  %v202_v18 = vmax.f32 %v64_v5, 0.0  ;;  %v31_v19 = vld [vmem:[%s5167_s0 + $0x80] sm:$0xff]  ;;  %v140_v5 = vld [vmem:[%s5167_s0 + $0x3e8] sm:$0xff] }
  0x22   :  { %3120 = vmatpush.bf16.msra.mxu1 %v291_v58  ;;  %3121 = vmatpush.bf16.msra.mxu2 %v291_v58 }
  0x23   :  { %3122 = vmatpush.bf16.msra.mxu3 %v291_v58  ;;  %1064 = vmatpush.bf16.msra.mxu0 %v291_v58  ;;  %v88_v58 = vld [vmem:[%s5167_s0 + $0x248] sm:$0xff] }
  0x24   :  { %v226_v7 = vmax.f32 %v88_v58, 0.0  ;;  %v187_v58 = vmax.f32 %v49_v40, 0.0 }
  0x25   :  { %1080 = vmatmul.bf16.vlgmr.msra.gmra.mxu1 %v2658_v4  ;;  %1095 = vmatmul.bf16.vlgmr.msra.gmra.mxu2 %v2766_v16  ;;  %v328_v4 = vpack.c.bf16 %v228_v53, %v227_v52  ;;  %v191_v16 = vmax.f32 %v53_v56, 0.0  ;;  %v173_v52 = vmax.f32 %v35_v32, 0.0  ;;  %v174_v53 = vmax.f32 %v36_v33, 0.0  ;;  %v47_v56 = vld [vmem:[%s5167_s0 + $0x100] sm:$0xff]  ;;  %v152_v33 = vld [vmem:[%s5167_s0 + $0x448] sm:$0xff] }
  0x26   :  { %1195 = vmatpush.bf16.msrb.mxu2 %v314_v9  ;;  %1110 = vmatmul.bf16.vlgmr.msra.gmra.mxu3 %v2874_v17  ;;  %v52_v9 = vld [vmem:[%s5167_s0 + $0x128] sm:$0xff]  ;;  %v192_v17 = vmax.f32 %v54_v59, 0.0  ;;  %v327_v31 = vpack.c.bf16 %v226_v7, %v225_v6  ;;  %v221_v59 = vmax.f32 %v83_v41, 0.0  ;;  %v151_v32 = vld [vmem:[%s5167_s0 + $0x440] sm:$0xff] }
  0x27   :  { %1264 = vmatpush.bf16.msrb.mxu3 %v322_v10  ;;  %1065 = vmatmul.bf16.vlgmr.msra.gmra.mxu0 %v2550_v23  ;;  %v3435_v10 = vld [vmem:[%s5168_s1 + $0x120] sm:$0xf]  ;;  %v190_v29 = vmax.f32 %v52_v9, 0.0  ;;  %v186_v9 = vmax.f32 %v48_v61, 0.0  ;;  %v301_v15 = vpack.c.bf16 %v174_v53, %v173_v52  ;;  %v2945_v52 = vld [vmem:[%s5168_s1 + $0x318] sm:$0xf] }
  0x28   :  { %1126 = vmatpush.bf16.msrb.mxu1 %v306_v24  ;;  %1333 = vmatpush.bf16.msrb.mxu0 %v330_v28  ;;  %v67_v23 = vld [vmem:[%s5167_s0 + $0x1a0] sm:$0xff]  ;;  %v68_v24 = vld [vmem:[%s5167_s0 + $0x1a8] sm:$0xff]  ;;  %v189_v28 = vmax.f32 %v51_v8, 0.0  ;;  %v310_v36 = vpack.c.bf16 %v192_v17, %v191_v16  ;;  %v2694_v43 = vor.u32 %v3440_v11, %v3435_v10  ;;  %v185_v8 = vmax.f32 %v47_v56, 0.0  ;;  %v3094_v53 = vld [vmem:[%s5168_s1 + $0x338] sm:$0xf0] }
  0x29   :  { %v205_v38 = vmax.f32 %v67_v23, 0.0  ;;  %v206_v39 = vmax.f32 %v68_v24, 0.0  ;;  %v79_v24 = vld [vmem:[%s5167_s0 + $0x200] sm:$0xff] }
  0x2a   :  { %1196 = vmatpush.bf16.msrb.mxu2 %v313_v25  ;;  %v3004_v25 = vld [vmem:[%s5168_s1 + $0x68] sm:$0xf0]  ;;  %v309_v51 = vpack.c.bf16 %v190_v29, %v189_v28  ;;  %v264_v28 = vmax.f32 %v126_v13, 0.0  ;;  %v279_v29 = vmax.f32 %v141_v14, 0.0  ;;  %v217_v40 = vmax.f32 %v79_v24, 0.0 }
  0x2b   :  { %1265 = vmatpush.bf16.msrb.mxu3 %v321_v35  ;;  %v224_v35 = vmax.f32 %v86_v21, 0.0  ;;  %v2586_v46 = vor.u32 %v3004_v25, %v2585_v22  ;;  %v317_v0 = vpack.c.bf16 %v206_v39, %v205_v38  ;;  %v142_v21 = vld [vmem:[%s5167_s0 + $0x3f8] sm:$0xff]  ;;  %v308_v22 = vpack.c.bf16 %v188_v1, %v187_v58  ;;  %v80_v25 = vld [vmem:[%s5167_s0 + $0x208] sm:$0xff] }
  0x2c   :  { %1127 = vmatpush.bf16.msrb.mxu1 %v305_v42  ;;  %1334 = vmatpush.bf16.msrb.mxu0 %v329_v48  ;;  %v84_v42 = vld [vmem:[%s5167_s0 + $0x228] sm:$0xff]  ;;  %v65_v48 = vld [vmem:[%s5167_s0 + $0x190] sm:$0xff]  ;;  %v170_v39 = vmax.f32 %v32_v20, 0.0  ;;  %v218_v41 = vmax.f32 %v80_v25, 0.0 }
  0x2d   :  { %v326_v57 = vpack.c.bf16 %v224_v35, %v223_v34  ;;  %v222_v60 = vmax.f32 %v84_v42, 0.0  ;;  %v203_v2 = vmax.f32 %v65_v48, 0.0  ;;  %v307_v35 = vpack.c.bf16 %v186_v9, %v185_v8  ;;  %v124_v1 = vld [vmem:[%s5167_s0 + $0x368] sm:$0xff]  ;;  %v2559_v20 = vld [vmem:[%s5168_s1 + $0x2c] sm:$0xf0] }
  0x2e   :  { %1197 = vmatpush.bf16.msrb.mxu2 %v312_v54  ;;  %v33_v54 = vld [vmem:[%s5167_s0 + $0x90] sm:$0xff]  ;;  %v247_v42 = vmax.f32 %v109_v27, 0.0  ;;  %v346_v48 = vpack.c.bf16 %v264_v28, %v263_v26  ;;  %v108_v8 = vld [vmem:[%s5167_s0 + $0x2e8] sm:$0xff]  ;;  %v278_v9 = vmax.f32 %v140_v5, 0.0 }
  0x2f   :  { %1266 = vmatpush.bf16.msrb.mxu3 %v320_v55  ;;  %v34_v55 = vld [vmem:[%s5167_s0 + $0x98] sm:$0xff]  ;;  %v171_v6 = vmax.f32 %v33_v54, 0.0  ;;  %v325_v16 = vpack.c.bf16 %v222_v60, %v221_v59  ;;  %v2621_v54 = vld [vmem:[%s5168_s1 + $0x90] sm:$0xf]  ;;  %v3000_v27 = vld [vmem:[%s5168_s1 + $0x4c] sm:$0xf] }
  0x30   :  { %1128 = vmatpush.bf16.msrb.mxu1 %v304_v62  ;;  %1335 = vmatpush.bf16.msrb.mxu0 %v328_v4  ;;  %v81_v62 = vld [vmem:[%s5167_s0 + $0x210] sm:$0xff]  ;;  %v63_v4 = vld [vmem:[%s5167_s0 + $0x180] sm:$0xff]  ;;  %v172_v7 = vmax.f32 %v34_v55, 0.0 }
  0x31   :  { %v219_v10 = vmax.f32 %v81_v62, 0.0  ;;  %v201_v17 = vmax.f32 %v63_v4, 0.0  ;;  %v3013_v55 = vld [vmem:[%s5168_s1 + $0xb0] sm:$0xf0]  ;;  %v2946_v62 = vor.u32 %v3094_v53, %v2945_v52  ;;  %v262_v4 = vmax.f32 %v124_v1, 0.0  ;;  %v106_v52 = vld [vmem:[%s5167_s0 + $0x2d8] sm:$0xff] }
  0x32   :  { %1198 = vmatpush.bf16.msrb.mxu2 %v311_v63  ;;  %v82_v63 = vld [vmem:[%s5167_s0 + $0x218] sm:$0xff]  ;;  %v300_v34 = vpack.c.bf16 %v172_v7, %v171_v6  ;;  %v107_v7 = vld [vmem:[%s5167_s0 + $0x2e0] sm:$0xff]  ;;  %v2587_v28 = vld [vmem:[%s5168_s1 + $0x6c] sm:$0xf0] }
  0x33   :  { %1267 = vmatpush.bf16.msrb.mxu3 %v319_v3  ;;  %v204_v3 = vmax.f32 %v66_v49, 0.0  ;;  %v220_v11 = vmax.f32 %v82_v63, 0.0  ;;  %v315_v38 = vpack.c.bf16 %v202_v18, %v201_v17  ;;  %v2622_v63 = vor.u32 %v3013_v55, %v2621_v54  ;;  %v2557_v17 = vld [vmem:[%s5168_s1 + $0x8] sm:$0xf]  ;;  %v2996_v18 = vld [vmem:[%s5168_s1 + $0x28] sm:$0xf0] }
  0x34   :  { %1129 = vmatpush.bf16.msrb.mxu1 %v303_v30  ;;  %1336 = vmatpush.bf16.msrb.mxu0 %v327_v31  ;;  %v280_v30 = vmax.f32 %v142_v21, 0.0  ;;  %v110_v31 = vld [vmem:[%s5167_s0 + $0x2f8] sm:$0xff]  ;;  %v2565_v21 = vld [vmem:[%s5168_s1 + $0x10] sm:$0xf]  ;;  %v2558_v24 = vor.u32 %v2996_v18, %v2557_v17  ;;  %v244_v55 = vmax.f32 %v106_v52, 0.0 }
  0x35   :  { %1085 = vmatmul.bf16.gmra.mxu1 %v2694_v43  ;;  %1100 = vmatmul.bf16.gmra.mxu2 %v2802_v44  ;;  %v316_v23 = vpack.c.bf16 %v204_v3, %v203_v2  ;;  %v248_v43 = vmax.f32 %v110_v31, 0.0  ;;  %v289_v44 = vmax.f32 %v151_v32, 0.0  ;;  %v139_v2 = vld [vmem:[%s5167_s0 + $0x3e0] sm:$0xff]  ;;  %v3001_v31 = vld [vmem:[%s5168_s1 + $0x54] sm:$0xf]  ;;  %v118_v52 = vld [vmem:[%s5167_s0 + $0x338] sm:$0xff] }
  0x36   :  { %1199 = vmatpush.bf16.msrb.mxu2 %v310_v36  ;;  %1115 = vmatmul.bf16.gmra.mxu3 %v2910_v45  ;;  %v324_v36 = vpack.c.bf16 %v220_v11, %v219_v10  ;;  %v290_v45 = vmax.f32 %v152_v33, 0.0  ;;  %v354_v49 = vpack.c.bf16 %v280_v30, %v279_v29  ;;  %v277_v6 = vmax.f32 %v139_v2, 0.0  ;;  %v2593_v29 = vld [vmem:[%s5168_s1 + $0x50] sm:$0xf]  ;;  %v3005_v30 = vld [vmem:[%s5168_s1 + $0x70] sm:$0xf0] }
  0x37   :  { %1268 = vmatpush.bf16.msrb.mxu3 %v318_v37  ;;  %1070 = vmatmul.bf16.gmra.mxu0 %v2586_v46  ;;  %v169_v37 = vmax.f32 %v31_v19, 0.0  ;;  %v2729_v46 = vld [vmem:[%s5168_s1 + $0x168] sm:$0xf]  ;;  %v338_v58 = vpack.c.bf16 %v248_v43, %v247_v42  ;;  %v245_v10 = vmax.f32 %v107_v7, 0.0  ;;  %v246_v11 = vmax.f32 %v108_v8, 0.0  ;;  %v119_v7 = vld [vmem:[%s5167_s0 + $0x340] sm:$0xff] }
  0x38   :  { %1130 = vmatpush.bf16.msrb.mxu1 %v302_v50  ;;  %1337 = vmatpush.bf16.msrb.mxu0 %v326_v57  ;;  %v2837_v50 = vld [vmem:[%s5168_s1 + $0x240] sm:$0xf]  ;;  %v323_v57 = vpack.c.bf16 %v218_v41, %v217_v40  ;;  %v359_v59 = vpack.c.bf16 %v290_v45, %v289_v44  ;;  %v2730_v60 = vor.u32 %v3040_v47, %v2729_v46  ;;  %v2992_v19 = vld [vmem:[%s5168_s1 + $0xc] sm:$0xf]  ;;  %v2595_v32 = vld [vmem:[%s5168_s1 + $0x74] sm:$0xf0] }
  0x39   :  { %v299_v56 = vpack.c.bf16 %v170_v39, %v169_v37  ;;  %v353_v13 = vpack.c.bf16 %v278_v9, %v277_v6  ;;  %v337_v14 = vpack.c.bf16 %v246_v11, %v245_v10  ;;  %v2562_v25 = vor.u32 %v2992_v19, %v2559_v20  ;;  %v2601_v33 = vld [vmem:[%s5168_s1 + $0x58] sm:$0xf]  ;;  %v121_v39 = vld [vmem:[%s5167_s0 + $0x350] sm:$0xff]  ;;  %v2637_v1 = vld [vmem:[%s5168_s1 + $0xa0] sm:$0xf] }
  0x3a   :  { %1200 = vmatpush.bf16.msrb.mxu2 %v309_v51  ;;  %v3067_v51 = vld [vmem:[%s5168_s1 + $0x260] sm:$0xf0]  ;;  %v2598_v37 = vor.u32 %v3001_v31, %v2595_v32  ;;  %v122_v40 = vld [vmem:[%s5167_s0 + $0x358] sm:$0xff]  ;;  %v149_v41 = vld [vmem:[%s5167_s0 + $0x430] sm:$0xff]  ;;  %v259_v42 = vmax.f32 %v121_v39, 0.0  ;;  %v257_v10 = vmax.f32 %v119_v7, 0.0 }
  0x3b   :  { %1269 = vmatpush.bf16.msrb.mxu3 %v317_v0  ;;  %v2838_v61 = vor.u32 %v3067_v51, %v2837_v50  ;;  %v123_v0 = vld [vmem:[%s5167_s0 + $0x360] sm:$0xff]  ;;  %v260_v43 = vmax.f32 %v122_v40, 0.0  ;;  %v150_v44 = vld [vmem:[%s5167_s0 + $0x438] sm:$0xff]  ;;  %v287_v45 = vmax.f32 %v149_v41, 0.0  ;;  %v137_v46 = vld [vmem:[%s5167_s0 + $0x3d0] sm:$0xff] }
  0x3c   :  { %1131 = vmatpush.bf16.msrb.mxu1 %v301_v15  ;;  %1338 = vmatpush.bf16.msrb.mxu0 %v325_v16  ;;  %v261_v3 = vmax.f32 %v123_v0, 0.0  ;;  %v2991_v15 = vld [vmem:[%s5168_s1 + $0x4] sm:$0xf]  ;;  %v2551_v16 = vld [vmem:[%s5168_s1 + $0x24] sm:$0xf0]  ;;  %v138_v47 = vld [vmem:[%s5167_s0 + $0x3d8] sm:$0xff] }
  0x3d   :  { %v276_v50 = vmax.f32 %v138_v47, 0.0  ;;  %v105_v51 = vld [vmem:[%s5167_s0 + $0x2d0] sm:$0xff]  ;;  %v344_v53 = vpack.c.bf16 %v260_v43, %v259_v42  ;;  %v2631_v0 = vld [vmem:[%s5168_s1 + $0xbc] sm:$0xf0]  ;;  %v3015_v2 = vld [vmem:[%s5168_s1 + $0xc0] sm:$0xf0] }
  0x3e   :  { %1201 = vmatpush.bf16.msrb.mxu2 %v308_v22  ;;  %v345_v12 = vpack.c.bf16 %v262_v4, %v261_v3  ;;  %v2997_v22 = vld [vmem:[%s5168_s1 + $0x30] sm:$0xf0]  ;;  %v243_v54 = vmax.f32 %v105_v51, 0.0  ;;  %v2638_v6 = vor.u32 %v3015_v2, %v2637_v1  ;;  %v120_v8 = vld [vmem:[%s5167_s0 + $0x348] sm:$0xff]  ;;  %v135_v9 = vld [vmem:[%s5167_s0 + $0x3c0] sm:$0xff] }
  0x3f   :  { %1270 = vmatpush.bf16.msrb.mxu3 %v316_v23  ;;  %v2554_v23 = vor.u32 %v2991_v15, %v2551_v16  ;;  %v2566_v26 = vor.u32 %v2997_v22, %v2565_v21  ;;  %v258_v11 = vmax.f32 %v120_v8, 0.0  ;;  %v104_v15 = vld [vmem:[%s5167_s0 + $0x2c8] sm:$0xff]  ;;  %v3018_v22 = vld [vmem:[%s5168_s1 + $0xdc] sm:$0xf]  ;;  %v117_v51 = vld [vmem:[%s5167_s0 + $0x330] sm:$0xff] }
  0x40   :  { %1132 = vmatpush.bf16.msrb.mxu1 %v300_v34  ;;  %1339 = vmatpush.bf16.msrb.mxu0 %v324_v36  ;;  %v3006_v34 = vld [vmem:[%s5168_s1 + $0x78] sm:$0xf0]  ;;  %v2594_v36 = vor.u32 %v3005_v30, %v2593_v29  ;;  %v242_v18 = vmax.f32 %v104_v15, 0.0  ;;  %v3024_v29 = vld [vmem:[%s5168_s1 + $0x108] sm:$0xf0] }
  0x41   :  { %v343_v19 = vpack.c.bf16 %v258_v11, %v257_v10  ;;  %v2695_v39 = vld [vmem:[%s5168_s1 + $0x144] sm:$0xf0]  ;;  %v3032_v41 = vld [vmem:[%s5168_s1 + $0x148] sm:$0xf0]  ;;  %v2739_v7 = vld [vmem:[%s5168_s1 + $0x194] sm:$0xf0] }
  0x42   :  { %1202 = vmatpush.bf16.msrb.mxu2 %v307_v35  ;;  %v2590_v35 = vor.u32 %v3000_v27, %v2587_v28  ;;  %v2667_v27 = vld [vmem:[%s5168_s1 + $0x104] sm:$0xf0]  ;;  %v3028_v42 = vld [vmem:[%s5168_s1 + $0x12c] sm:$0xf]  ;;  %v2745_v8 = vld [vmem:[%s5168_s1 + $0x178] sm:$0xf] }
  0x43   :  { %1271 = vmatpush.bf16.msrb.mxu3 %v315_v38  ;;  %v2602_v38 = vor.u32 %v3006_v34, %v2601_v33  ;;  %v2673_v28 = vld [vmem:[%s5168_s1 + $0xe8] sm:$0xf]  ;;  %v147_v34 = vld [vmem:[%s5167_s0 + $0x420] sm:$0xff]  ;;  %v3036_v2 = vld [vmem:[%s5168_s1 + $0x16c] sm:$0xf] }
  0x44   :  { %1133 = vmatpush.bf16.msrb.mxu1 %v299_v56  ;;  %1340 = vmatpush.bf16.msrb.mxu0 %v323_v57  ;;  %v2674_v33 = vor.u32 %v3024_v29, %v2673_v28  ;;  %v2701_v40 = vld [vmem:[%s5168_s1 + $0x128] sm:$0xf]  ;;  %v2767_v28 = vld [vmem:[%s5168_s1 + $0x1d4] sm:$0xf0] }
  0x45   :  { %1090 = vmatmul.bf16.gmra.mxu1 %v2730_v60  ;;  %1105 = vmatmul.bf16.gmra.mxu2 %v2838_v61  ;;  %v2623_v60 = vld [vmem:[%s5168_s1 + $0xb4] sm:$0xf0] }
  0x46   :  { %1471 = vmatpush.bf16.msra.mxu2 %v346_v48  ;;  %1120 = vmatmul.bf16.gmra.mxu3 %v2946_v62  ;;  %v288_v48 = vmax.f32 %v150_v44, 0.0  ;;  %v2629_v61 = vld [vmem:[%s5168_s1 + $0x98] sm:$0xf]  ;;  %v3014_v62 = vld [vmem:[%s5168_s1 + $0xb8] sm:$0xf0] }
  0x47   :  { %1540 = vmatpush.bf16.msra.mxu3 %v354_v49  ;;  %1075 = vmatmul.bf16.gmra.mxu0 %v2622_v63  ;;  %v275_v49 = vmax.f32 %v137_v46, 0.0  ;;  %v3010_v63 = vld [vmem:[%s5168_s1 + $0x9c] sm:$0xf]  ;;  %v2630_v4 = vor.u32 %v3014_v62, %v2629_v61  ;;  %v2703_v44 = vld [vmem:[%s5168_s1 + $0x14c] sm:$0xf0] }
  0x48   :  { %1402 = vmatpush.bf16.msra.mxu1 %v338_v58  ;;  %1612 = vmatpush.bf16.msra.mxu0 %v359_v59  ;;  %v358_v56 = vpack.c.bf16 %v288_v48, %v287_v45  ;;  %v336_v58 = vpack.c.bf16 %v244_v55, %v243_v54  ;;  %v3009_v59 = vld [vmem:[%s5168_s1 + $0x94] sm:$0xf]  ;;  %v2634_v5 = vor.u32 %v3010_v63, %v2631_v0  ;;  %v2709_v45 = vld [vmem:[%s5168_s1 + $0x130] sm:$0xf]  ;;  %v255_v54 = vmax.f32 %v117_v51, 0.0  ;;  %v102_v61 = vld [vmem:[%s5167_s0 + $0x2b8] sm:$0xff] }
  0x49   :  { %v352_v57 = vpack.c.bf16 %v276_v50, %v275_v49  ;;  %v2626_v3 = vor.u32 %v3009_v59, %v2623_v60  ;;  %v3033_v46 = vld [vmem:[%s5168_s1 + $0x150] sm:$0xf0]  ;;  %v2702_v48 = vor.u32 %v3032_v41, %v2701_v40  ;;  %v2706_v49 = vor.u32 %v3028_v42, %v2703_v44  ;;  %v99_v42 = vld [vmem:[%s5167_s0 + $0x2a0] sm:$0xff]  ;;  %v146_v51 = vld [vmem:[%s5167_s0 + $0x418] sm:$0xff] }
  0x4a   :  { %1472 = vmatpush.bf16.msra.mxu2 %v345_v12  ;;  %v136_v12 = vld [vmem:[%s5167_s0 + $0x3c8] sm:$0xff]  ;;  %v2710_v50 = vor.u32 %v3033_v46, %v2709_v45  ;;  %v256_v55 = vmax.f32 %v118_v52, 0.0  ;;  %v101_v60 = vld [vmem:[%s5167_s0 + $0x2b0] sm:$0xff]  ;;  %v240_v0 = vmax.f32 %v102_v61, 0.0  ;;  %v2803_v61 = vld [vmem:[%s5168_s1 + $0x21c] sm:$0xf0] }
  0x4b   :  { %1541 = vmatpush.bf16.msra.mxu3 %v353_v13  ;;  %v273_v13 = vmax.f32 %v135_v9, 0.0  ;;  %v274_v16 = vmax.f32 %v136_v12, 0.0  ;;  %v239_v63 = vmax.f32 %v101_v60, 0.0  ;;  %v3042_v9 = vld [vmem:[%s5168_s1 + $0x198] sm:$0xf0] }
  0x4c   :  { %1403 = vmatpush.bf16.msra.mxu1 %v337_v14  ;;  %1613 = vmatpush.bf16.msra.mxu0 %v358_v56  ;;  %v103_v14 = vld [vmem:[%s5167_s0 + $0x2c0] sm:$0xff]  ;;  %v134_v56 = vld [vmem:[%s5167_s0 + $0x3b8] sm:$0xff]  ;;  %v342_v59 = vpack.c.bf16 %v256_v55, %v255_v54  ;;  %v284_v54 = vmax.f32 %v146_v51, 0.0 }
  0x4d   :  { %v241_v17 = vmax.f32 %v103_v14, 0.0  ;;  %v351_v20 = vpack.c.bf16 %v274_v16, %v273_v13  ;;  %v334_v1 = vpack.c.bf16 %v240_v0, %v239_v63  ;;  %v2746_v14 = vor.u32 %v3042_v9, %v2745_v8  ;;  %v3054_v60 = vld [vmem:[%s5168_s1 + $0x1fc] sm:$0xf]  ;;  %v3059_v63 = vld [vmem:[%s5168_s1 + $0x220] sm:$0xf0] }
  0x4e   :  { %1473 = vmatpush.bf16.msra.mxu2 %v344_v53  ;;  %v133_v53 = vld [vmem:[%s5167_s0 + $0x3b0] sm:$0xff]  ;;  %v3055_v0 = vld [vmem:[%s5168_s1 + $0x204] sm:$0xf] }
  0x4f   :  { %1542 = vmatpush.bf16.msra.mxu3 %v352_v57  ;;  %v335_v21 = vpack.c.bf16 %v242_v18, %v241_v17  ;;  %v271_v57 = vmax.f32 %v133_v53, 0.0 }
  0x50   :  { %1404 = vmatpush.bf16.msra.mxu1 %v336_v58  ;;  %v272_v58 = vmax.f32 %v134_v56, 0.0 }
  0x52   :  { %1474 = vmatpush.bf16.msra.mxu2 %v343_v19  ;;  %v350_v62 = vpack.c.bf16 %v272_v58, %v271_v57 }
  0x53   :  { %1543 = vmatpush.bf16.msra.mxu3 %v351_v20  ;;  %v115_v20 = vld [vmem:[%s5167_s0 + $0x320] sm:$0xff] }
  0x54   :  { %1405 = vmatpush.bf16.msra.mxu1 %v335_v21  ;;  %v116_v21 = vld [vmem:[%s5167_s0 + $0x328] sm:$0xff] }
  0x55   :  { %1134 = vmatmul.bf16.vlgmr.msrb.gmra.mxu1 %v2554_v23  ;;  %1203 = vmatmul.bf16.vlgmr.msrb.gmra.mxu2 %v2558_v24  ;;  %v2659_v23 = vld [vmem:[%s5168_s1 + $0xfc] sm:$0xf0] }
  0x56   :  { %1272 = vmatmul.bf16.vlgmr.msrb.gmra.mxu3 %v2562_v25  ;;  %v2665_v24 = vld [vmem:[%s5168_s1 + $0xe0] sm:$0xf]  ;;  %v3023_v25 = vld [vmem:[%s5168_s1 + $0x100] sm:$0xf0]  ;;  %v2662_v30 = vor.u32 %v3018_v22, %v2659_v23  ;;  %1475 = vmatpush.bf16.msra.mxu2 %v342_v59  ;;  %v253_v23 = vmax.f32 %v115_v20, 0.0  ;;  %v129_v20 = vld [vmem:[%s5167_s0 + $0x390] sm:$0xff] }
  0x57   :  { %1341 = vmatmul.bf16.vlgmr.msrb.gmra.mxu0 %v2566_v26  ;;  %v3019_v26 = vld [vmem:[%s5168_s1 + $0xe4] sm:$0xf]  ;;  %v2666_v31 = vor.u32 %v3023_v25, %v2665_v24  ;;  %1544 = vmatpush.bf16.msra.mxu3 %v350_v62  ;;  %v254_v24 = vmax.f32 %v116_v21, 0.0  ;;  %v132_v25 = vld [vmem:[%s5167_s0 + $0x3a8] sm:$0xff]  ;;  %v2809_v62 = vld [vmem:[%s5168_s1 + $0x200] sm:$0xf] }
  0x58   :  { %v2670_v32 = vor.u32 %v3019_v26, %v2667_v27  ;;  %1406 = vmatpush.bf16.msra.mxu1 %v334_v1  ;;  %v131_v22 = vld [vmem:[%s5167_s0 + $0x3a0] sm:$0xff]  ;;  %v3045_v27 = vld [vmem:[%s5168_s1 + $0x1b4] sm:$0xf]  ;;  %v270_v29 = vmax.f32 %v132_v25, 0.0  ;;  %v2811_v1 = vld [vmem:[%s5168_s1 + $0x224] sm:$0xf0] }
  0x59   :  { %v269_v26 = vmax.f32 %v131_v22, 0.0  ;;  %v2770_v40 = vor.u32 %v3045_v27, %v2767_v28  ;;  %v2814_v9 = vor.u32 %v3055_v0, %v2811_v1 }
  0x65   :  { %1139 = vmatmul.bf16.gmra.mxu1 %v2590_v35  ;;  %1208 = vmatmul.bf16.gmra.mxu2 %v2594_v36  ;;  %v148_v35 = vld [vmem:[%s5167_s0 + $0x428] sm:$0xff]  ;;  %v285_v36 = vmax.f32 %v147_v34, 0.0  ;;  %v2775_v34 = vld [vmem:[%s5168_s1 + $0x1dc] sm:$0xf0] }
  0x66   :  { %1277 = vmatmul.bf16.gmra.mxu3 %v2598_v37  ;;  %v286_v37 = vmax.f32 %v148_v35, 0.0  ;;  %v2781_v35 = vld [vmem:[%s5168_s1 + $0x1c0] sm:$0xf] }
  0x67   :  { %1346 = vmatmul.bf16.gmra.mxu0 %v2602_v38  ;;  %v3027_v38 = vld [vmem:[%s5168_s1 + $0x124] sm:$0xf] }
  0x68   :  { %v357_v43 = vpack.c.bf16 %v286_v37, %v285_v36  ;;  %v2698_v47 = vor.u32 %v3027_v38, %v2695_v39  ;;  %v3051_v36 = vld [vmem:[%s5168_s1 + $0x1e0] sm:$0xf0]  ;;  %v349_v37 = vpack.c.bf16 %v270_v29, %v269_v26 }
  0x69   :  { %v2782_v46 = vor.u32 %v3051_v36, %v2781_v35  ;;  %v3063_v36 = vld [vmem:[%s5168_s1 + $0x244] sm:$0xf] }
  0x6a   :  { %1614 = vmatpush.bf16.msra.mxu0 %v357_v43  ;;  %1545 = vmatpush.bf16.msra.mxu3 %v349_v37  ;;  %v100_v43 = vld [vmem:[%s5167_s0 + $0x2a8] sm:$0xff] }
  0x6b   :  { %v2839_v37 = vld [vmem:[%s5168_s1 + $0x264] sm:$0xf0] }
  0x6c   :  { %v2842_v51 = vor.u32 %v3063_v36, %v2839_v37  ;;  %v2883_v36 = vld [vmem:[%s5168_s1 + $0x2b4] sm:$0xf0] }
  0x6d   :  { %v2889_v37 = vld [vmem:[%s5168_s1 + $0x298] sm:$0xf] }
  0x75   :  { %1144 = vmatmul.bf16.gmra.mxu1 %v2626_v3  ;;  %1213 = vmatmul.bf16.gmra.mxu2 %v2630_v4  ;;  %v2731_v3 = vld [vmem:[%s5168_s1 + $0x18c] sm:$0xf0] }
  0x76   :  { %1282 = vmatmul.bf16.gmra.mxu3 %v2634_v5  ;;  %v2737_v4 = vld [vmem:[%s5168_s1 + $0x170] sm:$0xf]  ;;  %v3041_v5 = vld [vmem:[%s5168_s1 + $0x190] sm:$0xf0]  ;;  %v2734_v10 = vor.u32 %v3036_v2, %v2731_v3  ;;  %v2817_v2 = vld [vmem:[%s5168_s1 + $0x208] sm:$0xf] }
  0x77   :  { %1351 = vmatmul.bf16.gmra.mxu0 %v2638_v6  ;;  %v3037_v6 = vld [vmem:[%s5168_s1 + $0x174] sm:$0xf]  ;;  %v2738_v11 = vor.u32 %v3041_v5, %v2737_v4  ;;  %v3060_v3 = vld [vmem:[%s5168_s1 + $0x228] sm:$0xf0] }
  0x78   :  { %v2742_v13 = vor.u32 %v3037_v6, %v2739_v7  ;;  %v2806_v6 = vor.u32 %v3054_v60, %v2803_v61  ;;  %v2810_v7 = vor.u32 %v3059_v63, %v2809_v62 }
  0x85   :  { %1149 = vmatmul.bf16.gmra.mxu1 %v2662_v30  ;;  %1218 = vmatmul.bf16.gmra.mxu2 %v2666_v31  ;;  %v2773_v30 = vld [vmem:[%s5168_s1 + $0x1b8] sm:$0xf]  ;;  %v3050_v31 = vld [vmem:[%s5168_s1 + $0x1d8] sm:$0xf0] }
  0x86   :  { %1287 = vmatmul.bf16.gmra.mxu3 %v2670_v32  ;;  %v3046_v32 = vld [vmem:[%s5168_s1 + $0x1bc] sm:$0xf]  ;;  %v2774_v41 = vor.u32 %v3050_v31, %v2773_v30 }
  0x87   :  { %1356 = vmatmul.bf16.gmra.mxu0 %v2674_v33  ;;  %v341_v33 = vpack.c.bf16 %v254_v24, %v253_v23  ;;  %v2778_v45 = vor.u32 %v3046_v32, %v2775_v34  ;;  %v130_v23 = vld [vmem:[%s5167_s0 + $0x398] sm:$0xff]  ;;  %v267_v24 = vmax.f32 %v129_v20, 0.0  ;;  %v97_v32 = vld [vmem:[%s5167_s0 + $0x290] sm:$0xff] }
  0x88   :  { %v268_v26 = vmax.f32 %v130_v23, 0.0  ;;  %v235_v34 = vmax.f32 %v97_v32, 0.0  ;;  %v2875_v23 = vld [vmem:[%s5168_s1 + $0x2ac] sm:$0xf0] }
  0x89   :  { %1476 = vmatpush.bf16.msra.mxu2 %v341_v33  ;;  %v98_v33 = vld [vmem:[%s5167_s0 + $0x298] sm:$0xff]  ;;  %v2881_v32 = vld [vmem:[%s5168_s1 + $0x290] sm:$0xf] }
  0x8a   :  { %v348_v30 = vpack.c.bf16 %v268_v26, %v267_v24  ;;  %v236_v35 = vmax.f32 %v98_v33, 0.0  ;;  %v3077_v33 = vld [vmem:[%s5168_s1 + $0x2b0] sm:$0xf0] }
  0x8c   :  { %1546 = vmatpush.bf16.msra.mxu3 %v348_v30 }
  0x95   :  { %1154 = vmatmul.bf16.gmra.mxu1 %v2698_v47  ;;  %1223 = vmatmul.bf16.gmra.mxu2 %v2702_v48  ;;  %v237_v47 = vmax.f32 %v99_v42, 0.0  ;;  %v238_v48 = vmax.f32 %v100_v43, 0.0  ;;  %v3064_v42 = vld [vmem:[%s5168_s1 + $0x24c] sm:$0xf]  ;;  %v332_v43 = vpack.c.bf16 %v236_v35, %v235_v34  ;;  %v3073_v34 = vld [vmem:[%s5168_s1 + $0x294] sm:$0xf] }
  0x96   :  { %1292 = vmatmul.bf16.gmra.mxu3 %v2706_v49 }
  0x97   :  { %1361 = vmatmul.bf16.gmra.mxu0 %v2710_v50  ;;  %v145_v50 = vld [vmem:[%s5167_s0 + $0x410] sm:$0xff]  ;;  %v333_v52 = vpack.c.bf16 %v238_v48, %v237_v47 }
  0x98   :  { %v283_v53 = vmax.f32 %v145_v50, 0.0  ;;  %v3069_v47 = vld [vmem:[%s5168_s1 + $0x270] sm:$0xf0] }
  0x99   :  { %1407 = vmatpush.bf16.msra.mxu1 %v333_v52 }
  0x9a   :  { %v356_v55 = vpack.c.bf16 %v284_v54, %v283_v53 }
  0x9c   :  { %1615 = vmatpush.bf16.msra.mxu0 %v356_v55 }
  0x9d   :  { %1408 = vmatpush.bf16.msra.mxu1 %v332_v43 }
  0xa2   :  { %v3822_v12 = vpop.f32.mrf.mxu1 }
  0xa4   :  { %v3824_v15 = vpop.f32.mrf.mxu0 }
  0xa5   :  { %1159 = vmatmul.bf16.gmra.mxu1 %v2734_v10  ;;  %1228 = vmatmul.bf16.gmra.mxu2 %v2738_v11  ;;  %v2818_v10 = vor.u32 %v3060_v3, %v2817_v2 }
  0xa6   :  { %1297 = vmatmul.bf16.gmra.mxu3 %v2742_v13  ;;  %v113_v13 = vld [vmem:[%s5167_s0 + $0x310] sm:$0xff] }
  0xa7   :  { %1366 = vmatmul.bf16.gmra.mxu0 %v2746_v14  ;;  %v114_v14 = vld [vmem:[%s5167_s0 + $0x318] sm:$0xff]  ;;  %v251_v21 = vmax.f32 %v113_v13, 0.0 }
  0xa8   :  { %v3826_v16 = vpop.f32.mrf.mxu2  ;;  %v252_v22 = vmax.f32 %v114_v14, 0.0 }
  0xa9   :  { %v3828_v17 = vpop.f32.mrf.mxu3 }
  0xaa   :  { %v3830_v18 = vpop.f32.mrf.mxu1  ;;  %v340_v28 = vpack.c.bf16 %v252_v22, %v251_v21  ;;  %v127_v21 = vld [vmem:[%s5167_s0 + $0x380] sm:$0xff]  ;;  %v128_v22 = vld [vmem:[%s5167_s0 + $0x388] sm:$0xff] }
  0xab   :  { %v265_v26 = vmax.f32 %v127_v21, 0.0  ;;  %v2917_v21 = vld [vmem:[%s5168_s1 + $0x2d8] sm:$0xf] }
  0xac   :  { %v3832_v19 = vpop.f32.mrf.mxu0  ;;  %1477 = vmatpush.bf16.msra.mxu2 %v340_v28  ;;  %v266_v28 = vmax.f32 %v128_v22, 0.0  ;;  %v3086_v22 = vld [vmem:[%s5168_s1 + $0x2f8] sm:$0xf0] }
  0xb0   :  { %v3870_v38 = vpop.f32.mrf.mxu2 }
  0xb1   :  { %v3872_v39 = vpop.f32.mrf.mxu3 }
  0xb2   :  { %v3880_v44 = vpop.f32.mrf.mxu1 }
  0xb4   :  { %v3882_v49 = vpop.f32.mrf.mxu0 }
  0xb5   :  { %1164 = vmatmul.bf16.gmra.mxu1 %v2770_v40  ;;  %1233 = vmatmul.bf16.gmra.mxu2 %v2774_v41  ;;  %v2845_v40 = vld [vmem:[%s5168_s1 + $0x248] sm:$0xf]  ;;  %v3068_v41 = vld [vmem:[%s5168_s1 + $0x268] sm:$0xf0] }
  0xb6   :  { %1302 = vmatmul.bf16.gmra.mxu3 %v2778_v45  ;;  %v2847_v45 = vld [vmem:[%s5168_s1 + $0x26c] sm:$0xf0]  ;;  %v2846_v52 = vor.u32 %v3068_v41, %v2845_v40  ;;  %v3078_v40 = vld [vmem:[%s5168_s1 + $0x2b8] sm:$0xf0] }
  0xb7   :  { %1371 = vmatmul.bf16.gmra.mxu0 %v2782_v46  ;;  %v2853_v46 = vld [vmem:[%s5168_s1 + $0x250] sm:$0xf]  ;;  %v2850_v54 = vor.u32 %v3064_v42, %v2847_v45  ;;  %v347_v42 = vpack.c.bf16 %v266_v28, %v265_v26  ;;  %v3087_v26 = vld [vmem:[%s5168_s1 + $0x300] sm:$0xf0] }
  0xb8   :  { %v3890_v56 = vpop.f32.mrf.mxu2  ;;  %v2854_v55 = vor.u32 %v3069_v47, %v2853_v46 }
  0xb9   :  { %v3892_v57 = vpop.f32.mrf.mxu3  ;;  %1547 = vmatpush.bf16.msra.mxu3 %v347_v42 }
  0xba   :  { %v3894_v58 = vpop.f32.mrf.mxu1 }
  0xbc   :  { %v3896_v59 = vpop.f32.mrf.mxu0 }
  0xc0   :  { %v3922_v4 = vpop.f32.mrf.mxu2 }
  0xc1   :  { %v3924_v5 = vpop.f32.mrf.mxu3 }
  0xc2   :  { %v3926_v8 = vpop.f32.mrf.mxu1 }
  0xc4   :  { %v3928_v11 = vpop.f32.mrf.mxu0 }
  0xc5   :  { %1169 = vmatmul.bf16.gmra.mxu1 %v2806_v6  ;;  %1238 = vmatmul.bf16.gmra.mxu2 %v2810_v7  ;;  %v143_v7 = vld [vmem:[%s5167_s0 + $0x400] sm:$0xff] }
  0xc6   :  { %1307 = vmatmul.bf16.gmra.mxu3 %v2814_v9  ;;  %v111_v9 = vld [vmem:[%s5167_s0 + $0x300] sm:$0xff]  ;;  %v281_v13 = vmax.f32 %v143_v7, 0.0 }
  0xc7   :  { %1376 = vmatmul.bf16.gmra.mxu0 %v2818_v10  ;;  %v3072_v10 = vld [vmem:[%s5168_s1 + $0x28c] sm:$0xf]  ;;  %v249_v20 = vmax.f32 %v111_v9, 0.0 }
  0xc8   :  { %v3942_v25 = vpop.f32.mrf.mxu2  ;;  %v2878_v47 = vor.u32 %v3072_v10, %v2875_v23  ;;  %v2919_v23 = vld [vmem:[%s5168_s1 + $0x2fc] sm:$0xf0] }
  0xc9   :  { %v3944_v27 = vpop.f32.mrf.mxu3 }
  0xca   :  { %v3946_v29 = vpop.f32.mrf.mxu1 }
  0xcc   :  { %v3948_v31 = vpop.f32.mrf.mxu0 }
  0xd0   :  { %v3980_v48 = vpop.f32.mrf.mxu2 }
  0xd1   :  { %v3982_v50 = vpop.f32.mrf.mxu3 }
  0xd2   :  { %v1135_v53 = vpop.f32.mrf.mxu1 }
  0xd3   :  { %v1136_v60 = vadd.f32 %v1135_v53, %v3824_v15  ;;  %v144_v15 = vld [vmem:[%s5167_s0 + $0x408] sm:$0xff]  ;;  %v2886_v53 = vor.u32 %v3073_v34, %v2883_v36 }
  0xd4   :  { %v1342_v61 = vpop.f32.mrf.mxu0  ;;  %v282_v14 = vmax.f32 %v144_v15, 0.0 }
  0xd5   :  { %1174 = vmatmul.bf16.gmra.mxu1 %v2842_v51  ;;  %1243 = vmatmul.bf16.gmra.mxu2 %v2846_v52  ;;  %v2882_v51 = vor.u32 %v3077_v33, %v2881_v32 }
  0xd6   :  { %1312 = vmatmul.bf16.gmra.mxu3 %v2850_v54  ;;  %v355_v35 = vpack.c.bf16 %v282_v14, %v281_v13  ;;  %v2890_v54 = vor.u32 %v3078_v40, %v2889_v37 }
  0xd7   :  { %1381 = vmatmul.bf16.gmra.mxu0 %v2854_v55 }
  0xd8   :  { %v1204_v62 = vpop.f32.mrf.mxu2  ;;  %1616 = vmatpush.bf16.msra.mxu0 %v355_v35  ;;  %v2918_v35 = vor.u32 %v3086_v22, %v2917_v21  ;;  %v5171_v22 = vmov 1  }
  0xd9   :  { %v1205_v63 = vadd.f32 %v1204_v62, %v1136_v60  ;;  %v1273_v0 = vpop.f32.mrf.mxu3  ;;  %v95_v62 = vld [vmem:[%s5167_s0 + $0x280] sm:$0xff]  ;;  %3125 = vset.pattern.permute.xlu1 %v5171_v22  ;;  %3126 = vset.pattern.permute.xlu0 %v5171_v22 }
  0xda   :  { %v1137_v1 = vpop.f32.mrf.mxu1  ;;  %3127 = vset.pattern.permute.xlu2 %v5171_v22 }
  0xdb   :  { %v1274_v2 = vadd.f32 %v1273_v0, %v1205_v63  ;;  %v1138_v3 = vadd.f32 %v1137_v1, %v3832_v19  ;;  %v112_v19 = vld [vmem:[%s5167_s0 + $0x308] sm:$0xff]  ;;  %v233_v0 = vmax.f32 %v95_v62, 0.0  ;;  %v2953_v62 = vld [vmem:[%s5168_s1 + $0x320] sm:$0xf] }
  0xdc   :  { %v1344_v6 = vpop.f32.mrf.mxu0  ;;  %v250_v24 = vmax.f32 %v112_v19, 0.0  ;;  %v96_v63 = vld [vmem:[%s5167_s0 + $0x288] sm:$0xff]  ;;  %v3081_v19 = vld [vmem:[%s5168_s1 + $0x2d4] sm:$0xf] }
  0xdd   :  { %v4010_v30 = vadd.f32 %v1342_v61, %v1274_v2  ;;  %v234_v1 = vmax.f32 %v96_v63, 0.0  ;;  %v3095_v63 = vld [vmem:[%s5168_s1 + $0x340] sm:$0xf0] }
  0xde   :  { %v339_v41 = vpack.c.bf16 %v250_v24, %v249_v20  ;;  %v2925_v24 = vld [vmem:[%s5168_s1 + $0x2e0] sm:$0xf] }
  0xdf   :  { %v2926_v40 = vor.u32 %v3087_v26, %v2925_v24 }
  0xe0   :  { %v1206_v43 = vpop.f32.mrf.mxu2  ;;  %1478 = vmatpush.bf16.msra.mxu2 %v339_v41 }
  0xe1   :  { %v1207_v45 = vadd.f32 %v1206_v43, %v1138_v3  ;;  %v1275_v46 = vpop.f32.mrf.mxu3  ;;  %v331_v3 = vpack.c.bf16 %v234_v1, %v233_v0  ;;  %v2955_v0 = vld [vmem:[%s5168_s1 + $0x344] sm:$0xf0] }
  0xe2   :  { %v1140_v52 = vpop.f32.mrf.mxu1  ;;  %v2961_v1 = vld [vmem:[%s5168_s1 + $0x328] sm:$0xf] }
  0xe3   :  { %v1276_v55 = vadd.f32 %v1275_v46, %v1207_v45  ;;  %v1141_v60 = vadd.f32 %v1140_v52, %v3882_v49  ;;  %1409 = vmatpush.bf16.msra.mxu1 %v331_v3  ;;  %v3096_v3 = vld [vmem:[%s5168_s1 + $0x348] sm:$0xf0] }
  0xe4   :  { %v1347_v61 = vpop.f32.mrf.mxu0 }
  0xe5   :  { %1179 = vmatmul.bf16.gmra.mxu1 %v2878_v47  ;;  %1248 = vmatmul.bf16.gmra.mxu2 %v2882_v51  ;;  %v4037_v2 = vadd.f32 %v1344_v6, %v1276_v55  ;;  %v2911_v6 = vld [vmem:[%s5168_s1 + $0x2f4] sm:$0xf0] }
  0xe6   :  { %1317 = vmatmul.bf16.gmra.mxu3 %v2886_v53  ;;  %v2914_v34 = vor.u32 %v3081_v19, %v2911_v6  ;;  %v2962_v19 = vor.u32 %v3096_v3, %v2961_v1  ;;  %v2189_v3 = vld [vmem:[%s5169_s2 + $0x30] sm:$0xff] }
  0xe7   :  { %1386 = vmatmul.bf16.gmra.mxu0 %v2890_v54 }
  0xe8   :  { %v1209_v7 = vpop.f32.mrf.mxu2 }
  0xe9   :  { %v1210_v49 = vadd.f32 %v1209_v7, %v1141_v60  ;;  %v1278_v15 = vpop.f32.mrf.mxu3  ;;  %v3090_v60 = vld [vmem:[%s5168_s1 + $0x31c] sm:$0xf] }
  0xea   :  { %v1142_v9 = vpop.f32.mrf.mxu1 }
  0xeb   :  { %v1279_v10 = vadd.f32 %v1278_v15, %v1210_v49  ;;  %v1143_v13 = vadd.f32 %v1142_v9, %v3896_v59  ;;  %v3082_v59 = vld [vmem:[%s5168_s1 + $0x2dc] sm:$0xf] }
  0xec   :  { %v1349_v14 = vpop.f32.mrf.mxu0  ;;  %v2922_v37 = vor.u32 %v3082_v59, %v2919_v23  ;;  %v2183_v23 = vld [vmem:[%s5169_s2] sm:$0xff] }
  0xed   :  { %v4046_v20 = vadd.f32 %v1347_v61, %v1279_v10  ;;  %v2954_v10 = vor.u32 %v3095_v63, %v2953_v62  ;;  %2377 = vperm.xlu1 %3125, %v2183_v23   ;;  %v2191_v23 = vld [vmem:[%s5169_s2 + $0x40] sm:$0xff] }
  0xf0   :  { %v1211_v28 = vpop.f32.mrf.mxu2 }
  0xf1   :  { %v1212_v32 = vadd.f32 %v1211_v28, %v1143_v13  ;;  %v1280_v33 = vpop.f32.mrf.mxu3 }
  0xf2   :  { %v1145_v36 = vpop.f32.mrf.mxu1 }
  0xf3   :  { %v1281_v41 = vadd.f32 %v1280_v33, %v1212_v32  ;;  %v1146_v42 = vadd.f32 %v1145_v36, %v3928_v11  ;;  %v2947_v11 = vld [vmem:[%s5168_s1 + $0x33c] sm:$0xf0]  ;;  %v2184_v36 = vld [vmem:[%s5169_s2 + $0x8] sm:$0xff] }
  0xf4   :  { %v1352_v43 = vpop.f32.mrf.mxu0  ;;  %v2950_v9 = vor.u32 %v3090_v60, %v2947_v11  ;;  %2382 = vperm.xlu0 %3126, %v2184_v36   ;;  %v2617_v36 = vld [vmem:[%s5168_s1 + $0x68] sm:$0xf] }
  0xf5   :  { %1184 = vmatmul.bf16.gmra.mxu1 %v2914_v34  ;;  %1253 = vmatmul.bf16.gmra.mxu2 %v2918_v35  ;;  %v4067_v45 = vadd.f32 %v1349_v14, %v1281_v41 }
  0xf6   :  { %1322 = vmatmul.bf16.gmra.mxu3 %v2922_v37  ;;  %v2186_v37 = vld [vmem:[%s5169_s2 + $0x18] sm:$0xff] }
  0xf7   :  { %1391 = vmatmul.bf16.gmra.mxu0 %v2926_v40  ;;  %v2567_v40 = vld [vmem:[%s5168_s1 + $0x34] sm:$0xf0]  ;;  %2392 = vperm.xlu1 %3125, %v2186_v37   ;;  %v3008_v37 = vld [vmem:[%s5168_s1 + $0x88] sm:$0xf0] }
  0xf8   :  { %v1214_v46 = vpop.f32.mrf.mxu2 }
  0xf9   :  { %v1215_v47 = vadd.f32 %v1214_v46, %v1146_v42  ;;  %v1283_v51 = vpop.f32.mrf.mxu3  ;;  %v2573_v42 = vld [vmem:[%s5168_s1 + $0x18] sm:$0xf]  ;;  %v2994_v46 = vld [vmem:[%s5168_s1 + $0x1c] sm:$0xf] }
  0xfa   :  { %v1147_v52 = vpop.f32.mrf.mxu1 }
  0xfb   :  { %v1284_v53 = vadd.f32 %v1283_v51, %v1215_v47  ;;  %v1148_v54 = vadd.f32 %v1147_v52, %v3948_v31  ;;  %v3091_v31 = vld [vmem:[%s5168_s1 + $0x324] sm:$0xf]  ;;  %v2575_v51 = vld [vmem:[%s5168_s1 + $0x3c] sm:$0xf0] }
  0xfc   :  { %v1354_v55 = vpop.f32.mrf.mxu0  ;;  %v2958_v14 = vor.u32 %v3091_v31, %v2955_v0  ;;  %v2581_v52 = vld [vmem:[%s5168_s1 + $0x20] sm:$0xf]  ;;  %2407 = vperm.xlu0 %3126, %v2189_v3   ;;  %v2198_v3 = vld [vmem:[%s5169_s2 + $0x78] sm:$0xff] }
  0xfd   :  { %v4076_v61 = vadd.f32 %v1352_v43, %v1284_v53  ;;  %v2998_v43 = vld [vmem:[%s5168_s1 + $0x38] sm:$0xf0]  ;;  %v2999_v53 = vld [vmem:[%s5168_s1 + $0x40] sm:$0xf0] }
  0xfe   :  { %v2574_v62 = vor.u32 %v2998_v43, %v2573_v42  ;;  %v2582_v31 = vor.u32 %v2999_v53, %v2581_v52 }
 0x100   :  { %v1216_v7 = vpop.f32.mrf.mxu2 }
 0x101   :  { %v1217_v49 = vadd.f32 %v1216_v7, %v1148_v54  ;;  %v1285_v15 = vpop.f32.mrf.mxu3 }
 0x102   :  { %v1150_v13 = vpop.f32.mrf.mxu1 }
 0x103   :  { %v1286_v6 = vadd.f32 %v1285_v15, %v1217_v49  ;;  %v1151_v24 = vadd.f32 %v1150_v13, %v3822_v12  ;;  %v2993_v12 = vld [vmem:[%s5168_s1 + $0x14] sm:$0xf]  ;;  %v2188_v49 = vld [vmem:[%s5169_s2 + $0x28] sm:$0xff] }
 0x104   :  { %v1357_v21 = vpop.f32.mrf.mxu0  ;;  %v2570_v11 = vor.u32 %v2993_v12, %v2567_v40  ;;  %2402 = vperm.xlu1 %3125, %v2188_v49   ;;  %v2197_v49 = vld [vmem:[%s5169_s2 + $0x70] sm:$0xff] }
 0x105   :  { %1189 = vmatmul.bf16.gmra.mxu1 %v2950_v9  ;;  %1258 = vmatmul.bf16.gmra.mxu2 %v2954_v10  ;;  %v4098_v59 = vadd.f32 %v1354_v55, %v1286_v6 }
 0x106   :  { %1327 = vmatmul.bf16.gmra.mxu3 %v2958_v14 }
 0x107   :  { %1396 = vmatmul.bf16.gmra.mxu0 %v2962_v19 }
 0x108   :  { %v1219_v26 = vpop.f32.mrf.mxu2 }
 0x109   :  { %v1220_v28 = vadd.f32 %v1219_v26, %v1151_v24  ;;  %v1288_v32 = vpop.f32.mrf.mxu3  ;;  %v2603_v24 = vld [vmem:[%s5168_s1 + $0x7c] sm:$0xf0] }
 0x10a   :  { %v1152_v33 = vpop.f32.mrf.mxu1 }
 0x10b   :  { %v1289_v34 = vadd.f32 %v1288_v32, %v1220_v28  ;;  %v1153_v47 = vadd.f32 %v1152_v33, %v3830_v18  ;;  %v2578_v18 = vor.u32 %v2994_v46, %v2575_v51  ;;  %v2609_v28 = vld [vmem:[%s5168_s1 + $0x60] sm:$0xf]  ;;  %v3007_v32 = vld [vmem:[%s5168_s1 + $0x80] sm:$0xf0]  ;;  %v2618_v51 = vor.u32 %v3008_v37, %v2617_v36 }
 0x10c   :  { %v1359_v35 = vpop.f32.mrf.mxu0  ;;  %v3003_v33 = vld [vmem:[%s5168_s1 + $0x64] sm:$0xf]  ;;  %2417 = vperm.xlu1 %3125, %v2191_v23   ;;  %v2610_v46 = vor.u32 %v3007_v32, %v2609_v28  ;;  %v3017_v23 = vld [vmem:[%s5168_s1 + $0xd0] sm:$0xf0] }
 0x10d   :  { %v4117_v41 = vadd.f32 %v1357_v21, %v1289_v34  ;;  %v2192_v21 = vld [vmem:[%s5169_s2 + $0x48] sm:$0xff] }
 0x10e   :  { %2422 = vperm.xlu0 %3126, %v2192_v21   ;;  %v2653_v21 = vld [vmem:[%s5168_s1 + $0xb0] sm:$0xf] }
 0x110   :  { %v1221_v54 = vpop.f32.mrf.mxu2 }
 0x111   :  { %v1222_v55 = vadd.f32 %v1221_v54, %v1153_v47  ;;  %v1290_v60 = vpop.f32.mrf.mxu3  ;;  %v2195_v54 = vld [vmem:[%s5169_s2 + $0x60] sm:$0xff] }
 0x112   :  { %v1155_v63 = vpop.f32.mrf.mxu1 }
 0x113   :  { %v1291_v0 = vadd.f32 %v1290_v60, %v1222_v55  ;;  %v1156_v15 = vadd.f32 %v1155_v63, %v3880_v44  ;;  %v3002_v44 = vld [vmem:[%s5168_s1 + $0x5c] sm:$0xf] }
 0x114   :  { %v1362_v1 = vpop.f32.mrf.mxu0  ;;  %v2606_v43 = vor.u32 %v3002_v44, %v2603_v24  ;;  %v2194_v60 = vld [vmem:[%s5169_s2 + $0x58] sm:$0xff] }
 0x115   :  { %1410 = vmatmul.bf16.vlgmr.msra.gmra.mxu1 %v2570_v11  ;;  %1479 = vmatmul.bf16.vlgmr.msra.gmra.mxu2 %v2574_v62  ;;  %v4141_v7 = vadd.f32 %v1359_v35, %v1291_v0  ;;  %v2611_v35 = vld [vmem:[%s5168_s1 + $0x84] sm:$0xf0] }
 0x116   :  { %1548 = vmatmul.bf16.vlgmr.msra.gmra.mxu3 %v2578_v18  ;;  %2437 = vperm.xlu0 %3126, %v2195_v54   ;;  %v2203_v54 = vld [vmem:[%s5169_s2 + $0xa0] sm:$0xff] }
 0x117   :  { %2979 = vmatmul.msk.bf16.vlgmr.msra.gmra.mxu0 %vm1020_vm0, %v2582_v31  ;;  %2432 = vperm.xlu1 %3125, %v2194_v60   ;;  %v3020_v60 = vld [vmem:[%s5168_s1 + $0xec] sm:$0xf] }
 0x118   :  { %v1224_v9 = vpop.f32.mrf.mxu2 }
 0x119   :  { %v1225_v10 = vadd.f32 %v1224_v9, %v1156_v15  ;;  %v1293_v13 = vpop.f32.mrf.mxu3  ;;  %v2639_v15 = vld [vmem:[%s5168_s1 + $0xc4] sm:$0xf0] }
 0x11a   :  { %v1157_v14 = vpop.f32.mrf.mxu1 }
 0x11b   :  { %v1294_v19 = vadd.f32 %v1293_v13, %v1225_v10  ;;  %v1158_v34 = vadd.f32 %v1157_v14, %v3894_v58  ;;  %v2614_v58 = vor.u32 %v3003_v33, %v2611_v35  ;;  %v2645_v10 = vld [vmem:[%s5168_s1 + $0xa8] sm:$0xf]  ;;  %v3016_v13 = vld [vmem:[%s5168_s1 + $0xc8] sm:$0xf0]  ;;  %v2654_v35 = vor.u32 %v3017_v23, %v2653_v21 }
 0x11c   :  { %v1364_v6 = vpop.f32.mrf.mxu0  ;;  %v3012_v14 = vld [vmem:[%s5168_s1 + $0xac] sm:$0xf]  ;;  %v2646_v33 = vor.u32 %v3016_v13, %v2645_v10 }
 0x11d   :  { %v4160_v26 = vadd.f32 %v1362_v1, %v1294_v19 }
 0x11e   :  { %2452 = vperm.xlu0 %3126, %v2198_v3   ;;  %v3026_v3 = vld [vmem:[%s5168_s1 + $0x118] sm:$0xf0] }
 0x11f   :  { %2447 = vperm.xlu1 %3125, %v2197_v49  }
 0x120   :  { %v1226_v12 = vpop.f32.mrf.mxu2 }
 0x121   :  { %v1227_v40 = vadd.f32 %v1226_v12, %v1158_v34  ;;  %v1295_v42 = vpop.f32.mrf.mxu3  ;;  %v2201_v12 = vld [vmem:[%s5169_s2 + $0x90] sm:$0xff] }
 0x122   :  { %v1160_v47 = vpop.f32.mrf.mxu1 }
 0x123   :  { %v1296_v52 = vadd.f32 %v1295_v42, %v1227_v40  ;;  %v1161_v11 = vadd.f32 %v1160_v47, %v3926_v8  ;;  %v3011_v8 = vld [vmem:[%s5168_s1 + $0xa4] sm:$0xf]  ;;  %v2200_v42 = vld [vmem:[%s5169_s2 + $0x88] sm:$0xff] }
 0x124   :  { %v1367_v53 = vpop.f32.mrf.mxu0  ;;  %v2642_v32 = vor.u32 %v3011_v8, %v2639_v15 }
 0x125   :  { %1415 = vmatmul.bf16.gmra.mxu1 %v2606_v43  ;;  %1484 = vmatmul.bf16.gmra.mxu2 %v2610_v46  ;;  %v4184_v55 = vadd.f32 %v1364_v6, %v1296_v52  ;;  %v2647_v6 = vld [vmem:[%s5168_s1 + $0xcc] sm:$0xf0] }
 0x126   :  { %1553 = vmatmul.bf16.gmra.mxu3 %v2614_v58  ;;  %2467 = vperm.xlu0 %3126, %v2201_v12   ;;  %v2711_v12 = vld [vmem:[%s5168_s1 + $0x154] sm:$0xf0] }
 0x127   :  { %2980 = vmatmul.msk.bf16.gmra.mxu0 %vm1020_vm0, %v2618_v51  ;;  %2462 = vperm.xlu1 %3125, %v2200_v42   ;;  %v2717_v42 = vld [vmem:[%s5168_s1 + $0x138] sm:$0xf] }
 0x128   :  { %v1229_v62 = vpop.f32.mrf.mxu2 }
 0x129   :  { %v1230_v63 = vadd.f32 %v1229_v62, %v1161_v11  ;;  %v1298_v18 = vpop.f32.mrf.mxu3  ;;  %v2675_v11 = vld [vmem:[%s5168_s1 + $0x10c] sm:$0xf0] }
 0x12a   :  { %v1162_v31 = vpop.f32.mrf.mxu1  ;;  %v2681_v62 = vld [vmem:[%s5168_s1 + $0xf0] sm:$0xf]  ;;  %v2678_v10 = vor.u32 %v3020_v60, %v2675_v11 }
 0x12b   :  { %v1299_v0 = vadd.f32 %v1298_v18, %v1230_v63  ;;  %v1163_v19 = vadd.f32 %v1162_v31, %v3946_v29  ;;  %v2650_v29 = vor.u32 %v3012_v14, %v2647_v6  ;;  %v3025_v63 = vld [vmem:[%s5168_s1 + $0x110] sm:$0xf0] }
 0x12c   :  { %v1369_v1 = vpop.f32.mrf.mxu0  ;;  %v3021_v18 = vld [vmem:[%s5168_s1 + $0xf4] sm:$0xf]  ;;  %v2682_v13 = vor.u32 %v3025_v63, %v2681_v62 }
 0x12d   :  { %v4203_v9 = vadd.f32 %v1367_v53, %v1299_v0  ;;  %v2683_v0 = vld [vmem:[%s5168_s1 + $0x114] sm:$0xf0] }
 0x12f   :  { %2477 = vperm.xlu1 %3125, %v2203_v54  }
 0x130   :  { %v1231_v44 = vpop.f32.mrf.mxu2 }
 0x131   :  { %v1232_v24 = vadd.f32 %v1231_v44, %v1163_v19  ;;  %v1300_v28 = vpop.f32.mrf.mxu3  ;;  %v2185_v44 = vld [vmem:[%s5169_s2 + $0x10] sm:$0xff] }
 0x132   :  { %v1165_v34 = vpop.f32.mrf.mxu1  ;;  %2387 = vperm.xlu2 %3127, %v2185_v44   ;;  %v2753_v44 = vld [vmem:[%s5168_s1 + $0x180] sm:$0xf] }
 0x133   :  { %v1301_v36 = vadd.f32 %v1300_v28, %v1232_v24  ;;  %v1166_v43 = vadd.f32 %v1165_v34, %v3826_v16 }
 0x134   :  { %v1372_v37 = vpop.f32.mrf.mxu0 }
 0x135   :  { %1420 = vmatmul.bf16.gmra.mxu1 %v2642_v32  ;;  %1489 = vmatmul.bf16.gmra.mxu2 %v2646_v33  ;;  %v4227_v40 = vadd.f32 %v1369_v1, %v1301_v36  ;;  %v2689_v1 = vld [vmem:[%s5168_s1 + $0xf8] sm:$0xf]  ;;  %v2187_v36 = vld [vmem:[%s5169_s2 + $0x20] sm:$0xff] }
 0x136   :  { %1558 = vmatmul.bf16.gmra.mxu3 %v2650_v29  ;;  %v2690_v19 = vor.u32 %v3026_v3, %v2689_v1  ;;  %v2190_v3 = vld [vmem:[%s5169_s2 + $0x38] sm:$0xff] }
 0x137   :  { %2981 = vmatmul.msk.bf16.gmra.mxu0 %vm1020_vm0, %v2654_v35 }
 0x138   :  { %v1234_v46 = vpop.f32.mrf.mxu2 }
 0x139   :  { %v1235_v47 = vadd.f32 %v1234_v46, %v1166_v43  ;;  %v1303_v58 = vpop.f32.mrf.mxu3  ;;  %v3034_v43 = vld [vmem:[%s5168_s1 + $0x158] sm:$0xf0] }
 0x13a   :  { %v1167_v51 = vpop.f32.mrf.mxu1  ;;  %v3030_v46 = vld [vmem:[%s5168_s1 + $0x13c] sm:$0xf]  ;;  %2397 = vperm.xlu2 %3127, %v2187_v36   ;;  %v2718_v62 = vor.u32 %v3034_v43, %v2717_v42 }
 0x13b   :  { %v1304_v52 = vadd.f32 %v1303_v58, %v1235_v47  ;;  %v1168_v31 = vadd.f32 %v1167_v51, %v3870_v38  ;;  %v2686_v38 = vor.u32 %v3021_v18, %v2683_v0  ;;  %v2719_v58 = vld [vmem:[%s5168_s1 + $0x15c] sm:$0xf0] }
 0x13c   :  { %v1374_v53 = vpop.f32.mrf.mxu0  ;;  %v2725_v51 = vld [vmem:[%s5168_s1 + $0x140] sm:$0xf] }
 0x13d   :  { %v4243_v16 = vadd.f32 %v1372_v37, %v1304_v52  ;;  %v3029_v37 = vld [vmem:[%s5168_s1 + $0x134] sm:$0xf]  ;;  %v3035_v52 = vld [vmem:[%s5168_s1 + $0x160] sm:$0xf0] }
 0x13e   :  { %v2714_v11 = vor.u32 %v3029_v37, %v2711_v12  ;;  %v2726_v18 = vor.u32 %v3035_v52, %v2725_v51  ;;  %v2196_v52 = vld [vmem:[%s5169_s2 + $0x68] sm:$0xff] }
 0x140   :  { %v1236_v49 = vpop.f32.mrf.mxu2 }
 0x141   :  { %v1237_v8 = vadd.f32 %v1236_v49, %v1168_v31  ;;  %v1305_v15 = vpop.f32.mrf.mxu3 }
 0x142   :  { %v1170_v14 = vpop.f32.mrf.mxu1  ;;  %2412 = vperm.xlu2 %3127, %v2190_v3   ;;  %v2789_v3 = vld [vmem:[%s5168_s1 + $0x1c8] sm:$0xf] }
 0x143   :  { %v1306_v6 = vadd.f32 %v1305_v15, %v1237_v8  ;;  %v1171_v24 = vadd.f32 %v1170_v14, %v3890_v56 }
 0x144   :  { %v1377_v21 = vpop.f32.mrf.mxu0 }
 0x145   :  { %1425 = vmatmul.bf16.gmra.mxu1 %v2678_v10  ;;  %1494 = vmatmul.bf16.gmra.mxu2 %v2682_v13  ;;  %v4264_v23 = vadd.f32 %v1374_v53, %v1306_v6  ;;  %v3038_v6 = vld [vmem:[%s5168_s1 + $0x17c] sm:$0xf] }
 0x146   :  { %1563 = vmatmul.bf16.gmra.mxu3 %v2686_v38 }
 0x147   :  { %2982 = vmatmul.msk.bf16.gmra.mxu0 %vm1020_vm0, %v2690_v19  ;;  %v2193_v19 = vld [vmem:[%s5169_s2 + $0x50] sm:$0xff] }
 0x148   :  { %v1239_v28 = vpop.f32.mrf.mxu2 }
 0x149   :  { %v1240_v32 = vadd.f32 %v1239_v28, %v1171_v24  ;;  %v1308_v33 = vpop.f32.mrf.mxu3  ;;  %v3043_v24 = vld [vmem:[%s5168_s1 + $0x1a0] sm:$0xf0] }
 0x14a   :  { %v1172_v34 = vpop.f32.mrf.mxu1  ;;  %v3039_v28 = vld [vmem:[%s5168_s1 + $0x184] sm:$0xf]  ;;  %2427 = vperm.xlu2 %3127, %v2193_v19   ;;  %v2754_v42 = vor.u32 %v3043_v24, %v2753_v44 }
 0x14b   :  { %v1309_v29 = vadd.f32 %v1308_v33, %v1240_v32  ;;  %v1173_v47 = vadd.f32 %v1172_v34, %v3922_v4  ;;  %v2722_v4 = vor.u32 %v3030_v46, %v2719_v58  ;;  %v2755_v33 = vld [vmem:[%s5168_s1 + $0x1a4] sm:$0xf0] }
 0x14c   :  { %v1379_v35 = vpop.f32.mrf.mxu0  ;;  %v2761_v34 = vld [vmem:[%s5168_s1 + $0x188] sm:$0xf] }
 0x14d   :  { %v4280_v56 = vadd.f32 %v1377_v21, %v1309_v29  ;;  %v2747_v21 = vld [vmem:[%s5168_s1 + $0x19c] sm:$0xf0]  ;;  %v3044_v29 = vld [vmem:[%s5168_s1 + $0x1a8] sm:$0xf0] }
 0x14e   :  { %v2750_v12 = vor.u32 %v3038_v6, %v2747_v21  ;;  %v2762_v46 = vor.u32 %v3044_v29, %v2761_v34  ;;  %v2202_v29 = vld [vmem:[%s5169_s2 + $0x98] sm:$0xff] }
 0x150   :  { %v1241_v53 = vpop.f32.mrf.mxu2 }
 0x151   :  { %v1242_v54 = vadd.f32 %v1241_v53, %v1173_v47  ;;  %v1310_v60 = vpop.f32.mrf.mxu3 }
 0x152   :  { %v1175_v63 = vpop.f32.mrf.mxu1  ;;  %2442 = vperm.xlu2 %3127, %v2196_v52   ;;  %v3061_v52 = vld [vmem:[%s5168_s1 + $0x230] sm:$0xf0] }
 0x153   :  { %v1311_v31 = vadd.f32 %v1310_v60, %v1242_v54  ;;  %v1176_v49 = vadd.f32 %v1175_v63, %v3942_v25 }
 0x154   :  { %v1382_v0 = vpop.f32.mrf.mxu0 }
 0x155   :  { %1430 = vmatmul.bf16.gmra.mxu1 %v2714_v11  ;;  %1499 = vmatmul.bf16.gmra.mxu2 %v2718_v62  ;;  %v4301_v1 = vadd.f32 %v1379_v35, %v1311_v31  ;;  %v3047_v31 = vld [vmem:[%s5168_s1 + $0x1c4] sm:$0xf] }
 0x156   :  { %1568 = vmatmul.bf16.gmra.mxu3 %v2722_v4 }
 0x157   :  { %2983 = vmatmul.msk.bf16.gmra.mxu0 %vm1020_vm0, %v2726_v18  ;;  %v2199_v18 = vld [vmem:[%s5169_s2 + $0x80] sm:$0xff] }
 0x158   :  { %v1244_v8 = vpop.f32.mrf.mxu2 }
 0x159   :  { %v1245_v15 = vadd.f32 %v1244_v8, %v1176_v49  ;;  %v1313_v10 = vpop.f32.mrf.mxu3  ;;  %v3052_v49 = vld [vmem:[%s5168_s1 + $0x1e8] sm:$0xf0] }
 0x15a   :  { %v1177_v13 = vpop.f32.mrf.mxu1  ;;  %v3048_v8 = vld [vmem:[%s5168_s1 + $0x1cc] sm:$0xf]  ;;  %2457 = vperm.xlu2 %3127, %v2199_v18   ;;  %v2790_v44 = vor.u32 %v3052_v49, %v2789_v3 }
 0x15b   :  { %v1314_v14 = vadd.f32 %v1313_v10, %v1245_v15  ;;  %v1178_v32 = vadd.f32 %v1177_v13, %v3980_v48  ;;  %v2758_v48 = vor.u32 %v3039_v28, %v2755_v33  ;;  %v2791_v10 = vld [vmem:[%s5168_s1 + $0x1ec] sm:$0xf0] }
 0x15c   :  { %v1384_v38 = vpop.f32.mrf.mxu0  ;;  %v2797_v13 = vld [vmem:[%s5168_s1 + $0x1d0] sm:$0xf] }
 0x15d   :  { %v4317_v25 = vadd.f32 %v1382_v0, %v1314_v14  ;;  %v2783_v0 = vld [vmem:[%s5168_s1 + $0x1e4] sm:$0xf0]  ;;  %v3053_v14 = vld [vmem:[%s5168_s1 + $0x1f0] sm:$0xf0] }
 0x15e   :  { %v2786_v21 = vor.u32 %v3047_v31, %v2783_v0  ;;  %v2798_v28 = vor.u32 %v3053_v14, %v2797_v13 }
 0x160   :  { %v1246_v35 = vpop.f32.mrf.mxu2 }
 0x161   :  { %v1247_v36 = vadd.f32 %v1246_v35, %v1178_v32  ;;  %v1315_v37 = vpop.f32.mrf.mxu3 }
 0x162   :  { %v1180_v43 = vpop.f32.mrf.mxu1  ;;  %2472 = vperm.xlu2 %3127, %v2202_v29  }
 0x163   :  { %v1316_v47 = vadd.f32 %v1315_v37, %v1247_v36  ;;  %v1181_v53 = vadd.f32 %v1180_v43, %v3828_v17 }
 0x164   :  { %v1387_v58 = vpop.f32.mrf.mxu0 }
 0x165   :  { %1435 = vmatmul.bf16.gmra.mxu1 %v2750_v12  ;;  %1504 = vmatmul.bf16.gmra.mxu2 %v2754_v42  ;;  %v4338_v51 = vadd.f32 %v1384_v38, %v1316_v47  ;;  %v2819_v47 = vld [vmem:[%s5168_s1 + $0x22c] sm:$0xf0] }
 0x166   :  { %1573 = vmatmul.bf16.gmra.mxu3 %v2758_v48 }
 0x167   :  { %2984 = vmatmul.msk.bf16.gmra.mxu0 %vm1020_vm0, %v2762_v46  ;;  %v3056_v46 = vld [vmem:[%s5168_s1 + $0x20c] sm:$0xf] }
 0x168   :  { %v1249_v54 = vpop.f32.mrf.mxu2  ;;  %v2822_v31 = vor.u32 %v3056_v46, %v2819_v47 }
 0x169   :  { %v1250_v60 = vadd.f32 %v1249_v54, %v1181_v53  ;;  %v1318_v11 = vpop.f32.mrf.mxu3  ;;  %v3057_v53 = vld [vmem:[%s5168_s1 + $0x214] sm:$0xf] }
 0x16a   :  { %v1182_v62 = vpop.f32.mrf.mxu1 }
 0x16b   :  { %v1319_v63 = vadd.f32 %v1318_v11, %v1250_v60  ;;  %v1183_v15 = vadd.f32 %v1182_v62, %v3872_v39  ;;  %v2794_v39 = vor.u32 %v3048_v8, %v2791_v10  ;;  %v2827_v60 = vld [vmem:[%s5168_s1 + $0x234] sm:$0xf0]  ;;  %v3062_v62 = vld [vmem:[%s5168_s1 + $0x238] sm:$0xf0] }
 0x16c   :  { %v1389_v4 = vpop.f32.mrf.mxu0  ;;  %v2833_v11 = vld [vmem:[%s5168_s1 + $0x218] sm:$0xf]  ;;  %v2830_v49 = vor.u32 %v3057_v53, %v2827_v60 }
 0x16d   :  { %v4354_v17 = vadd.f32 %v1387_v58, %v1319_v63 }
 0x170   :  { %v1251_v38 = vpop.f32.mrf.mxu2 }
 0x171   :  { %v1252_v19 = vadd.f32 %v1251_v38, %v1183_v15  ;;  %v1320_v6 = vpop.f32.mrf.mxu3 }
 0x172   :  { %v1185_v24 = vpop.f32.mrf.mxu1 }
 0x173   :  { %v1321_v32 = vadd.f32 %v1320_v6, %v1252_v19  ;;  %v1186_v35 = vadd.f32 %v1185_v24, %v3892_v57  ;;  %v2825_v57 = vld [vmem:[%s5168_s1 + $0x210] sm:$0xf]  ;;  %v3065_v24 = vld [vmem:[%s5168_s1 + $0x254] sm:$0xf] }
 0x174   :  { %v1392_v33 = vpop.f32.mrf.mxu0  ;;  %v2826_v0 = vor.u32 %v3061_v52, %v2825_v57 }
 0x175   :  { %1440 = vmatmul.bf16.gmra.mxu1 %v2786_v21  ;;  %1509 = vmatmul.bf16.gmra.mxu2 %v2790_v44  ;;  %v4375_v34 = vadd.f32 %v1389_v4, %v1321_v32  ;;  %v3070_v32 = vld [vmem:[%s5168_s1 + $0x278] sm:$0xf0] }
 0x176   :  { %1578 = vmatmul.bf16.gmra.mxu3 %v2794_v39  ;;  %v2855_v39 = vld [vmem:[%s5168_s1 + $0x274] sm:$0xf0] }
 0x177   :  { %2985 = vmatmul.msk.bf16.gmra.mxu0 %vm1020_vm0, %v2798_v28 }
 0x178   :  { %v1254_v36 = vpop.f32.mrf.mxu2 }
 0x179   :  { %v1255_v37 = vadd.f32 %v1254_v36, %v1186_v35  ;;  %v1323_v12 = vpop.f32.mrf.mxu3  ;;  %v2863_v35 = vld [vmem:[%s5168_s1 + $0x27c] sm:$0xf0] }
 0x17a   :  { %v1187_v42 = vpop.f32.mrf.mxu1  ;;  %v2869_v36 = vld [vmem:[%s5168_s1 + $0x260] sm:$0xf] }
 0x17b   :  { %v1324_v43 = vadd.f32 %v1323_v12, %v1255_v37  ;;  %v1188_v54 = vadd.f32 %v1187_v42, %v3924_v5  ;;  %v2834_v5 = vor.u32 %v3062_v62, %v2833_v11  ;;  %v3071_v37 = vld [vmem:[%s5168_s1 + $0x280] sm:$0xf0] }
 0x17c   :  { %v1394_v48 = vpop.f32.mrf.mxu0 }
 0x17d   :  { %v4388_v58 = vadd.f32 %v1392_v33, %v1324_v43  ;;  %v3066_v33 = vld [vmem:[%s5168_s1 + $0x25c] sm:$0xf] }
 0x17e   :  { %v2866_v57 = vor.u32 %v3066_v33, %v2863_v35 }
 0x180   :  { %v1256_v63 = vpop.f32.mrf.mxu2 }
 0x181   :  { %v1257_v4 = vadd.f32 %v1256_v63, %v1188_v54  ;;  %v1325_v18 = vpop.f32.mrf.mxu3 }
 0x182   :  { %v1190_v3 = vpop.f32.mrf.mxu1 }
 0x183   :  { %v1326_v8 = vadd.f32 %v1325_v18, %v1257_v4  ;;  %v1191_v13 = vadd.f32 %v1190_v3, %v3944_v27  ;;  %v2861_v27 = vld [vmem:[%s5168_s1 + $0x258] sm:$0xf]  ;;  %v3074_v3 = vld [vmem:[%s5168_s1 + $0x29c] sm:$0xf] }
 0x184   :  { %v1397_v15 = vpop.f32.mrf.mxu0  ;;  %v2862_v46 = vor.u32 %v3070_v32, %v2861_v27 }
 0x185   :  { %1445 = vmatmul.bf16.gmra.mxu1 %v2822_v31  ;;  %1514 = vmatmul.bf16.gmra.mxu2 %v2826_v0  ;;  %v4409_v10 = vadd.f32 %v1394_v48, %v1326_v8  ;;  %v2858_v48 = vor.u32 %v3065_v24, %v2855_v39  ;;  %v3075_v8 = vld [vmem:[%s5168_s1 + $0x2a4] sm:$0xf] }
 0x186   :  { %1583 = vmatmul.bf16.gmra.mxu3 %v2830_v49  ;;  %v2891_v49 = vld [vmem:[%s5168_s1 + $0x2bc] sm:$0xf0] }
 0x187   :  { %2986 = vmatmul.msk.bf16.gmra.mxu0 %vm1020_vm0, %v2834_v5  ;;  %v3079_v5 = vld [vmem:[%s5168_s1 + $0x2c0] sm:$0xf0]  ;;  %v2894_v24 = vor.u32 %v3074_v3, %v2891_v49 }
 0x188   :  { %v1259_v14 = vpop.f32.mrf.mxu2 }
 0x189   :  { %v1260_v38 = vadd.f32 %v1259_v14, %v1191_v13  ;;  %v1328_v19 = vpop.f32.mrf.mxu3 }
 0x18a   :  { %v1192_v6 = vpop.f32.mrf.mxu1 }
 0x18b   :  { %v1329_v21 = vadd.f32 %v1328_v19, %v1260_v38  ;;  %v1193_v29 = vadd.f32 %v1192_v6, %v3982_v50  ;;  %v2870_v50 = vor.u32 %v3071_v37, %v2869_v36  ;;  %v2905_v38 = vld [vmem:[%s5168_s1 + $0x2a8] sm:$0xf]  ;;  %v3080_v19 = vld [vmem:[%s5168_s1 + $0x2c8] sm:$0xf0] }
 0x18c   :  { %v1399_v44 = vpop.f32.mrf.mxu0 }
 0x18d   :  { %v4419_v28 = vadd.f32 %v1397_v15, %v1329_v21  ;;  %v2899_v15 = vld [vmem:[%s5168_s1 + $0x2c4] sm:$0xf0] }
 0x18e   :  { %v2902_v32 = vor.u32 %v3075_v8, %v2899_v15 }
 0x190   :  { %v1261_v12 = vpop.f32.mrf.mxu2 }
 0x191   :  { %v1262_v42 = vadd.f32 %v1261_v12, %v1193_v29  ;;  %v1330_v43 = vpop.f32.mrf.mxu3 }
 0x192   :  { %v1411_v47 = vpop.f32.mrf.mxu1 }
 0x193   :  { %v1331_v52 = vadd.f32 %v1330_v43, %v1262_v42  ;;  %v1412_v60 = vadd.f32 %v1411_v47, %v4010_v30  ;;  %v2897_v30 = vld [vmem:[%s5168_s1 + $0x2a0] sm:$0xf] }
 0x194   :  { %v1618_v53 = vpop.f32.mrf.mxu0  ;;  %v2898_v39 = vor.u32 %v3079_v5, %v2897_v30 }
 0x195   :  { %1450 = vmatmul.bf16.gmra.mxu1 %v2858_v48  ;;  %1519 = vmatmul.bf16.gmra.mxu2 %v2862_v46  ;;  %v4440_v54 = vadd.f32 %v1399_v44, %v1331_v52  ;;  %v2933_v52 = vld [vmem:[%s5168_s1 + $0x2e8] sm:$0xf] }
 0x196   :  { %1588 = vmatmul.bf16.gmra.mxu3 %v2866_v57 }
 0x197   :  { %2987 = vmatmul.msk.bf16.gmra.mxu0 %vm1020_vm0, %v2870_v50  ;;  %v3083_v50 = vld [vmem:[%s5168_s1 + $0x2e4] sm:$0xf] }
 0x198   :  { %v1480_v11 = vpop.f32.mrf.mxu2 }
 0x199   :  { %v1481_v62 = vadd.f32 %v1480_v11, %v1412_v60  ;;  %v1549_v63 = vpop.f32.mrf.mxu3  ;;  %v3084_v60 = vld [vmem:[%s5168_s1 + $0x2ec] sm:$0xf]  ;;  %v2935_v11 = vld [vmem:[%s5168_s1 + $0x30c] sm:$0xf0] }
 0x19a   :  { %v1413_v4 = vpop.f32.mrf.mxu1  ;;  %v2938_v15 = vor.u32 %v3084_v60, %v2935_v11 }
 0x19b   :  { %v1550_v18 = vadd.f32 %v1549_v63, %v1481_v62  ;;  %v1414_v13 = vadd.f32 %v1413_v4, %v4037_v2  ;;  %v2906_v2 = vor.u32 %v3080_v19, %v2905_v38  ;;  %v2941_v4 = vld [vmem:[%s5168_s1 + $0x2f0] sm:$0xf] }
 0x19c   :  { %v1620_v31 = vpop.f32.mrf.mxu0 }
 0x19d   :  { %v4444_v0 = vadd.f32 %v1618_v53, %v1550_v18  ;;  %v3088_v53 = vld [vmem:[%s5168_s1 + $0x308] sm:$0xf0]  ;;  %v3089_v18 = vld [vmem:[%s5168_s1 + $0x310] sm:$0xf0] }
 0x19e   :  { %v2934_v5 = vor.u32 %v3088_v53, %v2933_v52 }
 0x19f   :  { %v1679_v14 = vsel %vm1678_vm1, %v4444_v0, 0.0 }
 0x1a0   :  { %v1482_v6 = vpop.f32.mrf.mxu2  ;;  %1680 = vadd.xlane.f32.xlu0 %v1679_v14 }
 0x1a1   :  { %v1483_v21 = vadd.f32 %v1482_v6, %v1414_v13  ;;  %v1551_v44 = vpop.f32.mrf.mxu3 }
 0x1a2   :  { %v1416_v27 = vpop.f32.mrf.mxu1 }
 0x1a3   :  { %v1552_v33 = vadd.f32 %v1551_v44, %v1483_v21  ;;  %v1417_v36 = vadd.f32 %v1416_v27, %v4046_v20  ;;  %v2927_v20 = vld [vmem:[%s5168_s1 + $0x304] sm:$0xf0] }
 0x1a4   :  { %v1623_v29 = vpop.f32.mrf.mxu0  ;;  %v2930_v30 = vor.u32 %v3083_v50, %v2927_v20 }
 0x1a5   :  { %1455 = vmatmul.bf16.gmra.mxu1 %v2894_v24  ;;  %1524 = vmatmul.bf16.gmra.mxu2 %v2898_v39  ;;  %v4473_v35 = vadd.f32 %v1620_v31, %v1552_v33  ;;  %v3092_v33 = vld [vmem:[%s5168_s1 + $0x32c] sm:$0xf] }
 0x1a6   :  { %1593 = vmatmul.bf16.gmra.mxu3 %v2902_v32 }
 0x1a7   :  { %2988 = vmatmul.msk.bf16.gmra.mxu0 %vm1020_vm0, %v2906_v2  ;;  %v1682_v37 = vsel %vm1678_vm1, %v4473_v35, 0.0 }
 0x1a8   :  { %v1485_v12 = vpop.f32.mrf.mxu2  ;;  %1683 = vadd.xlane.f32.xlu0 %v1682_v37  ;;  %v3093_v37 = vld [vmem:[%s5168_s1 + $0x334] sm:$0xf] }
 0x1a9   :  { %v1486_v42 = vadd.f32 %v1485_v12, %v1417_v36  ;;  %v1554_v43 = vpop.f32.mrf.mxu3  ;;  %v3097_v36 = vld [vmem:[%s5168_s1 + $0x350] sm:$0xf0]  ;;  %v2971_v12 = vld [vmem:[%s5168_s1 + $0x354] sm:$0xf0] }
 0x1aa   :  { %v1418_v48 = vpop.f32.mrf.mxu1  ;;  %v2974_v11 = vor.u32 %v3093_v37, %v2971_v12 }
 0x1ab   :  { %v1555_v46 = vadd.f32 %v1554_v43, %v1486_v42  ;;  %v1419_v62 = vadd.f32 %v1418_v48, %v4067_v45  ;;  %v2942_v45 = vor.u32 %v3089_v18, %v2941_v4  ;;  %v2977_v48 = vld [vmem:[%s5168_s1 + $0x338] sm:$0xf] }
 0x1ac   :  { %v1625_v47 = vpop.f32.mrf.mxu0 }
 0x1ad   :  { %v4479_v57 = vadd.f32 %v1623_v29, %v1555_v46  ;;  %v2969_v29 = vld [vmem:[%s5168_s1 + $0x330] sm:$0xf]  ;;  %v3098_v46 = vld [vmem:[%s5168_s1 + $0x358] sm:$0xf0] }
 0x1ae   :  { %v2970_v53 = vor.u32 %v3097_v36, %v2969_v29 }
 0x1af   :  { %v1685_v63 = vsel %vm1678_vm1, %v4479_v57, 0.0 }
 0x1b0   :  { %v1487_v31 = vpop.f32.mrf.mxu2  ;;  %1686 = vadd.xlane.f32.xlu1 %v1685_v63 }
 0x1b1   :  { %v1488_v3 = vadd.f32 %v1487_v31, %v1419_v62  ;;  %v1556_v49 = vpop.f32.mrf.mxu3 }
 0x1b2   :  { %v1421_v8 = vpop.f32.mrf.mxu1 }
 0x1b3   :  { %v1557_v13 = vadd.f32 %v1556_v49, %v1488_v3  ;;  %v1422_v19 = vadd.f32 %v1421_v8, %v4076_v61  ;;  %v2963_v61 = vld [vmem:[%s5168_s1 + $0x34c] sm:$0xf0] }
 0x1b4   :  { %v1628_v14 = vpop.f32.mrf.mxu0  ;;  %v2966_v52 = vor.u32 %v3092_v33, %v2963_v61  ;;  %v4561_v61 = vpop.permute.xlu0 %2382 }
 0x1b5   :  { %1460 = vmatmul.bf16.gmra.mxu1 %v2930_v30  ;;  %1529 = vmatmul.bf16.gmra.mxu2 %v2934_v5  ;;  %v4508_v38 = vadd.f32 %v1625_v47, %v1557_v13 }
 0x1b6   :  { %1598 = vmatmul.bf16.gmra.mxu3 %v2938_v15 }
 0x1b7   :  { %2989 = vmatmul.msk.bf16.gmra.mxu0 %vm1020_vm0, %v2942_v45  ;;  %v1688_v6 = vsel %vm1678_vm1, %v4508_v38, 0.0 }
 0x1b8   :  { %v1490_v21 = vpop.f32.mrf.mxu2  ;;  %1689 = vadd.xlane.f32.xlu1 %v1688_v6 }
 0x1b9   :  { %v1491_v44 = vadd.f32 %v1490_v21, %v1422_v19  ;;  %v1559_v24 = vpop.f32.mrf.mxu3 }
 0x1ba   :  { %v1423_v39 = vpop.f32.mrf.mxu1 }
 0x1bb   :  { %v1560_v27 = vadd.f32 %v1559_v24, %v1491_v44  ;;  %v1424_v42 = vadd.f32 %v1423_v39, %v4098_v59  ;;  %v2978_v59 = vor.u32 %v3098_v46, %v2977_v48  ;;  %v4554_v39 = vpop.permute.xlu1 %2377 }
 0x1bc   :  { %v1630_v32 = vpop.f32.mrf.mxu0 }
 0x1bd   :  { %v4514_v2 = vadd.f32 %v1628_v14, %v1560_v27 }
 0x1bf   :  { %v1691_v43 = vsel %vm1678_vm1, %v4514_v2, 0.0 }
 0x1c0   :  { %v1492_v47 = vpop.f32.mrf.mxu2  ;;  %1692 = vadd.xlane.f32.xlu2 %v1691_v43 }
 0x1c1   :  { %v1493_v50 = vadd.f32 %v1492_v47, %v1424_v42  ;;  %v1561_v20 = vpop.f32.mrf.mxu3 }
 0x1c2   :  { %v1426_v60 = vpop.f32.mrf.mxu1 }
 0x1c3   :  { %v1562_v62 = vadd.f32 %v1561_v20, %v1493_v50  ;;  %v1427_v18 = vadd.f32 %v1426_v60, %v4117_v41  ;;  %v4565_v48 = vpop.permute.xlu1 %2392 }
 0x1c4   :  { %v1633_v63 = vpop.f32.mrf.mxu0 }
 0x1c5   :  { %1465 = vmatmul.bf16.gmra.mxu1 %v2966_v52  ;;  %1534 = vmatmul.bf16.gmra.mxu2 %v2970_v53  ;;  %v4543_v4 = vadd.f32 %v1630_v32, %v1562_v62  ;;  %v4570_v53 = vpop.permute.xlu0 %2407 }
 0x1c6   :  { %1603 = vmatmul.bf16.gmra.mxu3 %v2974_v11 }
 0x1c7   :  { %2990 = vmatmul.msk.bf16.gmra.mxu0 %vm1020_vm0, %v2978_v59  ;;  %v1694_v31 = vsel %vm1678_vm1, %v4543_v4, 0.0 }
 0x1c8   :  { %v1495_v3 = vpop.f32.mrf.mxu2  ;;  %1695 = vadd.xlane.f32.xlu2 %v1694_v31 }
 0x1c9   :  { %v1496_v49 = vadd.f32 %v1495_v3, %v1427_v18  ;;  %v1564_v30 = vpop.f32.mrf.mxu3 }
 0x1ca   :  { %v1428_v5 = vpop.f32.mrf.mxu1 }
 0x1cb   :  { %v1565_v8 = vadd.f32 %v1564_v30, %v1496_v49  ;;  %v1429_v13 = vadd.f32 %v1428_v5, %v4141_v7 }
 0x1cc   :  { %v1635_v15 = vpop.f32.mrf.mxu0 }
 0x1cd   :  { %v4549_v45 = vadd.f32 %v1633_v63, %v1565_v8  ;;  %v4579_v8 = vpop.permute.xlu0 %2422 }
 0x1cf   :  { %v1697_v14 = vsel %vm1678_vm1, %v4549_v45, 0.0 }
 0x1d0   :  { %v1497_v19 = vpop.f32.mrf.mxu2  ;;  %1698 = vadd.xlane.f32.xlu0 %v1697_v14 }
 0x1d1   :  { %v1498_v41 = vadd.f32 %v1497_v19, %v1429_v13  ;;  %v1566_v6 = vpop.f32.mrf.mxu3  ;;  %v4583_v13 = vpop.permute.xlu2 %2387 }
 0x1d2   :  { %v1431_v21 = vpop.f32.mrf.mxu1 }
 0x1d3   :  { %v1567_v44 = vadd.f32 %v1566_v6, %v1498_v41  ;;  %v1432_v32 = vadd.f32 %v1431_v21, %v4160_v26 }
 0x1d4   :  { %v1638_v24 = vpop.f32.mrf.mxu0 }
 0x1d5   :  { %v4556_v27 = vadd.f32 %v1635_v15, %v1567_v44 }
 0x1d7   :  { %v1700_v33 = vsel %vm1678_vm1, %v4556_v27, 0.0 }
 0x1d8   :  { %v1500_v7 = vpop.f32.mrf.mxu2  ;;  %1701 = vadd.xlane.f32.xlu1 %v1700_v33 }
 0x1d9   :  { %v1501_v29 = vadd.f32 %v1500_v7, %v1432_v32  ;;  %v1569_v36 = vpop.f32.mrf.mxu3  ;;  %v4592_v7 = vpop.permute.xlu0 %2437 }
 0x1da   :  { %v1433_v37 = vpop.f32.mrf.mxu1 }
 0x1db   :  { %v1570_v12 = vadd.f32 %v1569_v36, %v1501_v29  ;;  %v1434_v46 = vadd.f32 %v1433_v37, %v4184_v55  ;;  %v4577_v55 = vpop.permute.xlu1 %2402  ;;  %v4597_v36 = vpop.permute.xlu2 %2397 }
 0x1dc   :  { %v1640_v42 = vpop.f32.mrf.mxu0 }
 0x1dd   :  { %v4563_v43 = vadd.f32 %v1638_v24, %v1570_v12 }
 0x1df   :  { %v1703_v26 = vsel %vm1678_vm1, %v4563_v43, 0.0 }
 0x1e0   :  { %v1502_v47 = vpop.f32.mrf.mxu2  ;;  %1704 = vadd.xlane.f32.xlu2 %v1703_v26 }
 0x1e1   :  { %v1503_v50 = vadd.f32 %v1502_v47, %v1434_v46  ;;  %v1571_v20 = vpop.f32.mrf.mxu3 }
 0x1e2   :  { %v1436_v52 = vpop.f32.mrf.mxu1 }
 0x1e3   :  { %v1572_v60 = vadd.f32 %v1571_v20, %v1503_v50  ;;  %v1437_v62 = vadd.f32 %v1436_v52, %v4203_v9  ;;  %v4588_v21 = vpop.permute.xlu1 %2417 }
 0x1e4   :  { %v1643_v11 = vpop.f32.mrf.mxu0 }
 0x1e5   :  { %v4572_v59 = vadd.f32 %v1640_v42, %v1572_v60 }
 0x1e7   :  { %v1706_v63 = vsel %vm1678_vm1, %v4572_v59, 0.0 }
 0x1e8   :  { %v1505_v18 = vpop.f32.mrf.mxu2  ;;  %1707 = vadd.xlane.f32.xlu0 %v1706_v63 }
 0x1e9   :  { %v1506_v31 = vadd.f32 %v1505_v18, %v1437_v62  ;;  %v1574_v3 = vpop.f32.mrf.mxu3  ;;  %v4608_v18 = vpop.permute.xlu2 %2412 }
 0x1ea   :  { %v1438_v49 = vpop.f32.mrf.mxu1 }
 0x1eb   :  { %v1575_v30 = vadd.f32 %v1574_v3, %v1506_v31  ;;  %v1439_v9 = vadd.f32 %v1438_v49, %v4227_v40  ;;  %v4599_v50 = vpop.permute.xlu1 %2432 }
 0x1ec   :  { %v1645_v5 = vpop.f32.mrf.mxu0 }
 0x1ed   :  { %v4581_v15 = vadd.f32 %v1643_v11, %v1575_v30  ;;  %v4606_v11 = vpop.permute.xlu0 %2452 }
 0x1ee   :  { %5177 = vst [vmem:[#allocation2_spill] sm:$0xff] %v4606_v11 }
 0x1ef   :  { %v1709_v14 = vsel %vm1678_vm1, %v4581_v15, 0.0 }
 0x1f0   :  { %v1507_v19 = vpop.f32.mrf.mxu2  ;;  %1710 = vadd.xlane.f32.xlu1 %v1709_v14 }
 0x1f1   :  { %v1508_v41 = vadd.f32 %v1507_v19, %v1439_v9  ;;  %v1576_v6 = vpop.f32.mrf.mxu3 }
 0x1f2   :  { %v1441_v44 = vpop.f32.mrf.mxu1 }
 0x1f3   :  { %v1577_v24 = vadd.f32 %v1576_v6, %v1508_v41  ;;  %v1442_v29 = vadd.f32 %v1441_v44, %v4243_v16 }
 0x1f4   :  { %v1648_v32 = vpop.f32.mrf.mxu0 }
 0x1f5   :  { %v4590_v33 = vadd.f32 %v1645_v5, %v1577_v24  ;;  %v4612_v5 = vpop.permute.xlu1 %2447  ;;  %v4617_v44 = vpop.permute.xlu0 %2467 }
 0x1f6   :  { %5178 = vst [vmem:[#allocation3_spill] sm:$0xff] %v4617_v44 }
 0x1f7   :  { %v1712_v40 = vsel %vm1678_vm1, %v4590_v33, 0.0 }
 0x1f8   :  { %v1510_v37 = vpop.f32.mrf.mxu2  ;;  %1713 = vadd.xlane.f32.xlu2 %v1712_v40 }
 0x1f9   :  { %v1511_v12 = vadd.f32 %v1510_v37, %v1442_v29  ;;  %v1579_v42 = vpop.f32.mrf.mxu3  ;;  %v4619_v29 = vpop.permute.xlu2 %2427 }
 0x1fa   :  { %v1443_v46 = vpop.f32.mrf.mxu1 }
 0x1fb   :  { %v1580_v26 = vadd.f32 %v1579_v42, %v1511_v12  ;;  %v1444_v52 = vadd.f32 %v1443_v46, %v4264_v23 }
 0x1fc   :  { %v1650_v47 = vpop.f32.mrf.mxu0 }
 0x1fd   :  { %v4601_v20 = vadd.f32 %v1648_v32, %v1580_v26  ;;  %v4626_v12 = vpop.permute.xlu1 %2462 }
 0x1ff   :  { %v1715_v16 = vsel %vm1678_vm1, %v4601_v20, 0.0 }
 0x200   :  { %v1512_v60 = vpop.f32.mrf.mxu2  ;;  %1716 = vadd.xlane.f32.xlu0 %v1715_v16 }
 0x201   :  { %v1513_v62 = vadd.f32 %v1512_v60, %v1444_v52  ;;  %v1581_v63 = vpop.f32.mrf.mxu3 }
 0x202   :  { %v1446_v31 = vpop.f32.mrf.mxu1 }
 0x203   :  { %v1582_v3 = vadd.f32 %v1581_v63, %v1513_v62  ;;  %v1447_v23 = vadd.f32 %v1446_v31, %v4280_v56  ;;  %v4630_v31 = vpop.permute.xlu2 %2442 }
 0x204   :  { %v1653_v49 = vpop.f32.mrf.mxu0 }
 0x205   :  { %v4610_v30 = vadd.f32 %v1650_v47, %v1582_v3 }
 0x207   :  { %v1718_v9 = vsel %vm1678_vm1, %v4610_v30, 0.0 }
 0x208   :  { %v1515_v14 = vpop.f32.mrf.mxu2  ;;  %1719 = vadd.xlane.f32.xlu1 %v1718_v9 }
 0x209   :  { %v1516_v19 = vadd.f32 %v1515_v14, %v1447_v23  ;;  %v1584_v41 = vpop.f32.mrf.mxu3 }
 0x20a   :  { %v1448_v6 = vpop.f32.mrf.mxu1 }
 0x20b   :  { %v1585_v24 = vadd.f32 %v1584_v41, %v1516_v19  ;;  %v1449_v37 = vadd.f32 %v1448_v6, %v4301_v1  ;;  %v4638_v19 = vpop.permute.xlu1 %2477 }
 0x20c   :  { %v1655_v32 = vpop.f32.mrf.mxu0  ;;  %5179 = vst [vmem:[#allocation4_spill] sm:$0xff] %v4638_v19 }
 0x20d   :  { %v4621_v40 = vadd.f32 %v1653_v49, %v1585_v24 }
 0x20f   :  { %v1721_v56 = vsel %vm1678_vm1, %v4621_v40, 0.0 }
 0x210   :  { %v1517_v42 = vpop.f32.mrf.mxu2  ;;  %1722 = vadd.xlane.f32.xlu2 %v1721_v56 }
 0x211   :  { %v1518_v46 = vadd.f32 %v1517_v42, %v1449_v37  ;;  %v1586_v26 = vpop.f32.mrf.mxu3 }
 0x212   :  { %v1451_v47 = vpop.f32.mrf.mxu1 }
 0x213   :  { %v1587_v52 = vadd.f32 %v1586_v26, %v1518_v46  ;;  %v1681_v16 = vpop.xlane.xlu0 %1680  ;;  %v1452_v1 = vadd.f32 %v1451_v47, %v4317_v25  ;;  %v4651_v47 = vpop.permute.xlu2 %2457 }
 0x214   :  { %v1658_v60 = vpop.f32.mrf.mxu0  ;;  %v1751_v62 = vmul.f32 0.020408163, %v1681_v16 }
 0x215   :  { %v4628_v63 = vadd.f32 %v1655_v32, %v1587_v52 }
 0x216   :  { %v4634_v3 = vsub.f32 %v4444_v0, %v1751_v62 }
 0x217   :  { %v1724_v49 = vsel %vm1678_vm1, %v4628_v63, 0.0 }
 0x218   :  { %v1520_v23 = vpop.f32.mrf.mxu2  ;;  %1725 = vadd.xlane.f32.xlu0 %v1724_v49  ;;  %v1799_v37 = vmul.f32 %v4634_v3, %v4634_v3 }
 0x219   :  { %v1521_v9 = vadd.f32 %v1520_v23, %v1452_v1  ;;  %v1589_v14 = vpop.f32.mrf.mxu3 }
 0x21a   :  { %v1453_v41 = vpop.f32.mrf.mxu1  ;;  %v1823_v26 = vsel %vm1678_vm1, %v1799_v37, 0.0 }
 0x21b   :  { %v1590_v6 = vadd.f32 %v1589_v14, %v1521_v9  ;;  %v1684_v24 = vpop.xlane.xlu0 %1683  ;;  %v1454_v0 = vadd.f32 %v1453_v41, %v4338_v51 }
 0x21c   :  { %v1660_v32 = vpop.f32.mrf.mxu0  ;;  %v1752_v25 = vmul.f32 0.020408163, %v1684_v24 }
 0x21d   :  { %v4642_v56 = vadd.f32 %v1658_v60, %v1590_v6 }
 0x21e   :  { %v4646_v42 = vsub.f32 %v4473_v35, %v1752_v25 }
 0x21f   :  { %v1727_v46 = vsel %vm1678_vm1, %v4642_v56, 0.0 }
 0x220   :  { %v1522_v52 = vpop.f32.mrf.mxu2  ;;  %1728 = vadd.xlane.f32.xlu1 %v1727_v46  ;;  %1824 = vadd.xlane.f32.xlu0 %v1823_v26  ;;  %v1800_v51 = vmul.f32 %v4646_v42, %v4646_v42  ;;  %v4664_v46 = vpop.permute.xlu2 %2472 }
 0x221   :  { %v1523_v16 = vadd.f32 %v1522_v52, %v1454_v0  ;;  %v1591_v62 = vpop.f32.mrf.mxu3  ;;  %5180 = vst [vmem:[#allocation5_spill] sm:$0xff] %v4664_v46 }
 0x222   :  { %v1456_v1 = vpop.f32.mrf.mxu1  ;;  %v1826_v6 = vsel %vm1678_vm1, %v1800_v51, 0.0 }
 0x223   :  { %v1592_v60 = vadd.f32 %v1591_v62, %v1523_v16  ;;  %v1687_v49 = vpop.xlane.xlu1 %1686  ;;  %v1457_v14 = vadd.f32 %v1456_v1, %v4354_v17 }
 0x224   :  { %v1663_v35 = vpop.f32.mrf.mxu0  ;;  %v1753_v23 = vmul.f32 0.020408163, %v1687_v49 }
 0x225   :  { %v4655_v9 = vadd.f32 %v1660_v32, %v1592_v60 }
 0x226   :  { %v4659_v41 = vsub.f32 %v4479_v57, %v1753_v23 }
 0x227   :  { %v1730_v24 = vsel %vm1678_vm1, %v4655_v9, 0.0 }
 0x228   :  { %v1525_v37 = vpop.f32.mrf.mxu2  ;;  %1827 = vadd.xlane.f32.xlu1 %v1826_v6  ;;  %1731 = vadd.xlane.f32.xlu2 %v1730_v24  ;;  %v1801_v17 = vmul.f32 %v4659_v41, %v4659_v41 }
 0x229   :  { %v1526_v25 = vadd.f32 %v1525_v37, %v1457_v14  ;;  %v1594_v0 = vpop.f32.mrf.mxu3 }
 0x22a   :  { %v1458_v26 = vpop.f32.mrf.mxu1  ;;  %v1829_v51 = vsel %vm1678_vm1, %v1801_v17, 0.0 }
 0x22b   :  { %v1595_v32 = vadd.f32 %v1594_v0, %v1526_v25  ;;  %v1690_v52 = vpop.xlane.xlu1 %1689  ;;  %v1459_v1 = vadd.f32 %v1458_v26, %v4375_v34 }
 0x22c   :  { %v1665_v57 = vpop.f32.mrf.mxu0  ;;  %v1754_v16 = vmul.f32 0.020408163, %v1690_v52 }
 0x22d   :  { %v4668_v62 = vadd.f32 %v1663_v35, %v1595_v32 }
 0x22e   :  { %v4672_v60 = vsub.f32 %v4508_v38, %v1754_v16 }
 0x22f   :  { %v1733_v49 = vsel %vm1678_vm1, %v4668_v62, 0.0 }
 0x230   :  { %v1527_v23 = vpop.f32.mrf.mxu2  ;;  %1734 = vadd.xlane.f32.xlu0 %v1733_v49  ;;  %1830 = vadd.xlane.f32.xlu2 %v1829_v51  ;;  %v1802_v35 = vmul.f32 %v4672_v60, %v4672_v60 }
 0x231   :  { %v1528_v14 = vadd.f32 %v1527_v23, %v1459_v1  ;;  %v1596_v6 = vpop.f32.mrf.mxu3 }
 0x232   :  { %v1461_v24 = vpop.f32.mrf.mxu1  ;;  %v1832_v52 = vsel %vm1678_vm1, %v1802_v35, 0.0 }
 0x233   :  { %v1597_v37 = vadd.f32 %v1596_v6, %v1528_v14  ;;  %v1693_v25 = vpop.xlane.xlu2 %1692  ;;  %v1462_v26 = vadd.f32 %v1461_v24, %v4388_v58 }
 0x234   :  { %v1755_v34 = vmul.f32 0.020408163, %v1693_v25  ;;  %v1668_v0 = vpop.f32.mrf.mxu0 }
 0x235   :  { %v4679_v38 = vadd.f32 %v1665_v57, %v1597_v37 }
 0x236   :  { %v4683_v32 = vsub.f32 %v4514_v2, %v1755_v34 }
 0x237   :  { %v1736_v17 = vsel %vm1678_vm1, %v4679_v38, 0.0 }
 0x238   :  { %v1530_v16 = vpop.f32.mrf.mxu2  ;;  %1833 = vadd.xlane.f32.xlu0 %v1832_v52  ;;  %1737 = vadd.xlane.f32.xlu1 %v1736_v17  ;;  %v1803_v57 = vmul.f32 %v4683_v32, %v4683_v32 }
 0x239   :  { %v1531_v1 = vadd.f32 %v1530_v16, %v1462_v26  ;;  %v1599_v49 = vpop.f32.mrf.mxu3 }
 0x23a   :  { %v1463_v51 = vpop.f32.mrf.mxu1  ;;  %v1835_v25 = vsel %vm1678_vm1, %v1803_v57, 0.0 }
 0x23b   :  { %v1600_v23 = vadd.f32 %v1599_v49, %v1531_v1  ;;  %v1696_v14 = vpop.xlane.xlu2 %1695  ;;  %v1464_v24 = vadd.f32 %v1463_v51, %v4409_v10 }
 0x23c   :  { %v1756_v58 = vmul.f32 0.020408163, %v1696_v14  ;;  %v1670_v2 = vpop.f32.mrf.mxu0 }
 0x23d   :  { %v4690_v6 = vadd.f32 %v1668_v0, %v1600_v23 }
 0x23e   :  { %v4694_v37 = vsub.f32 %v4543_v4, %v1756_v58 }
 0x23f   :  { %v1739_v35 = vsel %vm1678_vm1, %v4690_v6, 0.0 }
 0x240   :  { %v1532_v34 = vpop.f32.mrf.mxu2  ;;  %1836 = vadd.xlane.f32.xlu1 %v1835_v25  ;;  %1740 = vadd.xlane.f32.xlu2 %v1739_v35  ;;  %v1804_v1 = vmul.f32 %v4694_v37, %v4694_v37 }
 0x241   :  { %v1533_v26 = vadd.f32 %v1532_v34, %v1464_v24  ;;  %v1601_v52 = vpop.f32.mrf.mxu3 }
 0x242   :  { %v1466_v17 = vpop.f32.mrf.mxu1  ;;  %v1838_v14 = vsel %vm1678_vm1, %v1804_v1, 0.0 }
 0x243   :  { %v1602_v16 = vadd.f32 %v1601_v52, %v1533_v26  ;;  %v1699_v0 = vpop.xlane.xlu0 %1698  ;;  %v1467_v4 = vadd.f32 %v1466_v17, %v4419_v28 }
 0x244   :  { %v1757_v10 = vmul.f32 0.020408163, %v1699_v0  ;;  %v1673_v58 = vpop.f32.mrf.mxu0 }
 0x245   :  { %v4701_v49 = vadd.f32 %v1670_v2, %v1602_v16 }
 0x246   :  { %v4705_v51 = vsub.f32 %v4549_v45, %v1757_v10 }
 0x247   :  { %v1742_v23 = vsel %vm1678_vm1, %v4701_v49, 0.0 }
 0x248   :  { %v1535_v57 = vpop.f32.mrf.mxu2  ;;  %1743 = vadd.xlane.f32.xlu0 %v1742_v23  ;;  %1839 = vadd.xlane.f32.xlu2 %v1838_v14  ;;  %v1805_v2 = vmul.f32 %v4705_v51, %v4705_v51 }
 0x249   :  { %v1536_v24 = vadd.f32 %v1535_v57, %v1467_v4  ;;  %v1604_v25 = vpop.f32.mrf.mxu3 }
 0x24a   :  { %v1468_v28 = vpop.f32.mrf.mxu1  ;;  %v1841_v0 = vsel %vm1678_vm1, %v1805_v2, 0.0 }
 0x24b   :  { %v1605_v35 = vadd.f32 %v1604_v25, %v1536_v24  ;;  %v1702_v34 = vpop.xlane.xlu1 %1701  ;;  %v1469_v52 = vadd.f32 %v1468_v28, %v4440_v54 }
 0x24c   :  { %v1758_v26 = vmul.f32 0.020408163, %v1702_v34  ;;  %v1675_v23 = vpop.f32.mrf.mxu0 }
 0x24d   :  { %v4712_v45 = vadd.f32 %v1673_v58, %v1605_v35 }
 0x24e   :  { %v4716_v17 = vsub.f32 %v4556_v27, %v1758_v26 }
 0x24f   :  { %v1745_v16 = vsel %vm1678_vm1, %v4712_v45, 0.0 }
 0x250   :  { %v1537_v1 = vpop.f32.mrf.mxu2  ;;  %1746 = vadd.xlane.f32.xlu1 %v1745_v16  ;;  %1842 = vadd.xlane.f32.xlu0 %v1841_v0  ;;  %v1806_v58 = vmul.f32 %v4716_v17, %v4716_v17 }
 0x251   :  { %v1538_v10 = vadd.f32 %v1537_v1, %v1469_v52  ;;  %v1606_v4 = vpop.f32.mrf.mxu3 }
 0x252   :  { %v1844_v25 = vsel %vm1678_vm1, %v1806_v58, 0.0 }
 0x253   :  { %v1607_v14 = vadd.f32 %v1606_v4, %v1538_v10  ;;  %v1705_v57 = vpop.xlane.xlu2 %1704 }
 0x254   :  { %v1759_v54 = vmul.f32 0.020408163, %v1705_v57 }
 0x255   :  { %v4723_v24 = vadd.f32 %v1675_v23, %v1607_v14 }
 0x256   :  { %v4726_v27 = vsub.f32 %v4563_v43, %v1759_v54 }
 0x257   :  { %v1748_v35 = vsel %vm1678_vm1, %v4723_v24, 0.0 }
 0x258   :  { %1845 = vadd.xlane.f32.xlu1 %v1844_v25  ;;  %1749 = vadd.xlane.f32.xlu2 %v1748_v35  ;;  %v1807_v2 = vmul.f32 %v4726_v27, %v4726_v27 }
 0x25a   :  { %v1847_v52 = vsel %vm1678_vm1, %v1807_v2, 0.0 }
 0x25b   :  { %v1708_v34 = vpop.xlane.xlu0 %1707 }
 0x25c   :  { %v1760_v28 = vmul.f32 0.020408163, %v1708_v34 }
 0x25e   :  { %v4734_v26 = vsub.f32 %v4572_v59, %v1760_v28 }
 0x260   :  { %1848 = vadd.xlane.f32.xlu2 %v1847_v52  ;;  %v1808_v43 = vmul.f32 %v4734_v26, %v4734_v26 }
 0x262   :  { %v1850_v16 = vsel %vm1678_vm1, %v1808_v43, 0.0 }
 0x263   :  { %v1711_v0 = vpop.xlane.xlu1 %1710  ;;  %1851 = vadd.xlane.f32.xlu0 %v1850_v16 }
 0x264   :  { %v1761_v1 = vmul.f32 0.020408163, %v1711_v0 }
 0x266   :  { %v4741_v10 = vsub.f32 %v4581_v15, %v1761_v1 }
 0x268   :  { %v1809_v4 = vmul.f32 %v4741_v10, %v4741_v10 }
 0x26a   :  { %v1853_v59 = vsel %vm1678_vm1, %v1809_v4, 0.0 }
 0x26b   :  { %1854 = vadd.xlane.f32.xlu1 %v1853_v59  ;;  %v1714_v23 = vpop.xlane.xlu2 %1713 }
 0x26c   :  { %v1762_v14 = vmul.f32 0.020408163, %v1714_v23 }
 0x26e   :  { %v4747_v57 = vsub.f32 %v4590_v33, %v1762_v14  ;;  %v3204_v14 = vmov 0  }
 0x26f   :  { %3128 = vset.pattern.permute.xlu0 %v3204_v14  ;;  %3129 = vset.pattern.permute.xlu1 %v3204_v14 }
 0x270   :  { %v1810_v58 = vmul.f32 %v4747_v57, %v4747_v57  ;;  %3130 = vset.pattern.permute.xlu2 %v3204_v14 }
 0x272   :  { %v1856_v54 = vsel %vm1678_vm1, %v1810_v58, 0.0 }
 0x273   :  { %v1717_v25 = vpop.xlane.xlu0 %1716  ;;  %1857 = vadd.xlane.f32.xlu2 %v1856_v54 }
 0x274   :  { %v1763_v15 = vmul.f32 0.020408163, %v1717_v25 }
 0x276   :  { %v4753_v35 = vsub.f32 %v4601_v20, %v1763_v15 }
 0x278   :  { %v1811_v34 = vmul.f32 %v4753_v35, %v4753_v35 }
 0x27a   :  { %v1859_v2 = vsel %vm1678_vm1, %v1811_v34, 0.0 }
 0x27b   :  { %v1720_v28 = vpop.xlane.xlu1 %1719  ;;  %1860 = vadd.xlane.f32.xlu0 %v1859_v2 }
 0x27c   :  { %v1764_v33 = vmul.f32 0.020408163, %v1720_v28 }
 0x27e   :  { %v4759_v52 = vsub.f32 %v4610_v30, %v1764_v33 }
 0x280   :  { %v1812_v43 = vmul.f32 %v4759_v52, %v4759_v52 }
 0x282   :  { %v1862_v16 = vsel %vm1678_vm1, %v1812_v43, 0.0 }
 0x283   :  { %1863 = vadd.xlane.f32.xlu1 %v1862_v16  ;;  %v1723_v0 = vpop.xlane.xlu2 %1722 }
 0x284   :  { %v1765_v20 = vmul.f32 0.020408163, %v1723_v0 }
 0x286   :  { %v4765_v1 = vsub.f32 %v4621_v40, %v1765_v20 }
 0x288   :  { %v1813_v4 = vmul.f32 %v4765_v1, %v4765_v1 }
 0x28a   :  { %v1865_v59 = vsel %vm1678_vm1, %v1813_v4, 0.0 }
 0x28b   :  { %v1726_v23 = vpop.xlane.xlu0 %1725  ;;  %1866 = vadd.xlane.f32.xlu2 %v1865_v59 }
 0x28c   :  { %v1766_v30 = vmul.f32 0.020408163, %v1726_v23 }
 0x28e   :  { %v4771_v58 = vsub.f32 %v4628_v63, %v1766_v30 }
 0x290   :  { %v1814_v54 = vmul.f32 %v4771_v58, %v4771_v58 }
 0x292   :  { %v1868_v40 = vsel %vm1678_vm1, %v1814_v54, 0.0 }
 0x293   :  { %v1729_v25 = vpop.xlane.xlu1 %1728  ;;  %1869 = vadd.xlane.f32.xlu0 %v1868_v40  ;;  %v1825_v15 = vpop.xlane.xlu0 %1824 }
 0x294   :  { %v1767_v34 = vmul.f32 0.020408163, %v1729_v25  ;;  %v1895_v2 = vmul.f32 0.020408163, %v1825_v15 }
 0x296   :  { %v4777_v28 = vsub.f32 %v4642_v56, %v1767_v34  ;;  %v1919_v33 = vadd.f32 1e-05, %v1895_v2 }
 0x298   :  { %3134 = vrsqrt.f32 %v1919_v33  ;;  %v1815_v43 = vmul.f32 %v4777_v28, %v4777_v28  ;;  %vm1949_vm3 = vweird.f32 %v1919_v33 }
 0x29a   :  { %v1871_v63 = vsel %vm1678_vm1, %v1815_v43, 0.0 }
 0x29b   :  { %1872 = vadd.xlane.f32.xlu1 %v1871_v63  ;;  %v1828_v16 = vpop.xlane.xlu1 %1827  ;;  %v1732_v0 = vpop.xlane.xlu2 %1731 }
 0x29c   :  { %v1896_v20 = vmul.f32 0.020408163, %v1828_v16  ;;  %v1768_v4 = vmul.f32 0.020408163, %v1732_v0 }
 0x29e   :  { %v3135_v59 = vpop.eup %3134  ;;  %v1920_v23 = vadd.f32 1e-05, %v1896_v20  ;;  %v4783_v30 = vsub.f32 %v4655_v9, %v1768_v4  ;;  %v3182_v4 = vld [vmem:[%s5169_s2] sm:$0xff] }
 0x29f   :  { %v1944_v14 = vmul.f32 %v3135_v59, %v1919_v33  ;;  %vm1950_vm2 = vweird.f32 %v3135_v59 }
 0x2a0   :  { %3136 = vrsqrt.f32 %v1920_v23  ;;  %v1816_v56 = vmul.f32 %v4783_v30, %v4783_v30  ;;  %vm1951_vm4 = vmor %vm1949_vm3, %vm1950_vm2  ;;  %vm1959_vm6 = vweird.f32 %v1920_v23 }
 0x2a1   :  { %v1945_v54 = vmul.f32 %v3135_v59, %v1944_v14 }
 0x2a2   :  { %v1874_v40 = vsel %vm1678_vm1, %v1816_v56, 0.0 }
 0x2a3   :  { %v1946_v25 = vmul.f32 0.5, %v1945_v54  ;;  %1875 = vadd.xlane.f32.xlu2 %v1874_v40  ;;  %v1831_v15 = vpop.xlane.xlu2 %1830 }
 0x2a4   :  { %v1897_v34 = vmul.f32 0.020408163, %v1831_v15 }
 0x2a5   :  { %v1947_v2 = vsub.f32 1.5, %v1946_v25 }
 0x2a6   :  { %v3137_v43 = vpop.eup %3136  ;;  %v1921_v63 = vadd.f32 1e-05, %v1897_v34 }
 0x2a7   :  { %v1954_v16 = vmul.f32 %v3137_v43, %v1920_v23  ;;  %v1948_v9 = vmul.f32 %v3135_v59, %v1947_v2  ;;  %vm1960_vm5 = vweird.f32 %v3137_v43  ;;  %v3184_v23 = vld [vmem:[%s5169_s2 + $0x10] sm:$0xff] }
 0x2a8   :  { %3138 = vrsqrt.f32 %v1921_v63  ;;  %vm1961_vm7 = vmor %vm1959_vm6, %vm1960_vm5  ;;  %vm1969_vm9 = vweird.f32 %v1921_v63 }
 0x2a9   :  { %v1955_v0 = vmul.f32 %v3137_v43, %v1954_v16  ;;  %v1952_v20 = vsel %vm1951_vm4, %v3135_v59, %v1948_v9  ;;  %v3183_v59 = vld [vmem:[%s5169_s2 + $0x8] sm:$0xff] }
 0x2aa   :  { %v2207_v14 = vmul.f32 %v3182_v4, %v1952_v20 }
 0x2ab   :  { %v1956_v56 = vmul.f32 0.5, %v1955_v0  ;;  %v1738_v34 = vpop.xlane.xlu1 %1737 }
 0x2ac   :  { %2233 = vperm.xlu0 %3128, %v2207_v14  }
 0x2ad   :  { %v1957_v54 = vsub.f32 1.5, %v1956_v56 }
 0x2ae   :  { %v3139_v40 = vpop.eup %3138 }
 0x2af   :  { %v1964_v25 = vmul.f32 %v3139_v40, %v1921_v63  ;;  %v1958_v15 = vmul.f32 %v3137_v43, %v1957_v54  ;;  %vm1970_vm8 = vweird.f32 %v3139_v40 }
 0x2b0   :  { %vm1971_vm10 = vmor %vm1969_vm9, %vm1970_vm8 }
 0x2b1   :  { %v1965_v33 = vmul.f32 %v3139_v40, %v1964_v25  ;;  %v1962_v2 = vsel %vm1961_vm7, %v3137_v43, %v1958_v15  ;;  %v1735_v43 = vpop.xlane.xlu0 %1734 }
 0x2b2   :  { %v2208_v16 = vmul.f32 %v3183_v59, %v1962_v2  ;;  %v1769_v15 = vmul.f32 0.020408163, %v1735_v43 }
 0x2b3   :  { %v1966_v9 = vmul.f32 0.5, %v1965_v33  ;;  %v1837_v56 = vpop.xlane.xlu1 %1836 }
 0x2b4   :  { %2238 = vperm.xlu1 %3129, %v2208_v16   ;;  %v4800_v59 = vsub.f32 %v4668_v62, %v1769_v15  ;;  %v1899_v63 = vmul.f32 0.020408163, %v1837_v56  ;;  %v1741_v16 = vpop.xlane.xlu2 %1740 }
 0x2b5   :  { %v1967_v20 = vsub.f32 1.5, %v1966_v9 }
 0x2b6   :  { %5181 = vst [vmem:[#allocation6_spill] sm:$0xff] %v4800_v59 }
 0x2b7   :  { %v1968_v0 = vmul.f32 %v3139_v40, %v1967_v20  ;;  %v1770_v20 = vmul.f32 0.020408163, %v1738_v34 }
 0x2b9   :  { %v1972_v4 = vsel %vm1971_vm10, %v3139_v40, %v1968_v0  ;;  %v1834_v25 = vpop.xlane.xlu0 %1833  ;;  %v4802_v0 = vadd.f32 1e-05, %v1899_v63  ;;  %v4807_v43 = vsub.f32 %v4679_v38, %v1770_v20 }
 0x2ba   :  { %v2209_v14 = vmul.f32 %v3184_v23, %v1972_v4  ;;  %v1817_v23 = vmul.f32 %v4800_v59, %v4800_v59 }
 0x2bb   :  { %5182 = vst [vmem:[#allocation7_spill] sm:$0xff] %v4807_v43  ;;  %vm1989_vm15 = vweird.f32 %v4802_v0 }
 0x2bc   :  { %2243 = vperm.xlu2 %3130, %v2209_v14   ;;  %v1898_v14 = vmul.f32 0.020408163, %v1834_v25  ;;  %v1877_v56 = vsel %vm1678_vm1, %v1817_v23, 0.0  ;;  %v1818_v25 = vmul.f32 %v4807_v43, %v4807_v43 }
 0x2be   :  { %v4814_v34 = vadd.f32 1e-05, %v1898_v14  ;;  %v1880_v23 = vsel %vm1678_vm1, %v1818_v25, 0.0 }
 0x2c0   :  { %vm1979_vm6 = vweird.f32 %v4814_v34 }
 0x2c1   :  { %v1744_v40 = vpop.xlane.xlu0 %1743 }
 0x2c2   :  { %v1772_v4 = vmul.f32 0.020408163, %v1744_v40 }
 0x2c3   :  { %v4797_v54 = vpop.xlane.xlu1 %1746 }
 0x2c4   :  { %v4811_v62 = vsub.f32 %v4701_v49, %v1772_v4 }
 0x2c6   :  { %5183 = vst [vmem:[#allocation8_spill] sm:$0xff] %v4811_v62  ;;  %v1820_v38 = vmul.f32 %v4811_v62, %v4811_v62 }
 0x2c8   :  { %v1886_v14 = vsel %vm1678_vm1, %v1820_v38, 0.0 }
 0x2cb   :  { %v1846_v33 = vpop.xlane.xlu1 %1845 }
 0x2cc   :  { %v1902_v2 = vmul.f32 0.020408163, %v1846_v33  ;;  %v1840_v33 = vpop.xlane.xlu2 %1839 }
 0x2cd   :  { %v1900_v40 = vmul.f32 0.020408163, %v1840_v33 }
 0x2ce   :  { %v1926_v9 = vadd.f32 1e-05, %v1902_v2  ;;  %v1771_v2 = vmul.f32 0.020408163, %v1741_v16 }
 0x2d0   :  { %3140 = vrsqrt.f32 %v1926_v9  ;;  %v4822_v49 = vsub.f32 %v4690_v6, %v1771_v2  ;;  %vm2019_vm12 = vweird.f32 %v1926_v9 }
 0x2d1   :  { %3142 = vrsqrt.f32 %v4802_v0 }
 0x2d2   :  { %3144 = vrsqrt.f32 %v4814_v34  ;;  %5184 = vst [vmem:[#allocation9_spill] sm:$0xff] %v4822_v49  ;;  %v1819_v33 = vmul.f32 %v4822_v49, %v4822_v49 }
 0x2d4   :  { %v1883_v25 = vsel %vm1678_vm1, %v1819_v33, 0.0 }
 0x2d6   :  { %v3141_v15 = vpop.eup %3140  ;;  %1878 = vadd.xlane.f32.xlu0 %v1877_v56  ;;  %v4827_v56 = vadd.f32 1e-05, %v1900_v40 }
 0x2d7   :  { %v2014_v63 = vmul.f32 %v3141_v15, %v1926_v9  ;;  %v3143_v20 = vpop.eup %3142  ;;  %vm2020_vm11 = vweird.f32 %v3141_v15 }
 0x2d8   :  { %v1984_v16 = vmul.f32 %v3143_v20, %v4802_v0  ;;  %v3145_v46 = vpop.eup %3144  ;;  %3146 = vrsqrt.f32 %v4827_v56  ;;  %vm2021_vm13 = vmor %vm2019_vm12, %vm2020_vm11  ;;  %vm1990_vm14 = vweird.f32 %v3143_v20  ;;  %vm1999_vm9 = vweird.f32 %v4827_v56 }
 0x2d9   :  { %v2015_v4 = vmul.f32 %v3141_v15, %v2014_v63  ;;  %v1974_v63 = vmul.f32 %v3145_v46, %v4814_v34  ;;  %vm1991_vm0 = vmor %vm1989_vm15, %vm1990_vm14  ;;  %vm1980_vm4 = vweird.f32 %v3145_v46 }
 0x2da   :  { %v1985_v2 = vmul.f32 %v3143_v20, %v1984_v16  ;;  %vm1981_vm7 = vmor %vm1979_vm6, %vm1980_vm4 }
 0x2db   :  { %v2016_v43 = vmul.f32 0.5, %v2015_v4 }
 0x2dc   :  { %v1986_v40 = vmul.f32 0.5, %v1985_v2 }
 0x2dd   :  { %v2017_v38 = vsub.f32 1.5, %v2016_v43 }
 0x2de   :  { %1881 = vadd.xlane.f32.xlu1 %v1880_v23  ;;  %v1855_v22 = vpop.xlane.xlu1 %1854  ;;  %1887 = vadd.xlane.f32.xlu0 %v1886_v14  ;;  %v3147_v23 = vpop.eup %3146  ;;  %v1975_v14 = vmul.f32 %v3145_v46, %v1974_v63  ;;  %v1987_v59 = vsub.f32 1.5, %v1986_v40 }
 0x2df   :  { %v1905_v62 = vmul.f32 0.020408163, %v1855_v22  ;;  %v2018_v44 = vmul.f32 %v3141_v15, %v2017_v38  ;;  %v1994_v4 = vmul.f32 %v3147_v23, %v4827_v56  ;;  %vm2000_vm8 = vweird.f32 %v3147_v23 }
 0x2e0   :  { %v1988_v33 = vmul.f32 %v3143_v20, %v1987_v59  ;;  %vm2001_vm10 = vmor %vm1999_vm9, %vm2000_vm8 }
 0x2e1   :  { %v1929_v6 = vadd.f32 1e-05, %v1905_v62  ;;  %v1976_v62 = vmul.f32 0.5, %v1975_v14  ;;  %v2022_v49 = vsel %vm2021_vm13, %v3141_v15, %v2018_v44  ;;  %v1995_v2 = vmul.f32 %v3147_v23, %v1994_v4 }
 0x2e2   :  { %v1992_v9 = vsel %vm1991_vm0, %v3143_v20, %v1988_v33 }
 0x2e3   :  { %3148 = vrsqrt.f32 %v1929_v6  ;;  %v1977_v43 = vsub.f32 1.5, %v1976_v62  ;;  %vm2049_vm3 = vweird.f32 %v1929_v6  ;;  %v1996_v44 = vmul.f32 0.5, %v1995_v2 }
 0x2e5   :  { %1884 = vadd.xlane.f32.xlu2 %v1883_v25  ;;  %v3185_v25 = vld [vmem:[%s5169_s2 + $0x38] sm:$0xff]  ;;  %v1978_v59 = vmul.f32 %v3145_v46, %v1977_v43  ;;  %v1997_v20 = vsub.f32 1.5, %v1996_v44  ;;  %v1843_v43 = vpop.xlane.xlu0 %1842 }
 0x2e6   :  { %v2214_v38 = vmul.f32 %v3185_v25, %v2022_v49 }
 0x2e7   :  { %v1982_v4 = vsel %vm1981_vm7, %v3145_v46, %v1978_v59  ;;  %v1998_v34 = vmul.f32 %v3147_v23, %v1997_v20  ;;  %v3189_v46 = vld [vmem:[%s5169_s2 + $0x28] sm:$0xff] }
 0x2e9   :  { %v3149_v22 = vpop.eup %3148 }
 0x2ea   :  { %v2044_v19 = vmul.f32 %v3149_v22, %v1929_v6  ;;  %vm2050_vm2 = vweird.f32 %v3149_v22  ;;  %v3187_v6 = vld [vmem:[%s5169_s2 + $0x50] sm:$0xff] }
 0x2eb   :  { %vm2051_vm5 = vmor %vm2049_vm3, %vm2050_vm2 }
 0x2ec   :  { %v2045_v16 = vmul.f32 %v3149_v22, %v2044_v19  ;;  %v4839_v19 = vpop.xlane.xlu2 %1749 }
 0x2ed   :  { %v1852_v44 = vpop.xlane.xlu0 %1851 }
 0x2ee   :  { %v2046_v11 = vmul.f32 0.5, %v2045_v16 }
 0x2f0   :  { %v2047_v63 = vsub.f32 1.5, %v2046_v11  ;;  %v3186_v11 = vld [vmem:[%s5169_s2 + $0x20] sm:$0xff] }
 0x2f1   :  { %v2211_v0 = vmul.f32 %v3186_v11, %v1992_v9 }
 0x2f2   :  { %2268 = vperm.xlu0 %3128, %v2214_v38   ;;  %v2048_v40 = vmul.f32 %v3149_v22, %v2047_v63  ;;  %v2002_v63 = vsel %vm2001_vm10, %v3147_v23, %v1998_v34  ;;  %v3190_v23 = vld [vmem:[%s5169_s2 + $0x68] sm:$0xff] }
 0x2f3   :  { %v2212_v9 = vmul.f32 %v3189_v46, %v2002_v63 }
 0x2f4   :  { %v2052_v15 = vsel %vm2051_vm5, %v3149_v22, %v2048_v40  ;;  %v3188_v22 = vld [vmem:[%s5169_s2 + $0x18] sm:$0xff]  ;;  %v1849_v2 = vpop.xlane.xlu2 %1848 }
 0x2f5   :  { %v2217_v62 = vmul.f32 %v3187_v6, %v2052_v15  ;;  %v2210_v33 = vmul.f32 %v3188_v22, %v1982_v4  ;;  %v1901_v4 = vmul.f32 0.020408163, %v1843_v43 }
 0x2f6   :  { %v1864_v49 = vpop.xlane.xlu1 %1863 }
 0x2f7   :  { %v1908_v14 = vmul.f32 0.020408163, %v1864_v49  ;;  %2253 = vperm.xlu1 %3129, %v2211_v0   ;;  %v1861_v49 = vpop.xlane.xlu0 %1860 }
 0x2f9   :  { %v1932_v16 = vadd.f32 1e-05, %v1908_v14 }
 0x2fa   :  { %2283 = vperm.xlu0 %3128, %v2217_v62  }
 0x2fb   :  { %3150 = vrsqrt.f32 %v1932_v16  ;;  %vm2079_vm12 = vweird.f32 %v1932_v16 }
 0x2fc   :  { %v1858_v59 = vpop.xlane.xlu2 %1857 }
 0x2fd   :  { %2248 = vperm.xlu2 %3130, %v2210_v33   ;;  %v1773_v33 = vmul.f32 0.020408163, %v4797_v54 }
 0x301   :  { %v3151_v25 = vpop.eup %3150 }
 0x302   :  { %v2074_v38 = vmul.f32 %v3151_v25, %v1932_v16  ;;  %vm2080_vm11 = vweird.f32 %v3151_v25  ;;  %v4861_v16 = vadd.f32 1e-05, %v1901_v4 }
 0x303   :  { %vm2081_vm13 = vmor %vm2079_vm12, %vm2080_vm11 }
 0x304   :  { %v2075_v40 = vmul.f32 %v3151_v25, %v2074_v38  ;;  %v4858_v20 = vpop.xlane.xlu2 %1866  ;;  %v1904_v38 = vmul.f32 0.020408163, %v1852_v44  ;;  %vm2009_vm3 = vweird.f32 %v4861_v16 }
 0x305   :  { %2258 = vperm.xlu2 %3130, %v2212_v9  }
 0x306   :  { %v2076_v11 = vmul.f32 0.5, %v2075_v40  ;;  %v1870_v34 = vpop.xlane.xlu0 %1869  ;;  %v1903_v40 = vmul.f32 0.020408163, %v1849_v2  ;;  %v1907_v2 = vmul.f32 0.020408163, %v1861_v49 }
 0x308   :  { %v2077_v0 = vsub.f32 1.5, %v2076_v11  ;;  %v4871_v11 = vadd.f32 1e-05, %v1904_v38  ;;  %v4891_v49 = vadd.f32 1e-05, %v1907_v2 }
 0x30a   :  { %v2078_v15 = vmul.f32 %v3151_v25, %v2077_v0  ;;  %vm2039_vm6 = vweird.f32 %v4871_v11  ;;  %vm2069_vm12 = vweird.f32 %v4891_v49 }
 0x30c   :  { %v2082_v56 = vsel %vm2081_vm13, %v3151_v25, %v2078_v15  ;;  %v4866_v25 = vsub.f32 %v4712_v45, %v1773_v33  ;;  %v1774_v33 = vmul.f32 0.020408163, %v4839_v19 }
 0x30d   :  { %v2220_v14 = vmul.f32 %v3190_v23, %v2082_v56 }
 0x30e   :  { %v1873_v6 = vpop.xlane.xlu1 %1872  ;;  %v1821_v43 = vmul.f32 %v4866_v25, %v4866_v25  ;;  %v4899_v19 = vsub.f32 %v4723_v24, %v1774_v33 }
 0x30f   :  { %v1911_v62 = vmul.f32 0.020408163, %v1873_v6  ;;  %2298 = vperm.xlu0 %3128, %v2220_v14   ;;  %v4875_v14 = vadd.f32 1e-05, %v1903_v40 }
 0x310   :  { %v1889_v6 = vsel %vm1678_vm1, %v1821_v43, 0.0 }
 0x311   :  { %v1935_v22 = vadd.f32 1e-05, %v1911_v62  ;;  %vm2029_vm9 = vweird.f32 %v4875_v14 }
 0x313   :  { %3152 = vrsqrt.f32 %v1935_v22  ;;  %vm2109_vm15 = vweird.f32 %v1935_v22 }
 0x314   :  { %3154 = vrsqrt.f32 %v4861_v16 }
 0x315   :  { %3156 = vrsqrt.f32 %v4871_v11 }
 0x316   :  { %v4863_v63 = vpop.xlane.xlu2 %1875  ;;  %3158 = vrsqrt.f32 %v4875_v14 }
 0x317   :  { %3160 = vrsqrt.f32 %v4891_v49 }
 0x319   :  { %v3153_v46 = vpop.eup %3152 }
 0x31a   :  { %v2104_v9 = vmul.f32 %v3153_v46, %v1935_v22  ;;  %v4873_v0 = vpop.eup %3154  ;;  %vm2110_vm14 = vweird.f32 %v3153_v46 }
 0x31b   :  { %v2004_v4 = vmul.f32 %v4873_v0, %v4861_v16  ;;  %vm2111_vm0 = vmor %vm2109_vm15, %vm2110_vm14  ;;  %v4904_v40 = vpop.eup %3156  ;;  %vm2010_vm2 = vweird.f32 %v4873_v0 }
 0x31c   :  { %v2105_v54 = vmul.f32 %v3153_v46, %v2104_v9  ;;  %vm2011_vm4 = vmor %vm2009_vm3, %vm2010_vm2  ;;  %vm2040_vm5 = vweird.f32 %v4904_v40 }
 0x31d   :  { %vm2041_vm8 = vmor %vm2039_vm6, %vm2040_vm5 }
 0x31e   :  { %v2106_v15 = vmul.f32 0.5, %v2105_v54  ;;  %v2234_v56 = vpop.permute.xlu0 %2233  ;;  %v2244_v23 = vpop.permute.xlu2 %2243 }
 0x31f   :  { %v2351_v45 = vmul.f32 %v2234_v56, %v4634_v3  ;;  %v2353_v44 = vmul.f32 %v2244_v23, %v4659_v41  ;;  %v1906_v41 = vmul.f32 0.020408163, %v1858_v59  ;;  %v3191_v59 = vld [vmem:[%s5169_s2 + $0x80] sm:$0xff]  ;;  %v4910_v56 = vpop.eup %3158  ;;  %v2034_v23 = vmul.f32 %v4904_v40, %v4871_v11 }
 0x320   :  { %v2107_v62 = vsub.f32 1.5, %v2106_v15  ;;  %vm2030_vm7 = vweird.f32 %v4910_v56 }
 0x321   :  { %v2495_v38 = vadd.f32 %v4554_v39, %v2351_v45  ;;  %v2497_v9 = vadd.f32 %v4583_v13, %v2353_v44  ;;  %1890 = vadd.xlane.f32.xlu1 %v1889_v6  ;;  %v2005_v13 = vmul.f32 %v4873_v0, %v2004_v4  ;;  %v4906_v54 = vadd.f32 1e-05, %v1906_v41  ;;  %v4929_v4 = vpop.eup %3160  ;;  %vm2031_vm10 = vmor %vm2029_vm9, %vm2030_vm7 }
 0x322   :  { %v2108_v3 = vmul.f32 %v3153_v46, %v2107_v62  ;;  %v1822_v44 = vmul.f32 %v4899_v19, %v4899_v19  ;;  %vm2070_vm11 = vweird.f32 %v4929_v4 }
 0x323   :  { %2519 = vst.msk [vmem:[%s5170_s3] sm:$0xff] %vm1678_vm1, %v2495_v38  ;;  %v2006_v24 = vmul.f32 0.5, %v2005_v13  ;;  %3162 = vrsqrt.f32 %v4906_v54  ;;  %vm2071_vm14 = vmor %vm2069_vm12, %vm2070_vm11  ;;  %vm2059_vm15 = vweird.f32 %v4906_v54 }
 0x324   :  { %2521 = vst.msk [vmem:[%s5170_s3 + $0x10] sm:$0xff] %vm1678_vm1, %v2497_v9  ;;  %v2112_v39 = vsel %vm2111_vm0, %v3153_v46, %v2108_v3  ;;  %v1910_v46 = vmul.f32 0.020408163, %v1870_v34  ;;  %v1909_v34 = vmul.f32 0.020408163, %v4858_v20  ;;  %v1892_v62 = vsel %vm1678_vm1, %v1822_v44, 0.0 }
 0x325   :  { %v2223_v22 = vmul.f32 %v3191_v59, %v2112_v39  ;;  %v2007_v2 = vsub.f32 1.5, %v2006_v24  ;;  %v2064_v3 = vmul.f32 %v4929_v4, %v4891_v49  ;;  %v1912_v59 = vmul.f32 0.020408163, %v4863_v63  ;;  %v3195_v49 = vld [vmem:[%s5169_s2 + $0x60] sm:$0xff] }
 0x326   :  { %v2239_v43 = vpop.permute.xlu1 %2238  ;;  %v4925_v6 = vadd.f32 1e-05, %v1910_v46  ;;  %v4932_v38 = vadd.f32 1e-05, %v1909_v34 }
 0x327   :  { %v2352_v15 = vmul.f32 %v2239_v43, %v4646_v42  ;;  %2313 = vperm.xlu0 %3128, %v2223_v22   ;;  %v2024_v42 = vmul.f32 %v4910_v56, %v4875_v14  ;;  %v2008_v41 = vmul.f32 %v4873_v0, %v2007_v2  ;;  %v2065_v43 = vmul.f32 %v4929_v4, %v2064_v3  ;;  %v3194_v14 = vld [vmem:[%s5169_s2 + $0x40] sm:$0xff] }
 0x328   :  { %3164 = vrsqrt.f32 %v4925_v6  ;;  %v4951_v16 = vadd.f32 1e-05, %v1912_v59  ;;  %vm2099_vm3 = vweird.f32 %v4925_v6  ;;  %vm2089_vm6 = vweird.f32 %v4932_v38 }
 0x329   :  { %v2496_v45 = vadd.f32 %v4561_v61, %v2352_v15  ;;  %v2035_v61 = vmul.f32 %v4904_v40, %v2034_v23  ;;  %v2025_v33 = vmul.f32 %v4910_v56, %v2024_v42  ;;  %v4935_v9 = vpop.eup %3162  ;;  %3166 = vrsqrt.f32 %v4932_v38 }
 0x32a   :  { %v2054_v13 = vmul.f32 %v4935_v9, %v4906_v54  ;;  %v2012_v15 = vsel %vm2011_vm4, %v4873_v0, %v2008_v41  ;;  %v2066_v63 = vmul.f32 0.5, %v2065_v43  ;;  %3168 = vrsqrt.f32 %v4951_v16  ;;  %v3193_v41 = vld [vmem:[%s5169_s2 + $0x48] sm:$0xff] }
 0x32b   :  { %2520 = vst.msk [vmem:[%s5170_s3 + $0x8] sm:$0xff] %vm1678_vm1, %v2496_v45  ;;  %v2036_v20 = vmul.f32 0.5, %v2035_v61  ;;  %v2026_v39 = vmul.f32 0.5, %v2025_v33  ;;  %v3192_v45 = vld [vmem:[%s5169_s2 + $0x30] sm:$0xff]  ;;  %vm2060_vm13 = vweird.f32 %v4935_v9  ;;  %vm2119_vm9 = vweird.f32 %v4951_v16 }
 0x32c   :  { %v2055_v23 = vmul.f32 %v4935_v9, %v2054_v13  ;;  %v2213_v44 = vmul.f32 %v3192_v45, %v2012_v15  ;;  %vm2061_vm0 = vmor %vm2059_vm15, %vm2060_vm13 }
 0x32d   :  { %v2037_v22 = vsub.f32 1.5, %v2036_v20  ;;  %v2027_v24 = vsub.f32 1.5, %v2026_v39 }
 0x32e   :  { %1893 = vadd.xlane.f32.xlu2 %v1892_v62  ;;  %v4948_v46 = vpop.eup %3164  ;;  %v2056_v2 = vmul.f32 0.5, %v2055_v23  ;;  %v2067_v62 = vsub.f32 1.5, %v2066_v63 }
 0x32f   :  { %v2094_v42 = vmul.f32 %v4948_v46, %v4925_v6  ;;  %v2038_v0 = vmul.f32 %v4904_v40, %v2037_v22  ;;  %v4960_v34 = vpop.eup %3166  ;;  %v2028_v61 = vmul.f32 %v4910_v56, %v2027_v24  ;;  %vm2100_vm2 = vweird.f32 %v4948_v46  ;;  %v3197_v6 = vld [vmem:[%s5169_s2 + $0x78] sm:$0xff] }
 0x330   :  { %v2084_v33 = vmul.f32 %v4960_v34, %v4932_v38  ;;  %v2057_v11 = vsub.f32 1.5, %v2056_v2  ;;  %v2068_v43 = vmul.f32 %v4929_v4, %v2067_v62  ;;  %v4978_v15 = vpop.eup %3168  ;;  %vm2101_vm4 = vmor %vm2099_vm3, %vm2100_vm2  ;;  %vm2090_vm5 = vweird.f32 %v4960_v34  ;;  %v3198_v38 = vld [vmem:[%s5169_s2 + $0x70] sm:$0xff] }
 0x331   :  { %v2095_v20 = vmul.f32 %v4948_v46, %v2094_v42  ;;  %v2042_v3 = vsel %vm2041_vm8, %v4904_v40, %v2038_v0  ;;  %v2032_v13 = vsel %vm2031_vm10, %v4910_v56, %v2028_v61  ;;  %v2114_v45 = vmul.f32 %v4978_v15, %v4951_v16  ;;  %vm2091_vm7 = vmor %vm2089_vm6, %vm2090_vm5 }
 0x332   :  { %v2216_v39 = vmul.f32 %v3193_v41, %v2042_v3  ;;  %v2085_v59 = vmul.f32 %v4960_v34, %v2084_v33  ;;  %v2215_v40 = vmul.f32 %v3194_v14, %v2032_v13  ;;  %v2058_v56 = vmul.f32 %v4935_v9, %v2057_v11  ;;  %v3196_v33 = vld [vmem:[%s5169_s2 + $0x58] sm:$0xff] }
 0x333   :  { %v2096_v22 = vmul.f32 0.5, %v2095_v20  ;;  %v2115_v2 = vmul.f32 %v4978_v15, %v2114_v45  ;;  %vm2120_vm8 = vweird.f32 %v4978_v15 }
 0x334   :  { %v2086_v24 = vmul.f32 0.5, %v2085_v59  ;;  %v2062_v42 = vsel %vm2061_vm0, %v4935_v9, %v2058_v56  ;;  %vm2121_vm10 = vmor %vm2119_vm9, %vm2120_vm8 }
 0x335   :  { %v2097_v23 = vsub.f32 1.5, %v2096_v22  ;;  %v2218_v20 = vmul.f32 %v3196_v33, %v2062_v42  ;;  %v2116_v9 = vmul.f32 0.5, %v2115_v2 }
 0x336   :  { %v2087_v0 = vsub.f32 1.5, %v2086_v24 }
 0x337   :  { %v2098_v62 = vmul.f32 %v4948_v46, %v2097_v23 }
 0x338   :  { %v2088_v11 = vmul.f32 %v4960_v34, %v2087_v0 }
 0x339   :  { %v2102_v3 = vsel %vm2101_vm4, %v4948_v46, %v2098_v62  ;;  %v3199_v62 = vld [vmem:[%s5169_s2 + $0x88] sm:$0xff] }
 0x33a   :  { %2263 = vperm.xlu1 %3129, %v2213_v44   ;;  %v2072_v44 = vsel %vm2071_vm14, %v4929_v4, %v2068_v43  ;;  %v2222_v41 = vmul.f32 %v3197_v6, %v2102_v3  ;;  %v2092_v22 = vsel %vm2091_vm7, %v4960_v34, %v2088_v11 }
 0x33b   :  { %v2219_v63 = vmul.f32 %v3195_v49, %v2072_v44  ;;  %v2221_v24 = vmul.f32 %v3198_v38, %v2092_v22 }
 0x342   :  { %2278 = vperm.xlu1 %3129, %v2216_v39   ;;  %v2117_v39 = vsub.f32 1.5, %v2116_v9 }
 0x344   :  { %v2118_v45 = vmul.f32 %v4978_v15, %v2117_v39 }
 0x346   :  { %2273 = vperm.xlu2 %3130, %v2215_v40   ;;  %v2122_v42 = vsel %vm2121_vm10, %v4978_v15, %v2118_v45 }
 0x349   :  { %v1879_v61 = vpop.xlane.xlu0 %1878 }
 0x34a   :  { %v1913_v4 = vmul.f32 0.020408163, %v1879_v61  ;;  %2293 = vperm.xlu1 %3129, %v2219_v63  }
 0x34c   :  { %v1937_v54 = vadd.f32 1e-05, %v1913_v4  ;;  %v2224_v4 = vmul.f32 %v3199_v62, %v2122_v42 }
 0x34e   :  { %3170 = vrsqrt.f32 %v1937_v54  ;;  %2288 = vperm.xlu2 %3130, %v2218_v20   ;;  %vm2129_vm12 = vweird.f32 %v1937_v54 }
 0x351   :  { %v1882_v13 = vpop.xlane.xlu1 %1881  ;;  %v1888_v59 = vpop.xlane.xlu0 %1887 }
 0x352   :  { %v1914_v43 = vmul.f32 0.020408163, %v1882_v13  ;;  %v1916_v14 = vmul.f32 0.020408163, %v1888_v59  ;;  %2308 = vperm.xlu1 %3129, %v2222_v41   ;;  %v3200_v13 = vld [vmem:[%s5169_s2 + $0x90] sm:$0xff] }
 0x354   :  { %v3171_v46 = vpop.eup %3170  ;;  %v1938_v40 = vadd.f32 1e-05, %v1914_v43  ;;  %v1940_v56 = vadd.f32 1e-05, %v1916_v14 }
 0x355   :  { %v2124_v23 = vmul.f32 %v3171_v46, %v1937_v54  ;;  %vm2130_vm11 = vweird.f32 %v3171_v46 }
 0x356   :  { %3172 = vrsqrt.f32 %v1938_v40  ;;  %2303 = vperm.xlu2 %3130, %v2221_v24   ;;  %vm2131_vm13 = vmor %vm2129_vm12, %vm2130_vm11  ;;  %vm2139_vm0 = vweird.f32 %v1938_v40  ;;  %vm2159_vm3 = vweird.f32 %v1940_v56 }
 0x357   :  { %v2125_v34 = vmul.f32 %v3171_v46, %v2124_v23  ;;  %3174 = vrsqrt.f32 %v1940_v56 }
 0x358   :  { %v1885_v44 = vpop.xlane.xlu2 %1884 }
 0x359   :  { %v2126_v49 = vmul.f32 0.5, %v2125_v34  ;;  %v1915_v63 = vmul.f32 0.020408163, %v1885_v44 }
 0x35b   :  { %v2127_v0 = vsub.f32 1.5, %v2126_v49  ;;  %v1939_v2 = vadd.f32 1e-05, %v1915_v63 }
 0x35c   :  { %v3173_v61 = vpop.eup %3172 }
 0x35d   :  { %v3175_v33 = vpop.eup %3174  ;;  %v2134_v20 = vmul.f32 %v3173_v61, %v1938_v40  ;;  %3176 = vrsqrt.f32 %v1939_v2  ;;  %v2128_v9 = vmul.f32 %v3171_v46, %v2127_v0  ;;  %vm2140_vm14 = vweird.f32 %v3173_v61 }
 0x35e   :  { %v2154_v16 = vmul.f32 %v3175_v33, %v1940_v56  ;;  %2318 = vperm.xlu2 %3130, %v2224_v4   ;;  %vm2160_vm15 = vweird.f32 %v3175_v33  ;;  %vm2141_vm2 = vmor %vm2139_vm0, %vm2140_vm14  ;;  %vm2149_vm6 = vweird.f32 %v1939_v2 }
 0x35f   :  { %v2135_v3 = vmul.f32 %v3173_v61, %v2134_v20  ;;  %v2132_v6 = vsel %vm2131_vm13, %v3171_v46, %v2128_v9  ;;  %vm2161_vm4 = vmor %vm2159_vm3, %vm2160_vm15 }
 0x360   :  { %v2155_v11 = vmul.f32 %v3175_v33, %v2154_v16  ;;  %v2249_v15 = vpop.permute.xlu2 %2248  ;;  %v2225_v59 = vmul.f32 %v3200_v13, %v2132_v6 }
 0x361   :  { %v2136_v41 = vmul.f32 0.5, %v2135_v3  ;;  %v2354_v39 = vmul.f32 %v2249_v15, %v4672_v60 }
 0x362   :  { %v2156_v22 = vmul.f32 0.5, %v2155_v11  ;;  %2323 = vperm.xlu1 %3129, %v2225_v59  }
 0x363   :  { %v3177_v43 = vpop.eup %3176  ;;  %v2137_v14 = vsub.f32 1.5, %v2136_v41  ;;  %v2498_v54 = vadd.f32 %v4565_v48, %v2354_v39  ;;  %v5032_v48 = vld [vmem:[%s5169_s2 + $0xa8] sm:$0xff] }
 0x364   :  { %v2157_v38 = vsub.f32 1.5, %v2156_v22  ;;  %v2144_v24 = vmul.f32 %v3177_v43, %v1939_v2  ;;  %v2269_v23 = vpop.permute.xlu0 %2268  ;;  %vm2150_vm5 = vweird.f32 %v3177_v43 }
 0x365   :  { %2522 = vst.msk [vmem:[%s5170_s3 + $0x18] sm:$0xff] %vm1678_vm1, %v2498_v54  ;;  %v2358_v60 = vmul.f32 %v2269_v23, %v4716_v17  ;;  %v2138_v46 = vmul.f32 %v3173_v61, %v2137_v14  ;;  %v3201_v17 = vld [vmem:[%s5169_s2 + $0x98] sm:$0xff]  ;;  %vm2151_vm7 = vmor %vm2149_vm6, %vm2150_vm5 }
 0x366   :  { %v2145_v45 = vmul.f32 %v3177_v43, %v2144_v24  ;;  %v2158_v34 = vmul.f32 %v3175_v33, %v2157_v38 }
 0x367   :  { %v2502_v40 = vadd.f32 %v4608_v18, %v2358_v60  ;;  %v2142_v44 = vsel %vm2141_vm2, %v3173_v61, %v2138_v46 }
 0x368   :  { %v2146_v49 = vmul.f32 0.5, %v2145_v45  ;;  %v2259_v63 = vpop.permute.xlu2 %2258  ;;  %v2226_v42 = vmul.f32 %v3201_v17, %v2142_v44  ;;  %v2162_v0 = vsel %vm2161_vm4, %v3175_v33, %v2158_v34 }
 0x369   :  { %2526 = vst.msk [vmem:[%s5170_s3 + $0x38] sm:$0xff] %vm1678_vm1, %v2502_v40  ;;  %v2356_v56 = vmul.f32 %v2259_v63, %v4694_v37  ;;  %v2254_v62 = vpop.permute.xlu1 %2253  ;;  %v2228_v4 = vmul.f32 %v5032_v48, %v2162_v0 }
 0x36a   :  { %v2147_v18 = vsub.f32 1.5, %v2146_v49  ;;  %v2355_v61 = vmul.f32 %v2254_v62, %v4683_v32  ;;  %2328 = vperm.xlu0 %3128, %v2226_v42  }
 0x36b   :  { %v2500_v20 = vadd.f32 %v4577_v55, %v2356_v56  ;;  %2338 = vperm.xlu1 %3129, %v2228_v4  }
 0x36c   :  { %v2499_v33 = vadd.f32 %v4597_v36, %v2355_v61  ;;  %v2284_v16 = vpop.permute.xlu0 %2283  ;;  %v2148_v9 = vmul.f32 %v3177_v43, %v2147_v18  ;;  %v3202_v36 = vld [vmem:[%s5169_s2 + $0xa0] sm:$0xff] }
 0x36d   :  { %2524 = vst.msk [vmem:[%s5170_s3 + $0x28] sm:$0xff] %vm1678_vm1, %v2500_v20  ;;  %v2361_v37 = vmul.f32 %v2284_v16, %v4741_v10  ;;  %v5185_v10 = vmov 1  }
 0x36e   :  { %2523 = vst.msk [vmem:[%s5170_s3 + $0x20] sm:$0xff] %vm1678_vm1, %v2499_v33  ;;  %v2152_v55 = vsel %vm2151_vm7, %v3177_v43, %v2148_v9 }
 0x36f   :  { %v2505_v32 = vadd.f32 %v4619_v29, %v2361_v37  ;;  %v2227_v2 = vmul.f32 %v3202_v36, %v2152_v55  ;;  %v2206_v29 = vld [vmem:[%s5169_s2 + $0xb8] sm:$0xff] }
 0x371   :  { %2529 = vst.msk [vmem:[%s5170_s3 + $0x50] sm:$0xff] %vm1678_vm1, %v2505_v32  ;;  %2333 = vperm.xlu2 %3130, %v2227_v2   ;;  %v5187_v32 = vld [vmem:[#allocation9_spill] sm:$0xff]  ;;  %v5188_v2 = vld [vmem:[#allocation4_spill] sm:$0xff] }
 0x373   :  { %3133 = vset.pattern.permute.xlu1 %v5185_v10 }
 0x374   :  { %2492 = vperm.xlu1 %3133, %v2206_v29  }
 0x381   :  { %v2299_v3 = vpop.permute.xlu0 %2298 }
 0x382   :  { %v2364_v11 = vmul.f32 %v2299_v3, %v4759_v52 }
 0x384   :  { %v2508_v15 = vadd.f32 %v4630_v31, %v2364_v11  ;;  %v5190_v11 = vld [vmem:[#allocation3_spill] sm:$0xff] }
 0x386   :  { %2532 = vst.msk [vmem:[%s5170_s3 + $0x68] sm:$0xff] %vm1678_vm1, %v2508_v15 }
 0x394   :  { %v1891_v6 = vpop.xlane.xlu1 %1890 }
 0x395   :  { %v1917_v41 = vmul.f32 0.020408163, %v1891_v6  ;;  %v5191_v6 = vld [vmem:[#allocation7_spill] sm:$0xff] }
 0x397   :  { %v1941_v39 = vadd.f32 1e-05, %v1917_v41 }
 0x399   :  { %3178 = vrsqrt.f32 %v1941_v39  ;;  %v2314_v13 = vpop.permute.xlu0 %2313  ;;  %vm2169_vm9 = vweird.f32 %v1941_v39 }
 0x39a   :  { %v2367_v59 = vmul.f32 %v2314_v13, %v4777_v28 }
 0x39c   :  { %v2511_v52 = vadd.f32 %v4651_v47, %v2367_v59  ;;  %v2205_v47 = vld [vmem:[%s5169_s2 + $0xb0] sm:$0xff] }
 0x39e   :  { %2535 = vst.msk [vmem:[%s5170_s3 + $0x80] sm:$0xff] %vm1678_vm1, %v2511_v52 }
 0x39f   :  { %v3179_v31 = vpop.eup %3178 }
 0x3a0   :  { %v2164_v22 = vmul.f32 %v3179_v31, %v1941_v39  ;;  %vm2170_vm8 = vweird.f32 %v3179_v31  ;;  %v5192_v39 = vld [vmem:[#allocation5_spill] sm:$0xff] }
 0x3a1   :  { %v1894_v43 = vpop.xlane.xlu2 %1893  ;;  %vm2171_vm10 = vmor %vm2169_vm9, %vm2170_vm8 }
 0x3a2   :  { %v2165_v14 = vmul.f32 %v3179_v31, %v2164_v22  ;;  %v1918_v54 = vmul.f32 0.020408163, %v1894_v43 }
 0x3a4   :  { %v2166_v38 = vmul.f32 0.5, %v2165_v14  ;;  %v1942_v24 = vadd.f32 1e-05, %v1918_v54 }
 0x3a6   :  { %v2167_v23 = vsub.f32 1.5, %v2166_v38  ;;  %3180 = vrsqrt.f32 %v1942_v24  ;;  %vm2179_vm12 = vweird.f32 %v1942_v24 }
 0x3a8   :  { %v2168_v60 = vmul.f32 %v3179_v31, %v2167_v23  ;;  %v5193_v23 = vld [vmem:[#allocation8_spill] sm:$0xff] }
 0x3a9   :  { %v2274_v28 = vpop.permute.xlu2 %2273 }
 0x3aa   :  { %v2359_v46 = vmul.f32 %v2274_v28, %v4726_v27  ;;  %v2172_v45 = vsel %vm2171_vm10, %v3179_v31, %v2168_v60 }
 0x3ab   :  { %v2229_v34 = vmul.f32 %v2205_v47, %v2172_v45 }
 0x3ac   :  { %v3181_v40 = vpop.eup %3180  ;;  %v2503_v44 = vadd.f32 %v4588_v21, %v2359_v46  ;;  %v2264_v49 = vpop.permute.xlu1 %2263 }
 0x3ad   :  { %v2174_v63 = vmul.f32 %v3181_v40, %v1942_v24  ;;  %v2357_v17 = vmul.f32 %v2264_v49, %v4705_v51  ;;  %2343 = vperm.xlu0 %3128, %v2229_v34   ;;  %vm2180_vm11 = vweird.f32 %v3181_v40 }
 0x3ae   :  { %2527 = vst.msk [vmem:[%s5170_s3 + $0x40] sm:$0xff] %vm1678_vm1, %v2503_v44  ;;  %vm2181_vm13 = vmor %vm2179_vm12, %vm2180_vm11 }
 0x3af   :  { %v2175_v42 = vmul.f32 %v3181_v40, %v2174_v63  ;;  %v2501_v0 = vadd.f32 %v4570_v53, %v2357_v17 }
 0x3b1   :  { %v2176_v56 = vmul.f32 0.5, %v2175_v42  ;;  %2525 = vst.msk [vmem:[%s5170_s3 + $0x30] sm:$0xff] %vm1678_vm1, %v2501_v0  ;;  %v2289_v21 = vpop.permute.xlu2 %2288 }
 0x3b2   :  { %v2362_v27 = vmul.f32 %v2289_v21, %v4747_v57 }
 0x3b3   :  { %v2177_v62 = vsub.f32 1.5, %v2176_v56 }
 0x3b4   :  { %v2506_v51 = vadd.f32 %v4599_v50, %v2362_v27  ;;  %v2279_v4 = vpop.permute.xlu1 %2278 }
 0x3b5   :  { %v2178_v18 = vmul.f32 %v3181_v40, %v2177_v62  ;;  %v2360_v61 = vmul.f32 %v2279_v4, %v4734_v26  ;;  %3131 = vset.pattern.permute.xlu0 %v5185_v10 }
 0x3b6   :  { %2530 = vst.msk [vmem:[%s5170_s3 + $0x58] sm:$0xff] %vm1678_vm1, %v2506_v51  ;;  %2482 = vperm.xlu0 %3131, %v5032_v48  }
 0x3b7   :  { %v2182_v53 = vsel %vm2181_vm13, %v3181_v40, %v2178_v18  ;;  %v2504_v57 = vadd.f32 %v4579_v8, %v2360_v61 }
 0x3b8   :  { %v2230_v20 = vmul.f32 %v2206_v29, %v2182_v53 }
 0x3b9   :  { %2528 = vst.msk [vmem:[%s5170_s3 + $0x48] sm:$0xff] %vm1678_vm1, %v2504_v57  ;;  %v2304_v50 = vpop.permute.xlu2 %2303 }
 0x3ba   :  { %v2365_v26 = vmul.f32 %v2304_v50, %v4765_v1  ;;  %2348 = vperm.xlu2 %3130, %v2230_v20  }
 0x3bc   :  { %v2509_v33 = vadd.f32 %v4612_v5, %v2365_v26  ;;  %v2294_v16 = vpop.permute.xlu1 %2293 }
 0x3bd   :  { %v2363_v9 = vmul.f32 %v2294_v16, %v4753_v35 }
 0x3be   :  { %2533 = vst.msk [vmem:[%s5170_s3 + $0x70] sm:$0xff] %vm1678_vm1, %v2509_v33 }
 0x3bf   :  { %v2507_v8 = vadd.f32 %v4592_v7, %v2363_v9  ;;  %v5186_v7 = vld [vmem:[#allocation2_spill] sm:$0xff] }
 0x3c1   :  { %2531 = vst.msk [vmem:[%s5170_s3 + $0x60] sm:$0xff] %vm1678_vm1, %v2507_v8  ;;  %v2319_v48 = vpop.permute.xlu2 %2318 }
 0x3c2   :  { %v2368_v1 = vmul.f32 %v2319_v48, %v4783_v30  ;;  %3132 = vset.pattern.permute.xlu2 %v5185_v10  ;;  %v5189_v10 = vld [vmem:[#allocation6_spill] sm:$0xff] }
 0x3c3   :  { %2487 = vperm.xlu2 %3132, %v2205_v47  }
 0x3c4   :  { %v2512_v5 = vadd.f32 %v4626_v12, %v2368_v1  ;;  %v2309_v35 = vpop.permute.xlu1 %2308 }
 0x3c5   :  { %v2366_v37 = vmul.f32 %v2309_v35, %v4771_v58 }
 0x3c6   :  { %2536 = vst.msk [vmem:[%s5170_s3 + $0x88] sm:$0xff] %vm1678_vm1, %v2512_v5 }
 0x3c7   :  { %v2510_v55 = vadd.f32 %v5186_v7, %v2366_v37 }
 0x3c9   :  { %2534 = vst.msk [vmem:[%s5170_s3 + $0x78] sm:$0xff] %vm1678_vm1, %v2510_v55 }
 0x3cb   :  { %v2334_v30 = vpop.permute.xlu2 %2333 }
 0x3cc   :  { %v2371_v36 = vmul.f32 %v2334_v30, %v5187_v32 }
 0x3ce   :  { %v2515_v12 = vadd.f32 %v5188_v2, %v2371_v36 }
 0x3d0   :  { %2539 = vst.msk [vmem:[%s5170_s3 + $0xa0] sm:$0xff] %vm1678_vm1, %v2515_v12 }
 0x3d4   :  { %v2324_v58 = vpop.permute.xlu1 %2323 }
 0x3d5   :  { %v2369_v3 = vmul.f32 %v2324_v58, %v5189_v10 }
 0x3d7   :  { %v2513_v15 = vadd.f32 %v5190_v11, %v2369_v3 }
 0x3d9   :  { %2537 = vst.msk [vmem:[%s5170_s3 + $0x90] sm:$0xff] %vm1678_vm1, %v2513_v15 }
 0x3dc   :  { %v2329_v29 = vpop.permute.xlu0 %2328 }
 0x3dd   :  { %v2370_v41 = vmul.f32 %v2329_v29, %v5191_v6  ;;  %v2339_v59 = vpop.permute.xlu1 %2338 }
 0x3de   :  { %v2372_v60 = vmul.f32 %v2339_v59, %v5193_v23 }
 0x3df   :  { %v2514_v13 = vadd.f32 %v5192_v39, %v2370_v41 }
 0x3e1   :  { %2538 = vst.msk [vmem:[%s5170_s3 + $0x98] sm:$0xff] %vm1678_vm1, %v2514_v13 }
 0x3e6   :  { %v2493_v31 = vpop.permute.xlu1 %2492 }
 0x414   :  { %v2349_v52 = vpop.permute.xlu2 %2348 }
 0x415   :  { %v2374_v22 = vmul.f32 %v2349_v52, %v4899_v19 }
 0x417   :  { %v2518_v43 = vadd.f32 %v2493_v31, %v2374_v22 }
 0x419   :  { %2542 = vst.msk [vmem:[%s5170_s3 + $0xb8] sm:$0xff] %vm1678_vm1, %v2518_v43 }
 0x41d   :  { %v2488_v54 = vpop.permute.xlu2 %2487 }
 0x41f   :  { %v2344_v14 = vpop.permute.xlu0 %2343 }
 0x420   :  { %v2373_v38 = vmul.f32 %v2344_v14, %v4866_v25 }
 0x422   :  { %v2517_v24 = vadd.f32 %v2488_v54, %v2373_v38 }
 0x424   :  { %2541 = vst.msk [vmem:[%s5170_s3 + $0xb0] sm:$0xff] %vm1678_vm1, %v2517_v24 }
 0x428   :  { %v2483_v47 = vpop.permute.xlu0 %2482 }
 0x429   :  { %v2516_v19 = vadd.f32 %v2483_v47, %v2372_v60 }
 0x42b   :  { %2540 = vst.msk [vmem:[%s5170_s3 + $0xa8] sm:$0xff] %vm1678_vm1, %v2516_v19 }

</bundles_post_ra>
